<compile_context>
chip_gen: v7x
topology: tpu7x:2x2x1
jax: 0.10.0
libtpu: 0.0.40
codegen_flags: <defaults>
</compile_context>

<pallas_src>
import functools

import numpy as np
import jax
import jax.numpy as jnp
from jax.experimental import pallas as pl
from jax.experimental.pallas import tpu as pltpu

_LANE = 128


def _round_up(n, m):
    return ((n + m - 1) // m) * m


def _reorder_pad_gate_cols(w, hidden, pad):
    """(rows, 4*hidden) in PyTorch gate order [i,f,g,o] ->
       (rows, 4*pad) in order [i,f,o,g], each gate zero-padded to `pad` cols."""
    i = w[:, 0 * hidden:1 * hidden]
    f = w[:, 1 * hidden:2 * hidden]
    g = w[:, 2 * hidden:3 * hidden]
    o = w[:, 3 * hidden:4 * hidden]
    z = lambda b: jnp.pad(b, ((0, 0), (0, pad - hidden)))
    return jnp.concatenate([z(i), z(f), z(o), z(g)], axis=1)


def _pad_rows(w, rows_pad):
    return jnp.pad(w, ((0, rows_pad - w.shape[0]), (0, 0)))


# ----------------------------------------------------------------------------
# Kernel
# ----------------------------------------------------------------------------
def _encoder_kernel(x_ref, wih1_ref, b1_ref, w1m_ref, whh2_ref, b2_ref, out_ref):
    seq_len = x_ref.shape[0]
    P1 = w1m_ref.shape[0]           # padded hidden_dim    (multiple of 128)
    P2 = out_ref.shape[1]           # padded embedding_dim (multiple of 128)
    G1 = 4 * P1
    G2 = 4 * P2

    # ---- Layer-1 input projection for ALL timesteps.  n_features == 1, so a
    # K=1 contraction would waste an MXU push/drain: do it on the VPU instead.
    x = x_ref[...].astype(jnp.float32)                                   # (seq, n_feat)
    if x_ref.shape[1] == 1:
        gih1 = x * wih1_ref[...] + b1_ref[...]                           # broadcast (seq, G1)
    else:  # generic fallback (unused for this module)
        gih1 = (jnp.dot(x, wih1_ref[...], preferred_element_type=jnp.float32)
                + b1_ref[...])

    w1m = w1m_ref[...]              # (P1, G1+G2) bf16 : [W_hh1 | W_ih2]
    whh2 = whh2_ref[...]            # (P2, G2)    bf16
    b2 = b2_ref[...]                # (1, G2)     f32

    def gates_to_hc(g, c, P):
        # Gate order [i, f, o, g]: one sigmoid over 3*P lanes + one tanh over
        # P lanes; all slice boundaries are 128-lane aligned.
        ifo = jax.nn.sigmoid(g[:, :3 * P])
        gg = jnp.tanh(g[:, 3 * P:])
        i = ifo[:, 0:P]
        f = ifo[:, P:2 * P]
        o = ifo[:, 2 * P:3 * P]
        c_new = f * c + i * gg
        h_new = o * jnp.tanh(c_new)
        return h_new, c_new

    # Full-lane (padded) carries; padded lanes provably remain exactly zero.
    c1 = jnp.zeros((1, P1), jnp.float32)
    h2 = jnp.zeros((1, P2), jnp.float32)
    c2 = jnp.zeros((1, P2), jnp.float32)

    # m  = h1(t-1) @ [W_hh1 | W_ih2]  (zero at t=0 since h1(-1) = 0)
    # r2 = h2(t-1) @ W_hh2            (zero at t=0 since h2(-1) = 0)
    m = jnp.zeros((1, G1 + G2), jnp.float32)
    r2 = jnp.zeros((1, G2), jnp.float32)

    # ---- Fully unrolled recurrence (seq_len is static & small). ----
    for t in range(seq_len):
        # Layer 1, step t: recurrent part already sits in m[:, :G1].
        g1 = gih1[t:t + 1, :] + m[:, :G1]
        h1, c1 = gates_to_hc(g1, c1, P1)

        # Single serial-path matmul: h1(t) @ [W_hh1 | W_ih2] -> layer-2 input
        # contribution for step t AND layer-1 recurrence for step t+1.
        m = jnp.dot(h1.astype(jnp.bfloat16), w1m,
                    preferred_element_type=jnp.float32)

        # Layer 2, step t (r2 only depends on h2(t-1): off the critical path).
        g2 = m[:, G1:] + r2 + b2
        h2, c2 = gates_to_hc(g2, c2, P2)

        # Recurrent matmul for the NEXT step; skipped on the last iteration.
        if t + 1 < seq_len:
            r2 = jnp.dot(h2.astype(jnp.bfloat16), whh2,
                         preferred_element_type=jnp.float32)

    out_ref[...] = h2.astype(out_ref.dtype)                              # (1, P2) lane-dense


# ----------------------------------------------------------------------------
# Parameters (PyTorch layout) + one-time host-side packing for the kernel
# ----------------------------------------------------------------------------
def init_encoder_params(key, n_features, embedding_dim):
    """PyTorch-style LSTM params: W_ih (4H, in), W_hh (4H, H), b_* (4H,)."""
    H1 = 2 * embedding_dim
    H2 = embedding_dim
    ks = jax.random.split(key, 8)

    def uni(k, shape, bound):
        return jax.random.uniform(k, shape, jnp.float32, -bound, bound)

    s1 = 1.0 / np.sqrt(H1)
    s2 = 1.0 / np.sqrt(H2)
    return {
        "w_ih1": uni(ks[0], (4 * H1, n_features), s1),
        "w_hh1": uni(ks[1], (4 * H1, H1), s1),
        "b_ih1": uni(ks[2], (4 * H1,), s1),
        "b_hh1": uni(ks[3], (4 * H1,), s1),
        "w_ih2": uni(ks[4], (4 * H2, H1), s2),
        "w_hh2": uni(ks[5], (4 * H2, H2), s2),
        "b_ih2": uni(ks[6], (4 * H2,), s2),
        "b_hh2": uni(ks[7], (4 * H2,), s2),
    }


def pack_encoder_params(params, embedding_dim, weight_dtype=jnp.bfloat16):
    """One-time packing: transpose, reorder gates to [i,f,o,g], pad each gate
    to 128 lanes, pad rows to 128, merge [W_hh1 | W_ih2] into a single RHS,
    and cast matmul weights to bf16 (biases / wih1 stay f32)."""
    H1 = 2 * embedding_dim
    H2 = embedding_dim
    P1 = max(_LANE, _round_up(H1, _LANE))
    P2 = max(_LANE, _round_up(H2, _LANE))

    wih1 = _reorder_pad_gate_cols(params["w_ih1"].T, H1, P1)                # (n_feat, 4*P1) f32
    whh1 = _pad_rows(_reorder_pad_gate_cols(params["w_hh1"].T, H1, P1), P1)  # (P1, 4*P1)
    wih2 = _pad_rows(_reorder_pad_gate_cols(params["w_ih2"].T, H2, P2), P1)  # (P1, 4*P2)
    w1m = jnp.concatenate([whh1, wih2], axis=1).astype(weight_dtype)         # (P1, 4*P1+4*P2)
    whh2 = _pad_rows(_reorder_pad_gate_cols(params["w_hh2"].T, H2, P2),
                     P2).astype(weight_dtype)                                # (P2, 4*P2)

    b1 = _reorder_pad_gate_cols(
        (params["b_ih1"] + params["b_hh1"])[None, :], H1, P1)                # (1, 4*P1) f32
    b2 = _reorder_pad_gate_cols(
        (params["b_ih2"] + params["b_hh2"])[None, :], H2, P2)                # (1, 4*P2) f32

    return {"wih1": wih1, "b1": b1, "w1m": w1m, "whh2": whh2, "b2": b2}


# ----------------------------------------------------------------------------
# Forward wrapper (jitted; packing is done once by the caller)
# ----------------------------------------------------------------------------
@functools.partial(jax.jit,
                   static_argnames=("seq_len", "n_features", "embedding_dim"))
def encoder_forward(x, packed, seq_len, n_features, embedding_dim):
    # Mirrors torch: x.reshape((1, seq_len, n_features)); the final reshape
    # (n_features, embedding_dim) of hidden_n requires n_features == 1.
    assert n_features == 1, "final reshape requires n_features == 1"
    P2 = packed["whh2"].shape[0]
    x2d = x.reshape(seq_len, n_features).astype(jnp.float32)

    out = pl.pallas_call(
        _encoder_kernel,
        out_shape=jax.ShapeDtypeStruct((1, P2), jnp.float32),
        in_specs=[pl.BlockSpec(memory_space=pltpu.MemorySpace.VMEM)] * 6,
        out_specs=pl.BlockSpec(memory_space=pltpu.MemorySpace.VMEM),
    )(x2d, packed["wih1"], packed["b1"], packed["w1m"],
      packed["whh2"], packed["b2"])

    return out[:, :embedding_dim].reshape(n_features, embedding_dim)


# ----------------------------------------------------------------------------
# Pure-JAX reference (PyTorch LSTM math, gate order [i,f,g,o], all f32)
# ----------------------------------------------------------------------------
def encoder_reference(x, params, seq_len, n_features, embedding_dim):
    H1 = 2 * embedding_dim
    H2 = embedding_dim
    x2d = x.reshape(seq_len, n_features).astype(jnp.float32)

    def cell(x_t, h, c, w_ih, w_hh, b_ih, b_hh, hidden):
        gates = x_t @ w_ih.T + b_ih + h @ w_hh.T + b_hh
        i = jax.nn.sigmoid(gates[:, 0 * hidden:1 * hidden])
        f = jax.nn.sigmoid(gates[:, 1 * hidden:2 * hidden])
        g = jnp.tanh(gates[:, 2 * hidden:3 * hidden])
        o = jax.nn.sigmoid(gates[:, 3 * hidden:4 * hidden])
        c_new = f * c + i * g
        return o * jnp.tanh(c_new), c_new

    h1 = jnp.zeros((1, H1), jnp.float32); c1 = jnp.zeros((1, H1), jnp.float32)
    h2 = jnp.zeros((1, H2), jnp.float32); c2 = jnp.zeros((1, H2), jnp.float32)
    for t in range(seq_len):
        x_t = x2d[t:t + 1, :]
        h1, c1 = cell(x_t, h1, c1, params["w_ih1"], params["w_hh1"],
                      params["b_ih1"], params["b_hh1"], H1)
        h2, c2 = cell(h1, h2, c2, params["w_ih2"], params["w_hh2"],
                      params["b_ih2"], params["b_hh2"], H2)
    return h2.reshape(n_features, embedding_dim)


if __name__ == "__main__":
    seq_len, n_features, embedding_dim = 8, 1, 32

    key = jax.random.PRNGKey(0)
    k_params, k_x = jax.random.split(key)
    params = init_encoder_params(k_params, n_features, embedding_dim)
    x = jax.random.normal(k_x, (seq_len, n_features), jnp.float32)

    # Pack once (hoisted out of the forward), reuse across calls.
    packed = pack_encoder_params(params, embedding_dim)

    out = encoder_forward(x, packed, seq_len, n_features, embedding_dim)
    out = jax.block_until_ready(out)

    assert out.shape == (n_features, embedding_dim)
    ref = encoder_reference(x, params, seq_len, n_features, embedding_dim)
    # bf16 matmul weights -> loosened tolerance vs. the f32 reference.
    np.testing.assert_allclose(np.asarray(out), np.asarray(ref),
                               rtol=2e-2, atol=2e-2)

    print("KERNEL_OK")
</pallas_src>

<mosaic_0001>
module attributes {stable_mosaic.version = 11 : i64} {
  func.func @_encoder_kernel(%arg0: memref<8x1xf32, #tpu.memory_space<vmem>>, %arg1: memref<1x512xf32, #tpu.memory_space<vmem>>, %arg2: memref<1x512xf32, #tpu.memory_space<vmem>>, %arg3: memref<128x1024xbf16, #tpu.memory_space<vmem>>, %arg4: memref<128x512xbf16, #tpu.memory_space<vmem>>, %arg5: memref<1x512xf32, #tpu.memory_space<vmem>>, %arg6: memref<1x128xf32, #tpu.memory_space<vmem>>) attributes {dimension_semantics = [], scalar_prefetch = 0 : i64, scratch_operands = 0 : i64, tpu.core_type = #tpu.core_type<tc>} {
    %c0 = arith.constant 0 : index
    %c0_0 = arith.constant 0 : index
    %0 = vector.load %arg0[%c0, %c0_0] : memref<8x1xf32, #tpu.memory_space<vmem>>, vector<8x1xf32>
    %c0_1 = arith.constant 0 : index
    %c0_2 = arith.constant 0 : index
    %1 = vector.load %arg1[%c0_1, %c0_2] : memref<1x512xf32, #tpu.memory_space<vmem>>, vector<1x512xf32>
    %2 = vector.broadcast %0 : vector<8x1xf32> to vector<8x512xf32>
    %3 = vector.broadcast %1 : vector<1x512xf32> to vector<8x512xf32>
    %4 = arith.mulf %2, %3 : vector<8x512xf32>
    %c0_3 = arith.constant 0 : index
    %c0_4 = arith.constant 0 : index
    %5 = vector.load %arg2[%c0_3, %c0_4] : memref<1x512xf32, #tpu.memory_space<vmem>>, vector<1x512xf32>
    %6 = vector.broadcast %5 : vector<1x512xf32> to vector<8x512xf32>
    %7 = arith.addf %4, %6 : vector<8x512xf32>
    %c0_5 = arith.constant 0 : index
    %c0_6 = arith.constant 0 : index
    %8 = vector.load %arg3[%c0_5, %c0_6] : memref<128x1024xbf16, #tpu.memory_space<vmem>>, vector<128x1024xbf16>
    %c0_7 = arith.constant 0 : index
    %c0_8 = arith.constant 0 : index
    %9 = vector.load %arg4[%c0_7, %c0_8] : memref<128x512xbf16, #tpu.memory_space<vmem>>, vector<128x512xbf16>
    %c0_9 = arith.constant 0 : index
    %c0_10 = arith.constant 0 : index
    %10 = vector.load %arg5[%c0_9, %c0_10] : memref<1x512xf32, #tpu.memory_space<vmem>>, vector<1x512xf32>
    %cst = arith.constant 0.000000e+00 : f32
    %11 = vector.broadcast %cst : f32 to vector<1x128xf32>
    %cst_11 = arith.constant 0.000000e+00 : f32
    %12 = vector.broadcast %cst_11 : f32 to vector<1x128xf32>
    %cst_12 = arith.constant 0.000000e+00 : f32
    %13 = vector.broadcast %cst_12 : f32 to vector<1x1024xf32>
    %cst_13 = arith.constant 0.000000e+00 : f32
    %14 = vector.broadcast %cst_13 : f32 to vector<1x512xf32>
    %15 = vector.extract_strided_slice %7 {offsets = [0, 0], sizes = [1, 512], strides = [1, 1]} : vector<8x512xf32> to vector<1x512xf32>
    %16 = vector.extract_strided_slice %13 {offsets = [0, 0], sizes = [1, 512], strides = [1, 1]} : vector<1x1024xf32> to vector<1x512xf32>
    %17 = arith.addf %15, %16 : vector<1x512xf32>
    %18 = vector.extract_strided_slice %17 {offsets = [0, 0], sizes = [1, 384], strides = [1, 1]} : vector<1x512xf32> to vector<1x384xf32>
    %19 = arith.negf %18 : vector<1x384xf32>
    %20 = math.exp %19 : vector<1x384xf32>
    %cst_14 = arith.constant 1.000000e+00 : f32
    %21 = vector.broadcast %cst_14 : f32 to vector<1x384xf32>
    %22 = arith.addf %21, %20 : vector<1x384xf32>
    %23 = arith.divf %21, %22 : vector<1x384xf32>
    %24 = vector.extract_strided_slice %17 {offsets = [0, 384], sizes = [1, 128], strides = [1, 1]} : vector<1x512xf32> to vector<1x128xf32>
    %25 = math.tanh %24 : vector<1x128xf32>
    %26 = vector.extract_strided_slice %23 {offsets = [0, 0], sizes = [1, 128], strides = [1, 1]} : vector<1x384xf32> to vector<1x128xf32>
    %27 = vector.extract_strided_slice %23 {offsets = [0, 128], sizes = [1, 128], strides = [1, 1]} : vector<1x384xf32> to vector<1x128xf32>
    %28 = vector.extract_strided_slice %23 {offsets = [0, 256], sizes = [1, 128], strides = [1, 1]} : vector<1x384xf32> to vector<1x128xf32>
    %29 = arith.mulf %27, %11 : vector<1x128xf32>
    %30 = arith.mulf %26, %25 : vector<1x128xf32>
    %31 = arith.addf %29, %30 : vector<1x128xf32>
    %32 = math.tanh %31 : vector<1x128xf32>
    %33 = arith.mulf %28, %32 : vector<1x128xf32>
    %34 = arith.truncf %33 : vector<1x128xf32> to vector<1x128xbf16>
    %cst_15 = arith.constant dense<0.000000e+00> : vector<1x1024xf32>
    %35 = tpu.matmul %34, %8, %cst_15 {dimension_numbers = #tpu.dot_dimension_numbers<[1], [0], [0], [1], [0, 0, 1, 1], [], []>} : vector<1x128xbf16>, vector<128x1024xbf16>, vector<1x1024xf32> -> vector<1x1024xf32>
    %36 = vector.extract_strided_slice %35 {offsets = [0, 512], sizes = [1, 512], strides = [1, 1]} : vector<1x1024xf32> to vector<1x512xf32>
    %37 = arith.addf %36, %14 : vector<1x512xf32>
    %38 = arith.addf %37, %10 : vector<1x512xf32>
    %39 = vector.extract_strided_slice %38 {offsets = [0, 0], sizes = [1, 384], strides = [1, 1]} : vector<1x512xf32> to vector<1x384xf32>
    %40 = arith.negf %39 : vector<1x384xf32>
    %41 = math.exp %40 : vector<1x384xf32>
    %cst_16 = arith.constant 1.000000e+00 : f32
    %42 = vector.broadcast %cst_16 : f32 to vector<1x384xf32>
    %43 = arith.addf %42, %41 : vector<1x384xf32>
    %44 = arith.divf %42, %43 : vector<1x384xf32>
    %45 = vector.extract_strided_slice %38 {offsets = [0, 384], sizes = [1, 128], strides = [1, 1]} : vector<1x512xf32> to vector<1x128xf32>
    %46 = math.tanh %45 : vector<1x128xf32>
    %47 = vector.extract_strided_slice %44 {offsets = [0, 0], sizes = [1, 128], strides = [1, 1]} : vector<1x384xf32> to vector<1x128xf32>
    %48 = vector.extract_strided_slice %44 {offsets = [0, 128], sizes = [1, 128], strides = [1, 1]} : vector<1x384xf32> to vector<1x128xf32>
    %49 = vector.extract_strided_slice %44 {offsets = [0, 256], sizes = [1, 128], strides = [1, 1]} : vector<1x384xf32> to vector<1x128xf32>
    %50 = arith.mulf %48, %12 : vector<1x128xf32>
    %51 = arith.mulf %47, %46 : vector<1x128xf32>
    %52 = arith.addf %50, %51 : vector<1x128xf32>
    %53 = math.tanh %52 : vector<1x128xf32>
    %54 = arith.mulf %49, %53 : vector<1x128xf32>
    %55 = arith.truncf %54 : vector<1x128xf32> to vector<1x128xbf16>
    %cst_17 = arith.constant dense<0.000000e+00> : vector<1x512xf32>
    %56 = tpu.matmul %55, %9, %cst_17 {dimension_numbers = #tpu.dot_dimension_numbers<[1], [0], [0], [1], [0, 0, 1, 1], [], []>} : vector<1x128xbf16>, vector<128x512xbf16>, vector<1x512xf32> -> vector<1x512xf32>
    %57 = vector.extract_strided_slice %7 {offsets = [1, 0], sizes = [1, 512], strides = [1, 1]} : vector<8x512xf32> to vector<1x512xf32>
    %58 = vector.extract_strided_slice %35 {offsets = [0, 0], sizes = [1, 512], strides = [1, 1]} : vector<1x1024xf32> to vector<1x512xf32>
    %59 = arith.addf %57, %58 : vector<1x512xf32>
    %60 = vector.extract_strided_slice %59 {offsets = [0, 0], sizes = [1, 384], strides = [1, 1]} : vector<1x512xf32> to vector<1x384xf32>
    %61 = arith.negf %60 : vector<1x384xf32>
    %62 = math.exp %61 : vector<1x384xf32>
    %cst_18 = arith.constant 1.000000e+00 : f32
    %63 = vector.broadcast %cst_18 : f32 to vector<1x384xf32>
    %64 = arith.addf %63, %62 : vector<1x384xf32>
    %65 = arith.divf %63, %64 : vector<1x384xf32>
    %66 = vector.extract_strided_slice %59 {offsets = [0, 384], sizes = [1, 128], strides = [1, 1]} : vector<1x512xf32> to vector<1x128xf32>
    %67 = math.tanh %66 : vector<1x128xf32>
    %68 = vector.extract_strided_slice %65 {offsets = [0, 0], sizes = [1, 128], strides = [1, 1]} : vector<1x384xf32> to vector<1x128xf32>
    %69 = vector.extract_strided_slice %65 {offsets = [0, 128], sizes = [1, 128], strides = [1, 1]} : vector<1x384xf32> to vector<1x128xf32>
    %70 = vector.extract_strided_slice %65 {offsets = [0, 256], sizes = [1, 128], strides = [1, 1]} : vector<1x384xf32> to vector<1x128xf32>
    %71 = arith.mulf %69, %31 : vector<1x128xf32>
    %72 = arith.mulf %68, %67 : vector<1x128xf32>
    %73 = arith.addf %71, %72 : vector<1x128xf32>
    %74 = math.tanh %73 : vector<1x128xf32>
    %75 = arith.mulf %70, %74 : vector<1x128xf32>
    %76 = arith.truncf %75 : vector<1x128xf32> to vector<1x128xbf16>
    %cst_19 = arith.constant dense<0.000000e+00> : vector<1x1024xf32>
    %77 = tpu.matmul %76, %8, %cst_19 {dimension_numbers = #tpu.dot_dimension_numbers<[1], [0], [0], [1], [0, 0, 1, 1], [], []>} : vector<1x128xbf16>, vector<128x1024xbf16>, vector<1x1024xf32> -> vector<1x1024xf32>
    %78 = vector.extract_strided_slice %77 {offsets = [0, 512], sizes = [1, 512], strides = [1, 1]} : vector<1x1024xf32> to vector<1x512xf32>
    %79 = arith.addf %78, %56 : vector<1x512xf32>
    %80 = arith.addf %79, %10 : vector<1x512xf32>
    %81 = vector.extract_strided_slice %80 {offsets = [0, 0], sizes = [1, 384], strides = [1, 1]} : vector<1x512xf32> to vector<1x384xf32>
    %82 = arith.negf %81 : vector<1x384xf32>
    %83 = math.exp %82 : vector<1x384xf32>
    %cst_20 = arith.constant 1.000000e+00 : f32
    %84 = vector.broadcast %cst_20 : f32 to vector<1x384xf32>
    %85 = arith.addf %84, %83 : vector<1x384xf32>
    %86 = arith.divf %84, %85 : vector<1x384xf32>
    %87 = vector.extract_strided_slice %80 {offsets = [0, 384], sizes = [1, 128], strides = [1, 1]} : vector<1x512xf32> to vector<1x128xf32>
    %88 = math.tanh %87 : vector<1x128xf32>
    %89 = vector.extract_strided_slice %86 {offsets = [0, 0], sizes = [1, 128], strides = [1, 1]} : vector<1x384xf32> to vector<1x128xf32>
    %90 = vector.extract_strided_slice %86 {offsets = [0, 128], sizes = [1, 128], strides = [1, 1]} : vector<1x384xf32> to vector<1x128xf32>
    %91 = vector.extract_strided_slice %86 {offsets = [0, 256], sizes = [1, 128], strides = [1, 1]} : vector<1x384xf32> to vector<1x128xf32>
    %92 = arith.mulf %90, %52 : vector<1x128xf32>
    %93 = arith.mulf %89, %88 : vector<1x128xf32>
    %94 = arith.addf %92, %93 : vector<1x128xf32>
    %95 = math.tanh %94 : vector<1x128xf32>
    %96 = arith.mulf %91, %95 : vector<1x128xf32>
    %97 = arith.truncf %96 : vector<1x128xf32> to vector<1x128xbf16>
    %cst_21 = arith.constant dense<0.000000e+00> : vector<1x512xf32>
    %98 = tpu.matmul %97, %9, %cst_21 {dimension_numbers = #tpu.dot_dimension_numbers<[1], [0], [0], [1], [0, 0, 1, 1], [], []>} : vector<1x128xbf16>, vector<128x512xbf16>, vector<1x512xf32> -> vector<1x512xf32>
    %99 = vector.extract_strided_slice %7 {offsets = [2, 0], sizes = [1, 512], strides = [1, 1]} : vector<8x512xf32> to vector<1x512xf32>
    %100 = vector.extract_strided_slice %77 {offsets = [0, 0], sizes = [1, 512], strides = [1, 1]} : vector<1x1024xf32> to vector<1x512xf32>
    %101 = arith.addf %99, %100 : vector<1x512xf32>
    %102 = vector.extract_strided_slice %101 {offsets = [0, 0], sizes = [1, 384], strides = [1, 1]} : vector<1x512xf32> to vector<1x384xf32>
    %103 = arith.negf %102 : vector<1x384xf32>
    %104 = math.exp %103 : vector<1x384xf32>
    %cst_22 = arith.constant 1.000000e+00 : f32
    %105 = vector.broadcast %cst_22 : f32 to vector<1x384xf32>
    %106 = arith.addf %105, %104 : vector<1x384xf32>
    %107 = arith.divf %105, %106 : vector<1x384xf32>
    %108 = vector.extract_strided_slice %101 {offsets = [0, 384], sizes = [1, 128], strides = [1, 1]} : vector<1x512xf32> to vector<1x128xf32>
    %109 = math.tanh %108 : vector<1x128xf32>
    %110 = vector.extract_strided_slice %107 {offsets = [0, 0], sizes = [1, 128], strides = [1, 1]} : vector<1x384xf32> to vector<1x128xf32>
    %111 = vector.extract_strided_slice %107 {offsets = [0, 128], sizes = [1, 128], strides = [1, 1]} : vector<1x384xf32> to vector<1x128xf32>
    %112 = vector.extract_strided_slice %107 {offsets = [0, 256], sizes = [1, 128], strides = [1, 1]} : vector<1x384xf32> to vector<1x128xf32>
    %113 = arith.mulf %111, %73 : vector<1x128xf32>
    %114 = arith.mulf %110, %109 : vector<1x128xf32>
    %115 = arith.addf %113, %114 : vector<1x128xf32>
    %116 = math.tanh %115 : vector<1x128xf32>
    %117 = arith.mulf %112, %116 : vector<1x128xf32>
    %118 = arith.truncf %117 : vector<1x128xf32> to vector<1x128xbf16>
    %cst_23 = arith.constant dense<0.000000e+00> : vector<1x1024xf32>
    %119 = tpu.matmul %118, %8, %cst_23 {dimension_numbers = #tpu.dot_dimension_numbers<[1], [0], [0], [1], [0, 0, 1, 1], [], []>} : vector<1x128xbf16>, vector<128x1024xbf16>, vector<1x1024xf32> -> vector<1x1024xf32>
    %120 = vector.extract_strided_slice %119 {offsets = [0, 512], sizes = [1, 512], strides = [1, 1]} : vector<1x1024xf32> to vector<1x512xf32>
    %121 = arith.addf %120, %98 : vector<1x512xf32>
    %122 = arith.addf %121, %10 : vector<1x512xf32>
    %123 = vector.extract_strided_slice %122 {offsets = [0, 0], sizes = [1, 384], strides = [1, 1]} : vector<1x512xf32> to vector<1x384xf32>
    %124 = arith.negf %123 : vector<1x384xf32>
    %125 = math.exp %124 : vector<1x384xf32>
    %cst_24 = arith.constant 1.000000e+00 : f32
    %126 = vector.broadcast %cst_24 : f32 to vector<1x384xf32>
    %127 = arith.addf %126, %125 : vector<1x384xf32>
    %128 = arith.divf %126, %127 : vector<1x384xf32>
    %129 = vector.extract_strided_slice %122 {offsets = [0, 384], sizes = [1, 128], strides = [1, 1]} : vector<1x512xf32> to vector<1x128xf32>
    %130 = math.tanh %129 : vector<1x128xf32>
    %131 = vector.extract_strided_slice %128 {offsets = [0, 0], sizes = [1, 128], strides = [1, 1]} : vector<1x384xf32> to vector<1x128xf32>
    %132 = vector.extract_strided_slice %128 {offsets = [0, 128], sizes = [1, 128], strides = [1, 1]} : vector<1x384xf32> to vector<1x128xf32>
    %133 = vector.extract_strided_slice %128 {offsets = [0, 256], sizes = [1, 128], strides = [1, 1]} : vector<1x384xf32> to vector<1x128xf32>
    %134 = arith.mulf %132, %94 : vector<1x128xf32>
    %135 = arith.mulf %131, %130 : vector<1x128xf32>
    %136 = arith.addf %134, %135 : vector<1x128xf32>
    %137 = math.tanh %136 : vector<1x128xf32>
    %138 = arith.mulf %133, %137 : vector<1x128xf32>
    %139 = arith.truncf %138 : vector<1x128xf32> to vector<1x128xbf16>
    %cst_25 = arith.constant dense<0.000000e+00> : vector<1x512xf32>
    %140 = tpu.matmul %139, %9, %cst_25 {dimension_numbers = #tpu.dot_dimension_numbers<[1], [0], [0], [1], [0, 0, 1, 1], [], []>} : vector<1x128xbf16>, vector<128x512xbf16>, vector<1x512xf32> -> vector<1x512xf32>
    %141 = vector.extract_strided_slice %7 {offsets = [3, 0], sizes = [1, 512], strides = [1, 1]} : vector<8x512xf32> to vector<1x512xf32>
    %142 = vector.extract_strided_slice %119 {offsets = [0, 0], sizes = [1, 512], strides = [1, 1]} : vector<1x1024xf32> to vector<1x512xf32>
    %143 = arith.addf %141, %142 : vector<1x512xf32>
    %144 = vector.extract_strided_slice %143 {offsets = [0, 0], sizes = [1, 384], strides = [1, 1]} : vector<1x512xf32> to vector<1x384xf32>
    %145 = arith.negf %144 : vector<1x384xf32>
    %146 = math.exp %145 : vector<1x384xf32>
    %cst_26 = arith.constant 1.000000e+00 : f32
    %147 = vector.broadcast %cst_26 : f32 to vector<1x384xf32>
    %148 = arith.addf %147, %146 : vector<1x384xf32>
    %149 = arith.divf %147, %148 : vector<1x384xf32>
    %150 = vector.extract_strided_slice %143 {offsets = [0, 384], sizes = [1, 128], strides = [1, 1]} : vector<1x512xf32> to vector<1x128xf32>
    %151 = math.tanh %150 : vector<1x128xf32>
    %152 = vector.extract_strided_slice %149 {offsets = [0, 0], sizes = [1, 128], strides = [1, 1]} : vector<1x384xf32> to vector<1x128xf32>
    %153 = vector.extract_strided_slice %149 {offsets = [0, 128], sizes = [1, 128], strides = [1, 1]} : vector<1x384xf32> to vector<1x128xf32>
    %154 = vector.extract_strided_slice %149 {offsets = [0, 256], sizes = [1, 128], strides = [1, 1]} : vector<1x384xf32> to vector<1x128xf32>
    %155 = arith.mulf %153, %115 : vector<1x128xf32>
    %156 = arith.mulf %152, %151 : vector<1x128xf32>
    %157 = arith.addf %155, %156 : vector<1x128xf32>
    %158 = math.tanh %157 : vector<1x128xf32>
    %159 = arith.mulf %154, %158 : vector<1x128xf32>
    %160 = arith.truncf %159 : vector<1x128xf32> to vector<1x128xbf16>
    %cst_27 = arith.constant dense<0.000000e+00> : vector<1x1024xf32>
    %161 = tpu.matmul %160, %8, %cst_27 {dimension_numbers = #tpu.dot_dimension_numbers<[1], [0], [0], [1], [0, 0, 1, 1], [], []>} : vector<1x128xbf16>, vector<128x1024xbf16>, vector<1x1024xf32> -> vector<1x1024xf32>
    %162 = vector.extract_strided_slice %161 {offsets = [0, 512], sizes = [1, 512], strides = [1, 1]} : vector<1x1024xf32> to vector<1x512xf32>
    %163 = arith.addf %162, %140 : vector<1x512xf32>
    %164 = arith.addf %163, %10 : vector<1x512xf32>
    %165 = vector.extract_strided_slice %164 {offsets = [0, 0], sizes = [1, 384], strides = [1, 1]} : vector<1x512xf32> to vector<1x384xf32>
    %166 = arith.negf %165 : vector<1x384xf32>
    %167 = math.exp %166 : vector<1x384xf32>
    %cst_28 = arith.constant 1.000000e+00 : f32
    %168 = vector.broadcast %cst_28 : f32 to vector<1x384xf32>
    %169 = arith.addf %168, %167 : vector<1x384xf32>
    %170 = arith.divf %168, %169 : vector<1x384xf32>
    %171 = vector.extract_strided_slice %164 {offsets = [0, 384], sizes = [1, 128], strides = [1, 1]} : vector<1x512xf32> to vector<1x128xf32>
    %172 = math.tanh %171 : vector<1x128xf32>
    %173 = vector.extract_strided_slice %170 {offsets = [0, 0], sizes = [1, 128], strides = [1, 1]} : vector<1x384xf32> to vector<1x128xf32>
    %174 = vector.extract_strided_slice %170 {offsets = [0, 128], sizes = [1, 128], strides = [1, 1]} : vector<1x384xf32> to vector<1x128xf32>
    %175 = vector.extract_strided_slice %170 {offsets = [0, 256], sizes = [1, 128], strides = [1, 1]} : vector<1x384xf32> to vector<1x128xf32>
    %176 = arith.mulf %174, %136 : vector<1x128xf32>
    %177 = arith.mulf %173, %172 : vector<1x128xf32>
    %178 = arith.addf %176, %177 : vector<1x128xf32>
    %179 = math.tanh %178 : vector<1x128xf32>
    %180 = arith.mulf %175, %179 : vector<1x128xf32>
    %181 = arith.truncf %180 : vector<1x128xf32> to vector<1x128xbf16>
    %cst_29 = arith.constant dense<0.000000e+00> : vector<1x512xf32>
    %182 = tpu.matmul %181, %9, %cst_29 {dimension_numbers = #tpu.dot_dimension_numbers<[1], [0], [0], [1], [0, 0, 1, 1], [], []>} : vector<1x128xbf16>, vector<128x512xbf16>, vector<1x512xf32> -> vector<1x512xf32>
    %183 = vector.extract_strided_slice %7 {offsets = [4, 0], sizes = [1, 512], strides = [1, 1]} : vector<8x512xf32> to vector<1x512xf32>
    %184 = vector.extract_strided_slice %161 {offsets = [0, 0], sizes = [1, 512], strides = [1, 1]} : vector<1x1024xf32> to vector<1x512xf32>
    %185 = arith.addf %183, %184 : vector<1x512xf32>
    %186 = vector.extract_strided_slice %185 {offsets = [0, 0], sizes = [1, 384], strides = [1, 1]} : vector<1x512xf32> to vector<1x384xf32>
    %187 = arith.negf %186 : vector<1x384xf32>
    %188 = math.exp %187 : vector<1x384xf32>
    %cst_30 = arith.constant 1.000000e+00 : f32
    %189 = vector.broadcast %cst_30 : f32 to vector<1x384xf32>
    %190 = arith.addf %189, %188 : vector<1x384xf32>
    %191 = arith.divf %189, %190 : vector<1x384xf32>
    %192 = vector.extract_strided_slice %185 {offsets = [0, 384], sizes = [1, 128], strides = [1, 1]} : vector<1x512xf32> to vector<1x128xf32>
    %193 = math.tanh %192 : vector<1x128xf32>
    %194 = vector.extract_strided_slice %191 {offsets = [0, 0], sizes = [1, 128], strides = [1, 1]} : vector<1x384xf32> to vector<1x128xf32>
    %195 = vector.extract_strided_slice %191 {offsets = [0, 128], sizes = [1, 128], strides = [1, 1]} : vector<1x384xf32> to vector<1x128xf32>
    %196 = vector.extract_strided_slice %191 {offsets = [0, 256], sizes = [1, 128], strides = [1, 1]} : vector<1x384xf32> to vector<1x128xf32>
    %197 = arith.mulf %195, %157 : vector<1x128xf32>
    %198 = arith.mulf %194, %193 : vector<1x128xf32>
    %199 = arith.addf %197, %198 : vector<1x128xf32>
    %200 = math.tanh %199 : vector<1x128xf32>
    %201 = arith.mulf %196, %200 : vector<1x128xf32>
    %202 = arith.truncf %201 : vector<1x128xf32> to vector<1x128xbf16>
    %cst_31 = arith.constant dense<0.000000e+00> : vector<1x1024xf32>
    %203 = tpu.matmul %202, %8, %cst_31 {dimension_numbers = #tpu.dot_dimension_numbers<[1], [0], [0], [1], [0, 0, 1, 1], [], []>} : vector<1x128xbf16>, vector<128x1024xbf16>, vector<1x1024xf32> -> vector<1x1024xf32>
    %204 = vector.extract_strided_slice %203 {offsets = [0, 512], sizes = [1, 512], strides = [1, 1]} : vector<1x1024xf32> to vector<1x512xf32>
    %205 = arith.addf %204, %182 : vector<1x512xf32>
    %206 = arith.addf %205, %10 : vector<1x512xf32>
    %207 = vector.extract_strided_slice %206 {offsets = [0, 0], sizes = [1, 384], strides = [1, 1]} : vector<1x512xf32> to vector<1x384xf32>
    %208 = arith.negf %207 : vector<1x384xf32>
    %209 = math.exp %208 : vector<1x384xf32>
    %cst_32 = arith.constant 1.000000e+00 : f32
    %210 = vector.broadcast %cst_32 : f32 to vector<1x384xf32>
    %211 = arith.addf %210, %209 : vector<1x384xf32>
    %212 = arith.divf %210, %211 : vector<1x384xf32>
    %213 = vector.extract_strided_slice %206 {offsets = [0, 384], sizes = [1, 128], strides = [1, 1]} : vector<1x512xf32> to vector<1x128xf32>
    %214 = math.tanh %213 : vector<1x128xf32>
    %215 = vector.extract_strided_slice %212 {offsets = [0, 0], sizes = [1, 128], strides = [1, 1]} : vector<1x384xf32> to vector<1x128xf32>
    %216 = vector.extract_strided_slice %212 {offsets = [0, 128], sizes = [1, 128], strides = [1, 1]} : vector<1x384xf32> to vector<1x128xf32>
    %217 = vector.extract_strided_slice %212 {offsets = [0, 256], sizes = [1, 128], strides = [1, 1]} : vector<1x384xf32> to vector<1x128xf32>
    %218 = arith.mulf %216, %178 : vector<1x128xf32>
    %219 = arith.mulf %215, %214 : vector<1x128xf32>
    %220 = arith.addf %218, %219 : vector<1x128xf32>
    %221 = math.tanh %220 : vector<1x128xf32>
    %222 = arith.mulf %217, %221 : vector<1x128xf32>
    %223 = arith.truncf %222 : vector<1x128xf32> to vector<1x128xbf16>
    %cst_33 = arith.constant dense<0.000000e+00> : vector<1x512xf32>
    %224 = tpu.matmul %223, %9, %cst_33 {dimension_numbers = #tpu.dot_dimension_numbers<[1], [0], [0], [1], [0, 0, 1, 1], [], []>} : vector<1x128xbf16>, vector<128x512xbf16>, vector<1x512xf32> -> vector<1x512xf32>
    %225 = vector.extract_strided_slice %7 {offsets = [5, 0], sizes = [1, 512], strides = [1, 1]} : vector<8x512xf32> to vector<1x512xf32>
    %226 = vector.extract_strided_slice %203 {offsets = [0, 0], sizes = [1, 512], strides = [1, 1]} : vector<1x1024xf32> to vector<1x512xf32>
    %227 = arith.addf %225, %226 : vector<1x512xf32>
    %228 = vector.extract_strided_slice %227 {offsets = [0, 0], sizes = [1, 384], strides = [1, 1]} : vector<1x512xf32> to vector<1x384xf32>
    %229 = arith.negf %228 : vector<1x384xf32>
    %230 = math.exp %229 : vector<1x384xf32>
    %cst_34 = arith.constant 1.000000e+00 : f32
    %231 = vector.broadcast %cst_34 : f32 to vector<1x384xf32>
    %232 = arith.addf %231, %230 : vector<1x384xf32>
    %233 = arith.divf %231, %232 : vector<1x384xf32>
    %234 = vector.extract_strided_slice %227 {offsets = [0, 384], sizes = [1, 128], strides = [1, 1]} : vector<1x512xf32> to vector<1x128xf32>
    %235 = math.tanh %234 : vector<1x128xf32>
    %236 = vector.extract_strided_slice %233 {offsets = [0, 0], sizes = [1, 128], strides = [1, 1]} : vector<1x384xf32> to vector<1x128xf32>
    %237 = vector.extract_strided_slice %233 {offsets = [0, 128], sizes = [1, 128], strides = [1, 1]} : vector<1x384xf32> to vector<1x128xf32>
    %238 = vector.extract_strided_slice %233 {offsets = [0, 256], sizes = [1, 128], strides = [1, 1]} : vector<1x384xf32> to vector<1x128xf32>
    %239 = arith.mulf %237, %199 : vector<1x128xf32>
    %240 = arith.mulf %236, %235 : vector<1x128xf32>
    %241 = arith.addf %239, %240 : vector<1x128xf32>
    %242 = math.tanh %241 : vector<1x128xf32>
    %243 = arith.mulf %238, %242 : vector<1x128xf32>
    %244 = arith.truncf %243 : vector<1x128xf32> to vector<1x128xbf16>
    %cst_35 = arith.constant dense<0.000000e+00> : vector<1x1024xf32>
    %245 = tpu.matmul %244, %8, %cst_35 {dimension_numbers = #tpu.dot_dimension_numbers<[1], [0], [0], [1], [0, 0, 1, 1], [], []>} : vector<1x128xbf16>, vector<128x1024xbf16>, vector<1x1024xf32> -> vector<1x1024xf32>
    %246 = vector.extract_strided_slice %245 {offsets = [0, 512], sizes = [1, 512], strides = [1, 1]} : vector<1x1024xf32> to vector<1x512xf32>
    %247 = arith.addf %246, %224 : vector<1x512xf32>
    %248 = arith.addf %247, %10 : vector<1x512xf32>
    %249 = vector.extract_strided_slice %248 {offsets = [0, 0], sizes = [1, 384], strides = [1, 1]} : vector<1x512xf32> to vector<1x384xf32>
    %250 = arith.negf %249 : vector<1x384xf32>
    %251 = math.exp %250 : vector<1x384xf32>
    %cst_36 = arith.constant 1.000000e+00 : f32
    %252 = vector.broadcast %cst_36 : f32 to vector<1x384xf32>
    %253 = arith.addf %252, %251 : vector<1x384xf32>
    %254 = arith.divf %252, %253 : vector<1x384xf32>
    %255 = vector.extract_strided_slice %248 {offsets = [0, 384], sizes = [1, 128], strides = [1, 1]} : vector<1x512xf32> to vector<1x128xf32>
    %256 = math.tanh %255 : vector<1x128xf32>
    %257 = vector.extract_strided_slice %254 {offsets = [0, 0], sizes = [1, 128], strides = [1, 1]} : vector<1x384xf32> to vector<1x128xf32>
    %258 = vector.extract_strided_slice %254 {offsets = [0, 128], sizes = [1, 128], strides = [1, 1]} : vector<1x384xf32> to vector<1x128xf32>
    %259 = vector.extract_strided_slice %254 {offsets = [0, 256], sizes = [1, 128], strides = [1, 1]} : vector<1x384xf32> to vector<1x128xf32>
    %260 = arith.mulf %258, %220 : vector<1x128xf32>
    %261 = arith.mulf %257, %256 : vector<1x128xf32>
    %262 = arith.addf %260, %261 : vector<1x128xf32>
    %263 = math.tanh %262 : vector<1x128xf32>
    %264 = arith.mulf %259, %263 : vector<1x128xf32>
    %265 = arith.truncf %264 : vector<1x128xf32> to vector<1x128xbf16>
    %cst_37 = arith.constant dense<0.000000e+00> : vector<1x512xf32>
    %266 = tpu.matmul %265, %9, %cst_37 {dimension_numbers = #tpu.dot_dimension_numbers<[1], [0], [0], [1], [0, 0, 1, 1], [], []>} : vector<1x128xbf16>, vector<128x512xbf16>, vector<1x512xf32> -> vector<1x512xf32>
    %267 = vector.extract_strided_slice %7 {offsets = [6, 0], sizes = [1, 512], strides = [1, 1]} : vector<8x512xf32> to vector<1x512xf32>
    %268 = vector.extract_strided_slice %245 {offsets = [0, 0], sizes = [1, 512], strides = [1, 1]} : vector<1x1024xf32> to vector<1x512xf32>
    %269 = arith.addf %267, %268 : vector<1x512xf32>
    %270 = vector.extract_strided_slice %269 {offsets = [0, 0], sizes = [1, 384], strides = [1, 1]} : vector<1x512xf32> to vector<1x384xf32>
    %271 = arith.negf %270 : vector<1x384xf32>
    %272 = math.exp %271 : vector<1x384xf32>
    %cst_38 = arith.constant 1.000000e+00 : f32
    %273 = vector.broadcast %cst_38 : f32 to vector<1x384xf32>
    %274 = arith.addf %273, %272 : vector<1x384xf32>
    %275 = arith.divf %273, %274 : vector<1x384xf32>
    %276 = vector.extract_strided_slice %269 {offsets = [0, 384], sizes = [1, 128], strides = [1, 1]} : vector<1x512xf32> to vector<1x128xf32>
    %277 = math.tanh %276 : vector<1x128xf32>
    %278 = vector.extract_strided_slice %275 {offsets = [0, 0], sizes = [1, 128], strides = [1, 1]} : vector<1x384xf32> to vector<1x128xf32>
    %279 = vector.extract_strided_slice %275 {offsets = [0, 128], sizes = [1, 128], strides = [1, 1]} : vector<1x384xf32> to vector<1x128xf32>
    %280 = vector.extract_strided_slice %275 {offsets = [0, 256], sizes = [1, 128], strides = [1, 1]} : vector<1x384xf32> to vector<1x128xf32>
    %281 = arith.mulf %279, %241 : vector<1x128xf32>
    %282 = arith.mulf %278, %277 : vector<1x128xf32>
    %283 = arith.addf %281, %282 : vector<1x128xf32>
    %284 = math.tanh %283 : vector<1x128xf32>
    %285 = arith.mulf %280, %284 : vector<1x128xf32>
    %286 = arith.truncf %285 : vector<1x128xf32> to vector<1x128xbf16>
    %cst_39 = arith.constant dense<0.000000e+00> : vector<1x1024xf32>
    %287 = tpu.matmul %286, %8, %cst_39 {dimension_numbers = #tpu.dot_dimension_numbers<[1], [0], [0], [1], [0, 0, 1, 1], [], []>} : vector<1x128xbf16>, vector<128x1024xbf16>, vector<1x1024xf32> -> vector<1x1024xf32>
    %288 = vector.extract_strided_slice %287 {offsets = [0, 512], sizes = [1, 512], strides = [1, 1]} : vector<1x1024xf32> to vector<1x512xf32>
    %289 = arith.addf %288, %266 : vector<1x512xf32>
    %290 = arith.addf %289, %10 : vector<1x512xf32>
    %291 = vector.extract_strided_slice %290 {offsets = [0, 0], sizes = [1, 384], strides = [1, 1]} : vector<1x512xf32> to vector<1x384xf32>
    %292 = arith.negf %291 : vector<1x384xf32>
    %293 = math.exp %292 : vector<1x384xf32>
    %cst_40 = arith.constant 1.000000e+00 : f32
    %294 = vector.broadcast %cst_40 : f32 to vector<1x384xf32>
    %295 = arith.addf %294, %293 : vector<1x384xf32>
    %296 = arith.divf %294, %295 : vector<1x384xf32>
    %297 = vector.extract_strided_slice %290 {offsets = [0, 384], sizes = [1, 128], strides = [1, 1]} : vector<1x512xf32> to vector<1x128xf32>
    %298 = math.tanh %297 : vector<1x128xf32>
    %299 = vector.extract_strided_slice %296 {offsets = [0, 0], sizes = [1, 128], strides = [1, 1]} : vector<1x384xf32> to vector<1x128xf32>
    %300 = vector.extract_strided_slice %296 {offsets = [0, 128], sizes = [1, 128], strides = [1, 1]} : vector<1x384xf32> to vector<1x128xf32>
    %301 = vector.extract_strided_slice %296 {offsets = [0, 256], sizes = [1, 128], strides = [1, 1]} : vector<1x384xf32> to vector<1x128xf32>
    %302 = arith.mulf %300, %262 : vector<1x128xf32>
    %303 = arith.mulf %299, %298 : vector<1x128xf32>
    %304 = arith.addf %302, %303 : vector<1x128xf32>
    %305 = math.tanh %304 : vector<1x128xf32>
    %306 = arith.mulf %301, %305 : vector<1x128xf32>
    %307 = arith.truncf %306 : vector<1x128xf32> to vector<1x128xbf16>
    %cst_41 = arith.constant dense<0.000000e+00> : vector<1x512xf32>
    %308 = tpu.matmul %307, %9, %cst_41 {dimension_numbers = #tpu.dot_dimension_numbers<[1], [0], [0], [1], [0, 0, 1, 1], [], []>} : vector<1x128xbf16>, vector<128x512xbf16>, vector<1x512xf32> -> vector<1x512xf32>
    %309 = vector.extract_strided_slice %7 {offsets = [7, 0], sizes = [1, 512], strides = [1, 1]} : vector<8x512xf32> to vector<1x512xf32>
    %310 = vector.extract_strided_slice %287 {offsets = [0, 0], sizes = [1, 512], strides = [1, 1]} : vector<1x1024xf32> to vector<1x512xf32>
    %311 = arith.addf %309, %310 : vector<1x512xf32>
    %312 = vector.extract_strided_slice %311 {offsets = [0, 0], sizes = [1, 384], strides = [1, 1]} : vector<1x512xf32> to vector<1x384xf32>
    %313 = arith.negf %312 : vector<1x384xf32>
    %314 = math.exp %313 : vector<1x384xf32>
    %cst_42 = arith.constant 1.000000e+00 : f32
    %315 = vector.broadcast %cst_42 : f32 to vector<1x384xf32>
    %316 = arith.addf %315, %314 : vector<1x384xf32>
    %317 = arith.divf %315, %316 : vector<1x384xf32>
    %318 = vector.extract_strided_slice %311 {offsets = [0, 384], sizes = [1, 128], strides = [1, 1]} : vector<1x512xf32> to vector<1x128xf32>
    %319 = math.tanh %318 : vector<1x128xf32>
    %320 = vector.extract_strided_slice %317 {offsets = [0, 0], sizes = [1, 128], strides = [1, 1]} : vector<1x384xf32> to vector<1x128xf32>
    %321 = vector.extract_strided_slice %317 {offsets = [0, 128], sizes = [1, 128], strides = [1, 1]} : vector<1x384xf32> to vector<1x128xf32>
    %322 = vector.extract_strided_slice %317 {offsets = [0, 256], sizes = [1, 128], strides = [1, 1]} : vector<1x384xf32> to vector<1x128xf32>
    %323 = arith.mulf %321, %283 : vector<1x128xf32>
    %324 = arith.mulf %320, %319 : vector<1x128xf32>
    %325 = arith.addf %323, %324 : vector<1x128xf32>
    %326 = math.tanh %325 : vector<1x128xf32>
    %327 = arith.mulf %322, %326 : vector<1x128xf32>
    %328 = arith.truncf %327 : vector<1x128xf32> to vector<1x128xbf16>
    %cst_43 = arith.constant dense<0.000000e+00> : vector<1x1024xf32>
    %329 = tpu.matmul %328, %8, %cst_43 {dimension_numbers = #tpu.dot_dimension_numbers<[1], [0], [0], [1], [0, 0, 1, 1], [], []>} : vector<1x128xbf16>, vector<128x1024xbf16>, vector<1x1024xf32> -> vector<1x1024xf32>
    %330 = vector.extract_strided_slice %329 {offsets = [0, 512], sizes = [1, 512], strides = [1, 1]} : vector<1x1024xf32> to vector<1x512xf32>
    %331 = arith.addf %330, %308 : vector<1x512xf32>
    %332 = arith.addf %331, %10 : vector<1x512xf32>
    %333 = vector.extract_strided_slice %332 {offsets = [0, 0], sizes = [1, 384], strides = [1, 1]} : vector<1x512xf32> to vector<1x384xf32>
    %334 = arith.negf %333 : vector<1x384xf32>
    %335 = math.exp %334 : vector<1x384xf32>
    %cst_44 = arith.constant 1.000000e+00 : f32
    %336 = vector.broadcast %cst_44 : f32 to vector<1x384xf32>
    %337 = arith.addf %336, %335 : vector<1x384xf32>
    %338 = arith.divf %336, %337 : vector<1x384xf32>
    %339 = vector.extract_strided_slice %332 {offsets = [0, 384], sizes = [1, 128], strides = [1, 1]} : vector<1x512xf32> to vector<1x128xf32>
    %340 = math.tanh %339 : vector<1x128xf32>
    %341 = vector.extract_strided_slice %338 {offsets = [0, 0], sizes = [1, 128], strides = [1, 1]} : vector<1x384xf32> to vector<1x128xf32>
    %342 = vector.extract_strided_slice %338 {offsets = [0, 128], sizes = [1, 128], strides = [1, 1]} : vector<1x384xf32> to vector<1x128xf32>
    %343 = vector.extract_strided_slice %338 {offsets = [0, 256], sizes = [1, 128], strides = [1, 1]} : vector<1x384xf32> to vector<1x128xf32>
    %344 = arith.mulf %342, %304 : vector<1x128xf32>
    %345 = arith.mulf %341, %340 : vector<1x128xf32>
    %346 = arith.addf %344, %345 : vector<1x128xf32>
    %347 = math.tanh %346 : vector<1x128xf32>
    %348 = arith.mulf %343, %347 : vector<1x128xf32>
    %c0_45 = arith.constant 0 : index
    %c0_46 = arith.constant 0 : index
    %349 = vector.load %arg6[%c0_45, %c0_46] : memref<1x128xf32, #tpu.memory_space<vmem>>, vector<1x128xf32>
    tpu.vector_store %arg6[%c0_45, %c0_46], %348 {strides = array<i32>} : memref<1x128xf32, #tpu.memory_space<vmem>>, vector<1x128xf32>,
    return
  }
}

</mosaic_0001>

<bundles_post_ra>
// kernel: encoder_forward.1
= control target key start
LH: loop header
LB: loop body
LE: loop exit
PB: predicated region body
PF: predicated region fallthrough
CT: control target
= control target key end

     0   :  { %11 = vsyncpa [#allocation3], 0  ;;  %s4977_s0 = inlined_call_operand.vmem [shape: f32[8,1], index: 0, kind: input, shape index: {}]   ;;  %s4978_s1 = inlined_call_operand.vmem [shape: f32[1,512], index: 1, kind: input, shape index: {}]   ;;  %s4979_s2 = inlined_call_operand.vmem [shape: f32[1,512], index: 2, kind: input, shape index: {}]   ;;  %s4980_s3 = inlined_call_operand.hbm [shape: bf16[128,1024], index: 3, kind: input, shape index: {}]   ;;  %s4981_s4 = inlined_call_operand.hbm [shape: bf16[128,512], index: 4, kind: input, shape index: {}]   ;;  %s4982_s5 = inlined_call_operand.vmem [shape: f32[1,512], index: 5, kind: input, shape index: {}]   ;;  %s4983_s6 = inlined_call_operand.hbm [shape: f32[1,128], index: 6, kind: output, shape index: {}]  }
   0x1   :  { %12 = vsyncpa [#allocation6], 0 }
   0x2   :  { %13 = vsyncpa [#allocation4], 0  ;;  %s3751_s21 = smov [#allocation2]   ;;  %s3679_s25 = scalar_lea.hbm %s4980_s3, 8192 }
   0x3   :  { %s25_s22 = sshll.u32 %s3751_s21, 4  ;;  %p3680_p0 = scmp.ne.s32.totalorder %s4980_s3, %s3679_s25  ;;  %s26_s22 = int_to_ptr.vmem [resolvable:$true] %s25_s22 }
   0x4   :  { %p3683_p1 = scmp.lt.u32.totalorder %s3679_s25, %s4980_s3 }
   0x6   :  { %p3685_p2 = pnand %p3683_p1, %p3680_p0 }
   0x8   :  { %3688 = shalt.err (!%p3685_p2)
}
   0x9   :  { %s3689_s30 = scalar_lea.vmem %s26_s22, 8192  ;;  %p3694_p4 = scmp.lt.s32.totalorder %s26_s22, %s26_s22 }
   0xa   :  { %p3690_p3 = scmp.ne.s32.totalorder %s26_s22, %s3689_s30  ;;  %p3695_p5 = scmp.lt.s32.totalorder %s3689_s30, %s3689_s30 }
   0xc   :  { %p3696_p6 = por %p3695_p5, %p3694_p4 }
   0xe   :  { %p3697_p7 = pnand %p3696_p6, %p3690_p3 }
  0x10   :  { %3700 = shalt.err (!%p3697_p7)
}
  0x11   :  { %s3752_s7 = smov 512   ;;  %s3753_s8 = smov 32  }
  0x12   :  { %31 = dma.hbm_to_vmem [thread:$0]  %s4980_s3, 8192, %s26_s22, [#allocation3], %s3752_s7, %s3752_s7, %s3753_s8  }
  0x13   :  { %s3754_s11 = smov [#allocation5]   ;;  %s3701_s15 = scalar_lea.hbm %s4981_s4, 4096 }
  0x14   :  { %s37_s12 = sshll.u32 %s3754_s11, 4  ;;  %p3702_p8 = scmp.ne.s32.totalorder %s4981_s4, %s3701_s15  ;;  %s38_s12 = int_to_ptr.vmem [resolvable:$true] %s37_s12 }
  0x15   :  { %p3705_p9 = scmp.lt.u32.totalorder %s3701_s15, %s4981_s4 }
  0x17   :  { %p3707_p10 = pnand %p3705_p9, %p3702_p8 }
  0x19   :  { %3710 = shalt.err (!%p3707_p10)
}
  0x1a   :  { %s3711_s20 = scalar_lea.vmem %s38_s12, 4096  ;;  %p3716_p12 = scmp.lt.s32.totalorder %s38_s12, %s38_s12 }
  0x1b   :  { %p3712_p11 = scmp.ne.s32.totalorder %s38_s12, %s3711_s20  ;;  %p3717_p13 = scmp.lt.s32.totalorder %s3711_s20, %s3711_s20 }
  0x1d   :  { %p3718_p0 = por %p3717_p13, %p3716_p12 }
  0x1f   :  { %p3719_p1 = pnand %p3718_p0, %p3712_p11 }
  0x21   :  { %3722 = shalt.err (!%p3719_p1)
}
  0x22   :  { %s3755_s3 = smov 256   ;;  %s3756_s21 = smov 16  }
  0x23   :  { %43 = dma.hbm_to_vmem [thread:$0]  %s4981_s4, 4096, %s38_s12, [#allocation6], %s3755_s3, %s3755_s3, %s3756_s21  }
  0x24   :  { %3745 = dma.done.wait [#allocation3], 8192  }
  0x25   :  { %3746 = vsyncadd [#allocation3], 4294959104 }
  0x26   :  { %3747 = dma.done.wait [#allocation6], 4096  }
  0x27   :  { %3748 = vsyncadd [#allocation6], 4294963200  ;;  %v4984_v0 = vmov 0   ;;  %v53_v1 = vld [vmem:[%s4977_s0] sm:$0xff]  ;;  %v112_v4 = vld [vmem:[#allocation2 + $0x8] sm:$0xff] }
  0x28   :  { %3310 = vset.pattern.permute.xlu0 %v4984_v0  ;;  %589 = vmatprep.mubr.bf16.mxu0 %v4984_v0  ;;  %v111_v2 = vld [vmem:[#allocation2] sm:$0xff]  ;;  %v116_v6 = vld [vmem:[#allocation2 + $0x28] sm:$0xff] }
  0x29   :  { %630 = vmatprep.mubr.bf16.mxu1 %v4984_v0  ;;  %57 = vperm.xlu0 %3310, %v53_v1   ;;  %v115_v3 = vld [vmem:[#allocation2 + $0x20] sm:$0xff]  ;;  %v3828_v10 = vcombine.high %v112_v4, %v116_v6  ;;  %v3830_v11 = vcombine.low %v112_v4, %v116_v6  ;;  %v120_v13 = vld [vmem:[#allocation2 + $0x48] sm:$0xff]  ;;  %v113_v1 = vld [vmem:[#allocation2 + $0x10] sm:$0xff] }
  0x2a   :  { %v3824_v5 = vcombine.high %v111_v2, %v115_v3  ;;  %v3826_v7 = vcombine.low %v111_v2, %v115_v3  ;;  %v119_v8 = vld [vmem:[#allocation2 + $0x40] sm:$0xff]  ;;  %v124_v14 = vld [vmem:[#allocation2 + $0x68] sm:$0xff]  ;;  %v117_v2 = vld [vmem:[#allocation2 + $0x30] sm:$0xff] }
  0x2b   :  { %v123_v9 = vld [vmem:[#allocation2 + $0x60] sm:$0xff]  ;;  %5187 = vst [vmem:[#allocation12_spill] sm:$0xff] %v3828_v10  ;;  %v3835_v16 = vcombine.high %v120_v13, %v124_v14  ;;  %v128_v18 = vld [vmem:[#allocation2 + $0x88] sm:$0xff]  ;;  %598 = vmatprep.subr.bf16.mxu1 %v3828_v10  ;;  %v3843_v21 = vcombine.low %v120_v13, %v124_v14  ;;  %v114_v3 = vld [vmem:[#allocation2 + $0x18] sm:$0xff]  ;;  %v3926_v14 = vcombine.low %v113_v1, %v117_v2 }
  0x2c   :  { %5186 = vst [vmem:[#allocation11_spill] sm:$0xff] %v3824_v5  ;;  %v3832_v12 = vcombine.high %v119_v8, %v123_v9  ;;  %v127_v15 = vld [vmem:[#allocation2 + $0x80] sm:$0xff]  ;;  %557 = vmatprep.subr.bf16.mxu0 %v3824_v5  ;;  %v132_v19 = vld [vmem:[#allocation2 + $0xa8] sm:$0xff]  ;;  %v3839_v20 = vcombine.low %v119_v8, %v123_v9  ;;  %599 = vmatpush1.bf16.msra.mxu1 %v3830_v11  ;;  %v118_v4 = vld [vmem:[#allocation2 + $0x38] sm:$0xff] }
  0x2d   :  { %v131_v17 = vld [vmem:[#allocation2 + $0xa0] sm:$0xff]  ;;  %558 = vmatpush1.bf16.msra.mxu0 %v3826_v7  ;;  %600 = vmatprep.subr.bf16.mxu1 %v3835_v16  ;;  %v3848_v23 = vcombine.high %v128_v18, %v132_v19  ;;  %v136_v26 = vld [vmem:[#allocation2 + $0xc8] sm:$0xff]  ;;  %v3855_v29 = vcombine.low %v128_v18, %v132_v19  ;;  %v3917_v9 = vcombine.high %v113_v1, %v117_v2  ;;  %v142_v0 = vld [vmem:[#allocation2 + $0xf8] sm:$0xff] }
  0x2e   :  { %559 = vmatprep.subr.bf16.mxu0 %v3832_v12  ;;  %v3845_v22 = vcombine.high %v127_v15, %v131_v17  ;;  %v135_v24 = vld [vmem:[#allocation2 + $0xc0] sm:$0xff]  ;;  %v140_v27 = vld [vmem:[#allocation2 + $0xe8] sm:$0xff]  ;;  %v3851_v28 = vcombine.low %v127_v15, %v131_v17  ;;  %v3920_v13 = vcombine.high %v114_v3, %v118_v4  ;;  %5189 = vst [vmem:[#allocation14_spill] sm:$0xff] %v3926_v14  ;;  %v61_v17 = vlaneseq }
  0x2f   :  { %v139_v25 = vld [vmem:[#allocation2 + $0xe0] sm:$0xff]  ;;  %v3860_v31 = vcombine.high %v136_v26, %v140_v27  ;;  %v144_v34 = vld [vmem:[#allocation2 + $0x108] sm:$0xff]  ;;  %v3867_v39 = vcombine.low %v136_v26, %v140_v27  ;;  %v3928_v15 = vcombine.low %v114_v3, %v118_v4 }
  0x30   :  { %601 = vmatpush1.bf16.msra.mxu1 %v3843_v21  ;;  %v3857_v30 = vcombine.high %v135_v24, %v139_v25  ;;  %v143_v32 = vld [vmem:[#allocation2 + $0x100] sm:$0xff]  ;;  %v148_v35 = vld [vmem:[#allocation2 + $0x128] sm:$0xff]  ;;  %v3863_v36 = vcombine.low %v135_v24, %v139_v25  ;;  %5188 = vst [vmem:[#allocation13_spill] sm:$0xff] %v3920_v13  ;;  %v62_v18 = vshrl.u32 %v61_v17, 7 }
  0x31   :  { %560 = vmatpush1.bf16.msra.mxu0 %v3839_v20  ;;  %602 = vmatprep.subr.bf16.mxu1 %v3848_v23  ;;  %v147_v33 = vld [vmem:[#allocation2 + $0x120] sm:$0xff]  ;;  %v152_v41 = vld [vmem:[#allocation2 + $0x148] sm:$0xff]  ;;  %v3872_v43 = vcombine.high %v144_v34, %v148_v35  ;;  %v3879_v47 = vcombine.low %v144_v34, %v148_v35  ;;  %5190 = vst [vmem:[#allocation15_spill] sm:$0xff] %v3928_v15 }
  0x32   :  { %561 = vmatprep.subr.bf16.mxu0 %v3845_v22  ;;  %v151_v37 = vld [vmem:[#allocation2 + $0x140] sm:$0xff]  ;;  %v3869_v40 = vcombine.high %v143_v32, %v147_v33  ;;  %v156_v42 = vld [vmem:[#allocation2 + $0x168] sm:$0xff]  ;;  %v3875_v44 = vcombine.low %v143_v32, %v147_v33  ;;  %v3930_v19 = vsub.s32 0, %v62_v18  ;;  %v3932_v24 = vsub.s32 1, %v62_v18 }
  0x33   :  { %v155_v38 = vld [vmem:[#allocation2 + $0x160] sm:$0xff]  ;;  %v3884_v49 = vcombine.high %v152_v41, %v156_v42  ;;  %v160_v50 = vld [vmem:[#allocation2 + $0x188] sm:$0xff]  ;;  %v3891_v53 = vcombine.low %v152_v41, %v156_v42  ;;  %v3942_v33 = vsub.s32 2, %v62_v18 }
  0x34   :  { %603 = vmatpush1.bf16.msra.mxu1 %v3855_v29  ;;  %v159_v45 = vld [vmem:[#allocation2 + $0x180] sm:$0xff]  ;;  %v3881_v48 = vcombine.high %v151_v37, %v155_v38  ;;  %v164_v51 = vld [vmem:[#allocation2 + $0x1a8] sm:$0xff]  ;;  %v3887_v52 = vcombine.low %v151_v37, %v155_v38 }
  0x35   :  { %562 = vmatpush1.bf16.msra.mxu0 %v3851_v28  ;;  %604 = vmatprep.subr.bf16.mxu1 %v3860_v31  ;;  %v163_v46 = vld [vmem:[#allocation2 + $0x1a0] sm:$0xff]  ;;  %v3896_v55 = vcombine.high %v160_v50, %v164_v51  ;;  %v168_v58 = vld [vmem:[#allocation2 + $0x1c8] sm:$0xff]  ;;  %v3903_v61 = vcombine.low %v160_v50, %v164_v51 }
  0x36   :  { %563 = vmatprep.subr.bf16.mxu0 %v3857_v30  ;;  %v3893_v54 = vcombine.high %v159_v45, %v163_v46  ;;  %v167_v56 = vld [vmem:[#allocation2 + $0x1c0] sm:$0xff]  ;;  %v172_v59 = vld [vmem:[#allocation2 + $0x1e8] sm:$0xff]  ;;  %v3899_v60 = vcombine.low %v159_v45, %v163_v46  ;;  %v3947_v45 = vsub.s32 3, %v62_v18 }
  0x37   :  { %v171_v57 = vld [vmem:[#allocation2 + $0x1e0] sm:$0xff]  ;;  %v3908_v63 = vcombine.high %v168_v58, %v172_v59  ;;  %v3915_v8 = vcombine.low %v168_v58, %v172_v59 }
  0x38   :  { %605 = vmatpush1.bf16.msra.mxu1 %v3867_v39  ;;  %v3905_v62 = vcombine.high %v167_v56, %v171_v57  ;;  %v3911_v6 = vcombine.low %v167_v56, %v171_v57  ;;  %v54_v25 = vld [vmem:[%s4978_s1] sm:$0xf] }
  0x39   :  { %564 = vmatpush1.bf16.msra.mxu0 %v3863_v36  ;;  %606 = vmatprep.subr.bf16.mxu1 %v3872_v43  ;;  %v85_v26 = vld [vmem:[%s4979_s2] sm:$0xf]  ;;  %v64_v27 = vrot.slane %v54_v25, %v3930_v19  ;;  %v68_v32 = vrot.slane %v54_v25, %v3932_v24  ;;  %v72_v42 = vrot.slane %v54_v25, %v3942_v33 }
  0x3a   :  { %565 = vmatprep.subr.bf16.mxu0 %v3869_v40  ;;  %v90_v34 = vrot.slane %v85_v26, %v3930_v19  ;;  %v94_v35 = vrot.slane %v85_v26, %v3932_v24  ;;  %v98_v57 = vrot.slane %v85_v26, %v3942_v33  ;;  %v76_v59 = vrot.slane %v54_v25, %v3947_v45 }
  0x3b   :  { %v102_v2 = vrot.slane %v85_v26, %v3947_v45 }
  0x3c   :  { %607 = vmatpush1.bf16.msra.mxu1 %v3879_v47 }
  0x3d   :  { %566 = vmatpush1.bf16.msra.mxu0 %v3875_v44  ;;  %608 = vmatprep.subr.bf16.mxu1 %v3884_v49 }
  0x3e   :  { %567 = vmatprep.subr.bf16.mxu0 %v3881_v48 }
  0x40   :  { %609 = vmatpush1.bf16.msra.mxu1 %v3891_v53 }
  0x41   :  { %568 = vmatpush1.bf16.msra.mxu0 %v3887_v52  ;;  %610 = vmatprep.subr.bf16.mxu1 %v3896_v55 }
  0x42   :  { %569 = vmatprep.subr.bf16.mxu0 %v3893_v54 }
  0x44   :  { %611 = vmatpush1.bf16.msra.mxu1 %v3903_v61 }
  0x45   :  { %570 = vmatpush1.bf16.msra.mxu0 %v3899_v60  ;;  %612 = vmatprep.subr.bf16.mxu1 %v3908_v63 }
  0x46   :  { %571 = vmatprep.subr.bf16.mxu0 %v3905_v62 }
  0x48   :  { %613 = vmatpush1.bf16.msra.mxu1 %v3915_v8 }
  0x49   :  { %572 = vmatpush1.bf16.msra.mxu0 %v3911_v6  ;;  %680 = vmatprep.subr.bf16.mxu1 %v3920_v13  ;;  %v5200_v13 = vmov 0  }
  0x4a   :  { %639 = vmatprep.subr.bf16.mxu0 %v3917_v9 }
  0xa8   :  { %v58_v37 = vpop.permute.xlu0 %57 }
  0xa9   :  { %v81_v38 = vmul.f32 %v64_v27, %v58_v37  ;;  %v82_v41 = vmul.f32 %v68_v32, %v58_v37  ;;  %v83_v58 = vmul.f32 %v72_v42, %v58_v37  ;;  %v84_v3 = vmul.f32 %v76_v59, %v58_v37  ;;  %v125_v59 = vld [vmem:[#allocation2 + $0x70] sm:$0xff] }
  0xab   :  { %v3949_v46 = vadd.f32 %v90_v34, %v81_v38  ;;  %v3951_v50 = vadd.f32 %v94_v35, %v82_v41  ;;  %v3957_v1 = vadd.f32 %v98_v57, %v83_v58  ;;  %v3961_v17 = vadd.f32 %v102_v2, %v84_v3  ;;  %v121_v57 = vld [vmem:[#allocation2 + $0x50] sm:$0xff]  ;;  %v122_v2 = vld [vmem:[#allocation2 + $0x58] sm:$0xff] }
  0xac   :  { %v126_v3 = vld [vmem:[#allocation2 + $0x78] sm:$0xff] }
  0xad   :  { %5191 = vst [vmem:[#allocation16_spill] sm:$0xff] %v3951_v50  ;;  %v3158_v51 = vmul.f32 -1.442695, %v3949_v46  ;;  %v3159_v56 = vmul.f32 -1.442695, %v3951_v50  ;;  %5192 = vst [vmem:[#allocation17_spill] sm:$0xff] %v3957_v1 }
  0xae   :  { %v3160_v4 = vmul.f32 -1.442695, %v3957_v1  ;;  %5193 = vst [vmem:[#allocation18_spill] sm:$0xff] %v3961_v17 }
  0xaf   :  { %3359 = vpow2.f32 %v3158_v51 }
  0xb0   :  { %3361 = vpow2.f32 %v3159_v56 }
  0xb1   :  { %3363 = vpow2.f32 %v3160_v4 }
  0xb2   :  { %3365 = vtanh.f32 %v3961_v17 }
  0xb9   :  { %v3360_v18 = vpop.eup %3359 }
  0xba   :  { %v3362_v27 = vpop.eup %3361  ;;  %v221_v32 = vadd.f32 1.0, %v3360_v18 }
  0xbb   :  { %v222_v34 = vadd.f32 1.0, %v3362_v27  ;;  %v3364_v25 = vpop.eup %3363  ;;  %v3969_v27 = vcombine.high %v121_v57, %v125_v59 }
  0xbc   :  { %3367 = vrcp.f32 %v221_v32  ;;  %v3366_v35 = vpop.eup %3365  ;;  %v223_v42 = vadd.f32 1.0, %v3364_v25  ;;  %v3971_v32 = vcombine.high %v122_v2, %v126_v3  ;;  %v133_v25 = vld [vmem:[#allocation2 + $0xb0] sm:$0xff] }
  0xbd   :  { %3369 = vrcp.f32 %v222_v34  ;;  %5194 = vst [vmem:[#allocation19_spill] sm:$0xff] %v3969_v27  ;;  %v129_v34 = vld [vmem:[#allocation2 + $0x90] sm:$0xff] }
  0xbe   :  { %3371 = vrcp.f32 %v223_v42  ;;  %5195 = vst [vmem:[#allocation20_spill] sm:$0xff] %v3971_v32  ;;  %v3979_v42 = vcombine.low %v122_v2, %v126_v3 }
  0xc0   :  { %5197 = vst [vmem:[#allocation22_spill] sm:$0xff] %v3979_v42 }
  0xc6   :  { %v3368_v38 = vpop.eup %3367 }
  0xc7   :  { %v3370_v41 = vpop.eup %3369  ;;  %v232_v26 = vmul.f32 %v3368_v38, %v3366_v35  ;;  %v130_v35 = vld [vmem:[#allocation2 + $0x98] sm:$0xff] }
  0xc8   :  { %v231_v37 = vmul.f32 0.0, %v3370_v41  ;;  %v3372_v56 = vpop.eup %3371  ;;  %v134_v38 = vld [vmem:[#allocation2 + $0xb8] sm:$0xff]  ;;  %v3977_v41 = vcombine.low %v121_v57, %v125_v59  ;;  %v3991_v57 = vcombine.low %v129_v34, %v133_v25 }
  0xc9   :  { %v3993_v59 = vcombine.low %v130_v35, %v134_v38 }
  0xca   :  { %v3964_v51 = vadd.f32 %v232_v26, %v231_v37  ;;  %5196 = vst [vmem:[#allocation21_spill] sm:$0xff] %v3977_v41  ;;  %v3983_v26 = vcombine.high %v129_v34, %v133_v25  ;;  %v3985_v37 = vcombine.high %v130_v35, %v134_v38  ;;  %5201 = vst [vmem:[#allocation25_spill] sm:$0xff] %v3991_v57 }
  0xcb   :  { %5202 = vst [vmem:[#allocation26_spill] sm:$0xff] %v3993_v59 }
  0xcc   :  { %3373 = vtanh.f32 %v3964_v51  ;;  %5198 = vst [vmem:[#allocation23_spill] sm:$0xff] %v3983_v26  ;;  %5199 = vst [vmem:[#allocation24_spill] sm:$0xff] %v3985_v37 }
  0xd6   :  { %v3374_v58 = vpop.eup %3373 }
  0xd7   :  { %v235_v4 = vmul.f32 %v3374_v58, %v3372_v56  ;;  %v137_v56 = vld [vmem:[#allocation2 + $0xd0] sm:$0xff] }
  0xd8   :  { %v141_v58 = vld [vmem:[#allocation2 + $0xf0] sm:$0xff] }
  0xd9   :  { %v3967_v18 = vpack.c.bf16 %v235_v4, %v235_v4  ;;  %v138_v4 = vld [vmem:[#allocation2 + $0xd8] sm:$0xff]  ;;  %v3997_v2 = vcombine.high %v137_v56, %v141_v58  ;;  %v4003_v34 = vcombine.low %v137_v56, %v141_v58 }
  0xda   :  { %v3999_v3 = vcombine.high %v138_v4, %v142_v0  ;;  %v4005_v25 = vcombine.low %v138_v4, %v142_v0 }
  0xdb   :  { %590 = vmatmul.mubr.bf16.vlgmr.msra.gmra.mrb[0].mxu0 %v3967_v18  ;;  %631 = vmatmul.mubr.bf16.vlgmr.msra.gmra.mrb[0].mxu1 %v3967_v18  ;;  %5203 = vst [vmem:[#allocation27_spill] sm:$0xff] %v3997_v2  ;;  %5205 = vst [vmem:[#allocation29_spill] sm:$0xff] %v4003_v34 }
  0xdc   :  { %640 = vmatpush1.bf16.msra.mxu0 %v3926_v14  ;;  %681 = vmatpush1.bf16.msra.mxu1 %v3928_v15  ;;  %5204 = vst [vmem:[#allocation28_spill] sm:$0xff] %v3999_v3  ;;  %v146_v15 = vld [vmem:[#allocation2 + $0x118] sm:$0xff]  ;;  %5206 = vst [vmem:[#allocation30_spill] sm:$0xff] %v4005_v25 }
  0xdd   :  { %641 = vmatprep.subr.bf16.mxu0 %v3969_v27  ;;  %682 = vmatprep.subr.bf16.mxu1 %v3971_v32  ;;  %v145_v32 = vld [vmem:[#allocation2 + $0x110] sm:$0xff]  ;;  %v150_v14 = vld [vmem:[#allocation2 + $0x138] sm:$0xff] }
  0xde   :  { %671 = vmatprep.mubr.bf16.mxu0 %v5200_v13  ;;  %712 = vmatprep.mubr.bf16.mxu1 %v5200_v13  ;;  %v149_v27 = vld [vmem:[#allocation2 + $0x130] sm:$0xff]  ;;  %v4011_v38 = vcombine.high %v146_v15, %v150_v14  ;;  %v4017_v0 = vcombine.low %v146_v15, %v150_v14 }
  0xdf   :  { %v4009_v35 = vcombine.high %v145_v32, %v149_v27  ;;  %v4015_v56 = vcombine.low %v145_v32, %v149_v27 }
  0xe0   :  { %642 = vmatpush1.bf16.msra.mxu0 %v3977_v41  ;;  %683 = vmatpush1.bf16.msra.mxu1 %v3979_v42  ;;  %5208 = vst [vmem:[#allocation32_spill] sm:$0xff] %v4011_v38  ;;  %v154_v42 = vld [vmem:[#allocation2 + $0x158] sm:$0xff]  ;;  %5210 = vst [vmem:[#allocation34_spill] sm:$0xff] %v4017_v0 }
  0xe1   :  { %643 = vmatprep.subr.bf16.mxu0 %v3983_v26  ;;  %684 = vmatprep.subr.bf16.mxu1 %v3985_v37  ;;  %5207 = vst [vmem:[#allocation31_spill] sm:$0xff] %v4009_v35  ;;  %v153_v37 = vld [vmem:[#allocation2 + $0x150] sm:$0xff]  ;;  %v158_v41 = vld [vmem:[#allocation2 + $0x178] sm:$0xff]  ;;  %5209 = vst [vmem:[#allocation33_spill] sm:$0xff] %v4015_v56 }
  0xe2   :  { %v157_v26 = vld [vmem:[#allocation2 + $0x170] sm:$0xff]  ;;  %v4023_v4 = vcombine.high %v154_v42, %v158_v41  ;;  %v4029_v14 = vcombine.low %v154_v42, %v158_v41 }
  0xe3   :  { %v4021_v58 = vcombine.high %v153_v37, %v157_v26  ;;  %v4027_v27 = vcombine.low %v153_v37, %v157_v26 }
  0xe4   :  { %644 = vmatpush1.bf16.msra.mxu0 %v3991_v57  ;;  %685 = vmatpush1.bf16.msra.mxu1 %v3993_v59  ;;  %5212 = vst [vmem:[#allocation36_spill] sm:$0xff] %v4023_v4  ;;  %v162_v59 = vld [vmem:[#allocation2 + $0x198] sm:$0xff]  ;;  %5214 = vst [vmem:[#allocation38_spill] sm:$0xff] %v4029_v14 }
  0xe5   :  { %645 = vmatprep.subr.bf16.mxu0 %v3997_v2  ;;  %686 = vmatprep.subr.bf16.mxu1 %v3999_v3  ;;  %5211 = vst [vmem:[#allocation35_spill] sm:$0xff] %v4021_v58  ;;  %v161_v3 = vld [vmem:[#allocation2 + $0x190] sm:$0xff]  ;;  %v166_v57 = vld [vmem:[#allocation2 + $0x1b8] sm:$0xff]  ;;  %5213 = vst [vmem:[#allocation37_spill] sm:$0xff] %v4027_v27 }
  0xe6   :  { %v165_v2 = vld [vmem:[#allocation2 + $0x1b0] sm:$0xff]  ;;  %v4035_v32 = vcombine.high %v162_v59, %v166_v57  ;;  %v4041_v41 = vcombine.low %v162_v59, %v166_v57  ;;  %v4065_v59 = vld [vmem:[#allocation5 + $0xc] ss:$16 sps:$4 sm:$0xff]  }
  0xe7   :  { %v4033_v15 = vcombine.high %v161_v3, %v165_v2  ;;  %v4039_v26 = vcombine.low %v161_v3, %v165_v2  ;;  %v4063_v57 = vld [vmem:[#allocation5 + $0x4] ss:$16 sps:$4 sm:$0xff]   ;;  %5224 = vst [vmem:[#allocation48_spill] sm:$0xff] %v4065_v59  ;;  %v4067_v2 = vld [vmem:[#allocation5] ss:$16 sps:$4 sm:$0xff]  }
  0xe8   :  { %646 = vmatpush1.bf16.msra.mxu0 %v4003_v34  ;;  %687 = vmatpush1.bf16.msra.mxu1 %v4005_v25  ;;  %5216 = vst [vmem:[#allocation40_spill] sm:$0xff] %v4035_v32  ;;  %v170_v25 = vld [vmem:[#allocation2 + $0x1d8] sm:$0xff]  ;;  %5218 = vst [vmem:[#allocation42_spill] sm:$0xff] %v4041_v41 }
  0xe9   :  { %647 = vmatprep.subr.bf16.mxu0 %v4009_v35  ;;  %688 = vmatprep.subr.bf16.mxu1 %v4011_v38  ;;  %5215 = vst [vmem:[#allocation39_spill] sm:$0xff] %v4033_v15  ;;  %v169_v38 = vld [vmem:[#allocation2 + $0x1d0] sm:$0xff]  ;;  %v174_v34 = vld [vmem:[#allocation2 + $0x1f8] sm:$0xff]  ;;  %5217 = vst [vmem:[#allocation41_spill] sm:$0xff] %v4039_v26 }
  0xea   :  { %v173_v35 = vld [vmem:[#allocation2 + $0x1f0] sm:$0xff]  ;;  %v4047_v37 = vcombine.high %v170_v25, %v174_v34  ;;  %5223 = vst [vmem:[#allocation47_spill] sm:$0xff] %v4063_v57  ;;  %5225 = vst [vmem:[#allocation49_spill] sm:$0xff] %v4067_v2  ;;  %v4069_v3 = vld [vmem:[#allocation5 + $0x8] ss:$16 sps:$4 sm:$0xff]  }
  0xeb   :  { %v4045_v42 = vcombine.high %v169_v38, %v173_v35  ;;  %5226 = vst [vmem:[#allocation50_spill] sm:$0xff] %v4069_v3 }
  0xec   :  { %648 = vmatpush1.bf16.msra.mxu0 %v4015_v56  ;;  %689 = vmatpush1.bf16.msra.mxu1 %v4017_v0  ;;  %5220 = vst [vmem:[#allocation44_spill] sm:$0xff] %v4047_v37 }
  0xed   :  { %649 = vmatprep.subr.bf16.mxu0 %v4021_v58  ;;  %690 = vmatprep.subr.bf16.mxu1 %v4023_v4  ;;  %5219 = vst [vmem:[#allocation43_spill] sm:$0xff] %v4045_v42  ;;  %v4051_v4 = vcombine.low %v169_v38, %v173_v35  ;;  %v4081_v35 = vld [vmem:[#allocation5 + $0x28] ss:$16 sps:$4 sm:$0xff]   ;;  %v4087_v38 = vld [vmem:[#allocation5 + $0x44] ss:$16 sps:$4 sm:$0xff]  }
  0xee   :  { %5230 = vst [vmem:[#allocation54_spill] sm:$0xff] %v4081_v35  ;;  %5231 = vst [vmem:[#allocation55_spill] sm:$0xff] %v4087_v38 }
  0xef   :  { %5221 = vst [vmem:[#allocation45_spill] sm:$0xff] %v4051_v4 }
  0xf0   :  { %650 = vmatpush1.bf16.msra.mxu0 %v4027_v27  ;;  %691 = vmatpush1.bf16.msra.mxu1 %v4029_v14  ;;  %v4053_v27 = vcombine.low %v170_v25, %v174_v34  ;;  %v4077_v34 = vld [vmem:[#allocation5 + $0x2c] ss:$16 sps:$4 sm:$0xff]   ;;  %v4079_v25 = vld [vmem:[#allocation5 + $0x20] ss:$16 sps:$4 sm:$0xff]  }
  0xf1   :  { %651 = vmatprep.subr.bf16.mxu0 %v4033_v15  ;;  %692 = vmatprep.subr.bf16.mxu1 %v4035_v32  ;;  %5228 = vst [vmem:[#allocation52_spill] sm:$0xff] %v4077_v34  ;;  %5229 = vst [vmem:[#allocation53_spill] sm:$0xff] %v4079_v25 }
  0xf2   :  { %5222 = vst [vmem:[#allocation46_spill] sm:$0xff] %v4053_v27 }
  0xf4   :  { %652 = vmatpush1.bf16.msra.mxu0 %v4039_v26  ;;  %693 = vmatpush1.bf16.msra.mxu1 %v4041_v41 }
  0xf5   :  { %653 = vmatprep.subr.bf16.mxu0 %v4045_v42  ;;  %694 = vmatprep.subr.bf16.mxu1 %v4047_v37 }
  0xf8   :  { %654 = vmatpush1.bf16.msra.mxu0 %v4051_v4  ;;  %695 = vmatpush1.bf16.msra.mxu1 %v4053_v27  ;;  %v4133_v27 = vld [vmem:[#allocation5 + $0xcc] ss:$16 sps:$4 sm:$0xff]  }
  0xf9   :  { %935 = vmatprep.subr.bf16.mxu0 %v4063_v57  ;;  %976 = vmatprep.subr.bf16.mxu1 %v4065_v59  ;;  %v4093_v59 = vld [vmem:[#allocation5 + $0x48] ss:$16 sps:$4 sm:$0xff]   ;;  %v4131_v57 = vld [vmem:[#allocation5 + $0xc4] ss:$16 sps:$4 sm:$0xff]   ;;  %5248 = vst [vmem:[#allocation72_spill] sm:$0xff] %v4133_v27 }
  0xfa   :  { %5234 = vst [vmem:[#allocation58_spill] sm:$0xff] %v4093_v59  ;;  %5247 = vst [vmem:[#allocation71_spill] sm:$0xff] %v4131_v57 }
  0xfb   :  { %672 = vmatmul.mubr.bf16.vlgmr.msra.gmra.mrb[4].mxu0 %v3967_v18  ;;  %713 = vmatmul.mubr.bf16.vlgmr.msra.gmra.mrb[4].mxu1 %v3967_v18  ;;  %v4075_v18 = vld [vmem:[#allocation5 + $0x24] ss:$16 sps:$4 sm:$0xff]  }
  0xfc   :  { %967 = vmatprep.mubr.bf16.mxu0 %v5200_v13  ;;  %1008 = vmatprep.mubr.bf16.mxu1 %v5200_v13  ;;  %5227 = vst [vmem:[#allocation51_spill] sm:$0xff] %v4075_v18 }
  0xfd   :  { %936 = vmatpush1.bf16.msra.mxu0 %v4067_v2  ;;  %977 = vmatpush1.bf16.msra.mxu1 %v4069_v3  ;;  %v4089_v2 = vld [vmem:[#allocation5 + $0x4c] ss:$16 sps:$4 sm:$0xff]   ;;  %v4091_v3 = vld [vmem:[#allocation5 + $0x40] ss:$16 sps:$4 sm:$0xff]  }
  0xfe   :  { %937 = vmatprep.subr.bf16.mxu0 %v4075_v18  ;;  %978 = vmatprep.subr.bf16.mxu1 %v4077_v34  ;;  %5232 = vst [vmem:[#allocation56_spill] sm:$0xff] %v4089_v2  ;;  %5233 = vst [vmem:[#allocation57_spill] sm:$0xff] %v4091_v3  ;;  %v4099_v34 = vld [vmem:[#allocation5 + $0x64] ss:$16 sps:$4 sm:$0xff]   ;;  %v4105_v18 = vld [vmem:[#allocation5 + $0x68] ss:$16 sps:$4 sm:$0xff]  }
  0xff   :  { %5235 = vst [vmem:[#allocation59_spill] sm:$0xff] %v4099_v34  ;;  %5238 = vst [vmem:[#allocation62_spill] sm:$0xff] %v4105_v18 }
 0x101   :  { %938 = vmatpush1.bf16.msra.mxu0 %v4079_v25  ;;  %979 = vmatpush1.bf16.msra.mxu1 %v4081_v35  ;;  %v4101_v25 = vld [vmem:[#allocation5 + $0x6c] ss:$16 sps:$4 sm:$0xff]   ;;  %v4103_v35 = vld [vmem:[#allocation5 + $0x60] ss:$16 sps:$4 sm:$0xff]  }
 0x102   :  { %939 = vmatprep.subr.bf16.mxu0 %v4087_v38  ;;  %980 = vmatprep.subr.bf16.mxu1 %v4089_v2  ;;  %5236 = vst [vmem:[#allocation60_spill] sm:$0xff] %v4101_v25  ;;  %5237 = vst [vmem:[#allocation61_spill] sm:$0xff] %v4103_v35  ;;  %v4111_v2 = vld [vmem:[#allocation5 + $0x84] ss:$16 sps:$4 sm:$0xff]   ;;  %v4117_v38 = vld [vmem:[#allocation5 + $0x88] ss:$16 sps:$4 sm:$0xff]  }
 0x103   :  { %5239 = vst [vmem:[#allocation63_spill] sm:$0xff] %v4111_v2  ;;  %5242 = vst [vmem:[#allocation66_spill] sm:$0xff] %v4117_v38 }
 0x105   :  { %940 = vmatpush1.bf16.msra.mxu0 %v4091_v3  ;;  %981 = vmatpush1.bf16.msra.mxu1 %v4093_v59  ;;  %v4113_v3 = vld [vmem:[#allocation5 + $0x8c] ss:$16 sps:$4 sm:$0xff]   ;;  %v4115_v59 = vld [vmem:[#allocation5 + $0x80] ss:$16 sps:$4 sm:$0xff]  }
 0x106   :  { %941 = vmatprep.subr.bf16.mxu0 %v4099_v34  ;;  %982 = vmatprep.subr.bf16.mxu1 %v4101_v25  ;;  %5240 = vst [vmem:[#allocation64_spill] sm:$0xff] %v4113_v3  ;;  %5241 = vst [vmem:[#allocation65_spill] sm:$0xff] %v4115_v59  ;;  %v4123_v25 = vld [vmem:[#allocation5 + $0xa4] ss:$16 sps:$4 sm:$0xff]   ;;  %v4129_v34 = vld [vmem:[#allocation5 + $0xa8] ss:$16 sps:$4 sm:$0xff]  }
 0x107   :  { %5243 = vst [vmem:[#allocation67_spill] sm:$0xff] %v4123_v25  ;;  %5246 = vst [vmem:[#allocation70_spill] sm:$0xff] %v4129_v34 }
 0x109   :  { %942 = vmatpush1.bf16.msra.mxu0 %v4103_v35  ;;  %983 = vmatpush1.bf16.msra.mxu1 %v4105_v18  ;;  %v4125_v35 = vld [vmem:[#allocation5 + $0xac] ss:$16 sps:$4 sm:$0xff]   ;;  %v4127_v18 = vld [vmem:[#allocation5 + $0xa0] ss:$16 sps:$4 sm:$0xff]  }
 0x10a   :  { %943 = vmatprep.subr.bf16.mxu0 %v4111_v2  ;;  %984 = vmatprep.subr.bf16.mxu1 %v4113_v3  ;;  %5244 = vst [vmem:[#allocation68_spill] sm:$0xff] %v4125_v35  ;;  %5245 = vst [vmem:[#allocation69_spill] sm:$0xff] %v4127_v18  ;;  %v4145_v3 = vld [vmem:[#allocation5 + $0xe4] ss:$16 sps:$4 sm:$0xff]   ;;  %v4147_v2 = vld [vmem:[#allocation5 + $0xec] ss:$16 sps:$4 sm:$0xff]  }
 0x10b   :  { %5251 = vst [vmem:[#allocation75_spill] sm:$0xff] %v4145_v3  ;;  %5252 = vst [vmem:[#allocation76_spill] sm:$0xff] %v4147_v2 }
 0x10d   :  { %944 = vmatpush1.bf16.msra.mxu0 %v4115_v59  ;;  %985 = vmatpush1.bf16.msra.mxu1 %v4117_v38  ;;  %v4139_v38 = vld [vmem:[#allocation5 + $0xc0] ss:$16 sps:$4 sm:$0xff]   ;;  %v4141_v59 = vld [vmem:[#allocation5 + $0xc8] ss:$16 sps:$4 sm:$0xff]  }
 0x10e   :  { %945 = vmatprep.subr.bf16.mxu0 %v4123_v25  ;;  %986 = vmatprep.subr.bf16.mxu1 %v4125_v35  ;;  %5249 = vst [vmem:[#allocation73_spill] sm:$0xff] %v4139_v38  ;;  %5250 = vst [vmem:[#allocation74_spill] sm:$0xff] %v4141_v59  ;;  %v4151_v35 = vld [vmem:[#allocation5 + $0xe0] ss:$16 sps:$4 sm:$0xff]  }
 0x10f   :  { %5253 = vst [vmem:[#allocation77_spill] sm:$0xff] %v4151_v35 }
 0x111   :  { %946 = vmatpush1.bf16.msra.mxu0 %v4127_v18  ;;  %987 = vmatpush1.bf16.msra.mxu1 %v4129_v34  ;;  %v4153_v18 = vld [vmem:[#allocation5 + $0xe8] ss:$16 sps:$4 sm:$0xff]  }
 0x112   :  { %947 = vmatprep.subr.bf16.mxu0 %v4131_v57  ;;  %988 = vmatprep.subr.bf16.mxu1 %v4133_v27  ;;  %5254 = vst [vmem:[#allocation78_spill] sm:$0xff] %v4153_v18 }
 0x115   :  { %948 = vmatpush1.bf16.msra.mxu0 %v4139_v38  ;;  %989 = vmatpush1.bf16.msra.mxu1 %v4141_v59 }
 0x116   :  { %949 = vmatprep.subr.bf16.mxu0 %v4145_v3  ;;  %990 = vmatprep.subr.bf16.mxu1 %v4147_v2 }
 0x119   :  { %950 = vmatpush1.bf16.msra.mxu0 %v4151_v35  ;;  %991 = vmatpush1.bf16.msra.mxu1 %v4153_v18 }
 0x11a   :  { %1065 = vmatprep.subr.bf16.mxu0 %v3824_v5  ;;  %1106 = vmatprep.subr.bf16.mxu1 %v3828_v10 }
 0x1ae   :  { %v591_v27 = vpop.f32.mrb[0].mxu0  ;;  %v632_v38 = vpop.f32.mrb[0].mxu1 }
 0x1af   :  { %v1021_v57 = vrot.slane %v591_v27, 7  ;;  %v593_v59 = vpop.f32.mrb[1].mxu0  ;;  %v634_v34 = vpop.f32.mrb[1].mxu1  ;;  %v1023_v5 = vrot.slane %v632_v38, 7 }
 0x1b0   :  { %v1022_v25 = vrot.slane %v593_v59, 7  ;;  %v595_v4 = vpop.f32.mrb[2].mxu0  ;;  %v636_v37 = vpop.f32.mrb[2].mxu1  ;;  %v1024_v10 = vrot.slane %v634_v34, 7 }
 0x1b1   :  { %v1029_v3 = vadd.f32 %v1021_v57, %v3949_v46  ;;  %v596_v42 = vpop.f32.mrb[3].mxu0  ;;  %v637_v2 = vpop.f32.mrb[3].mxu1  ;;  %v1031_v26 = vadd.f32 %v1023_v5, %v3957_v1 }
 0x1b2   :  { %v1030_v35 = vadd.f32 %v1022_v25, %v3951_v50  ;;  %v1032_v27 = vadd.f32 %v1024_v10, %v3961_v17 }
 0x1b3   :  { %v3260_v41 = vmul.f32 -1.442695, %v1029_v3  ;;  %v3262_v32 = vmul.f32 -1.442695, %v1031_v26  ;;  %v1053_v26 = vrot.slane %v3964_v51, 7 }
 0x1b4   :  { %v3261_v18 = vmul.f32 -1.442695, %v1030_v35 }
 0x1b5   :  { %3375 = vpow2.f32 %v3260_v41  ;;  %v207_v41 = vld [vmem:[%s4982_s5] sm:$0xf]  ;;  %s3758_s5 = smov [#allocation7]  }
 0x1b6   :  { %3377 = vpow2.f32 %v3261_v18  ;;  %v4169_v3 = vrot.slane %v207_v41, %v3930_v19  ;;  %v4172_v10 = vrot.slane %v207_v41, %v3932_v24  ;;  %s3148_s28 = sshll.u32 %s3758_s5, 4  ;;  %s3149_s28 = int_to_ptr.vmem [resolvable:$true] %s3148_s28 }
 0x1b7   :  { %3379 = vtanh.f32 %v1032_v27  ;;  %s3723_s29 = scalar_lea.vmem %s3149_s28, 16  ;;  %s3727_s30 = scalar_lea.vmem %s3149_s28, 32 }
 0x1b8   :  { %3381 = vpow2.f32 %v3262_v32  ;;  %p3724_p2 = scmp.ne.s32.totalorder %s3149_s28, %s3723_s29  ;;  %p3728_p3 = scmp.lt.s32.totalorder %s3149_s28, %s3149_s28 }
 0x1b9   :  { %p3729_p4 = scmp.lt.s32.totalorder %s3727_s30, %s3723_s29 }
 0x1bb   :  { %p3730_p5 = por %p3729_p4, %p3728_p3 }
 0x1bd   :  { %p3731_p6 = pnand %p3730_p5, %p3724_p2 }
 0x1bf   :  { %v3376_v59 = vpop.eup %3375 }
 0x1c0   :  { %v1042_v4 = vadd.f32 1.0, %v3376_v59  ;;  %v3378_v37 = vpop.eup %3377 }
 0x1c1   :  { %v1043_v42 = vadd.f32 1.0, %v3378_v37  ;;  %v3380_v57 = vpop.eup %3379 }
 0x1c2   :  { %3383 = vrcp.f32 %v1042_v4  ;;  %v3382_v2 = vpop.eup %3381 }
 0x1c3   :  { %3385 = vrcp.f32 %v1043_v42  ;;  %v1044_v34 = vadd.f32 1.0, %v3382_v2  ;;  %v4184_v2 = vrot.slane %v207_v41, %v3947_v45 }
 0x1c5   :  { %3387 = vrcp.f32 %v1044_v34 }
 0x1cc   :  { %v3384_v5 = vpop.eup %3383 }
 0x1cd   :  { %v1056_v18 = vmul.f32 %v3384_v5, %v3380_v57  ;;  %v3386_v32 = vpop.eup %3385  ;;  %v4181_v57 = vrot.slane %v207_v41, %v3942_v33 }
 0x1ce   :  { %v673_v25 = vpop.f32.mrb[4].mxu0  ;;  %v714_v35 = vpop.f32.mrb[4].mxu1  ;;  %v1055_v38 = vmul.f32 %v3386_v32, %v1053_v26 }
 0x1cf   :  { %v746_v27 = vadd.f32 %v4169_v3, %v673_v25  ;;  %v675_v59 = vpop.f32.mrb[5].mxu0  ;;  %v716_v4 = vpop.f32.mrb[5].mxu1  ;;  %v748_v5 = vadd.f32 %v4181_v57, %v714_v35 }
 0x1d0   :  { %v747_v37 = vadd.f32 %v4172_v10, %v675_v59  ;;  %v677_v19 = vpop.f32.mrb[6].mxu0  ;;  %v718_v42 = vpop.f32.mrb[6].mxu1  ;;  %v4177_v17 = vadd.f32 %v1056_v18, %v1055_v38  ;;  %v749_v26 = vadd.f32 %v4184_v2, %v716_v4 }
 0x1d1   :  { %v3225_v24 = vmul.f32 -1.442695, %v746_v27  ;;  %v678_v1 = vpop.f32.mrb[7].mxu0  ;;  %v719_v50 = vpop.f32.mrb[7].mxu1  ;;  %v3227_v32 = vmul.f32 -1.442695, %v748_v5 }
 0x1d2   :  { %v3226_v51 = vmul.f32 -1.442695, %v747_v37  ;;  %3389 = vtanh.f32 %v4177_v17  ;;  %v3388_v18 = vpop.eup %3387 }
 0x1d3   :  { %3391 = vpow2.f32 %v3225_v24 }
 0x1d4   :  { %3393 = vpow2.f32 %v3226_v51 }
 0x1d5   :  { %3395 = vtanh.f32 %v749_v26 }
 0x1d6   :  { %3397 = vpow2.f32 %v3227_v32  ;;  %v5255_v32 = vld [vmem:[#allocation13_spill] sm:$0xff] }
 0x1dc   :  { %v3390_v1 = vpop.eup %3389 }
 0x1dd   :  { %v3392_v50 = vpop.eup %3391  ;;  %v1059_v34 = vmul.f32 %v3390_v1, %v3388_v18  ;;  %v5256_v1 = vld [vmem:[#allocation14_spill] sm:$0xff] }
 0x1de   :  { %v759_v25 = vadd.f32 1.0, %v3392_v50  ;;  %v3394_v38 = vpop.eup %3393  ;;  %v5257_v50 = vld [vmem:[#allocation15_spill] sm:$0xff] }
 0x1df   :  { %v760_v33 = vadd.f32 1.0, %v3394_v38  ;;  %v3396_v27 = vpop.eup %3395  ;;  %v1060_v26 = vpack.c.bf16 %v1059_v34, %v1059_v34  ;;  %v5259_v38 = vld [vmem:[#allocation20_spill] sm:$0xff]  ;;  %v5260_v34 = vld [vmem:[#allocation21_spill] sm:$0xff] }
 0x1e0   :  { %3399 = vrcp.f32 %v759_v25  ;;  %v3398_v59 = vpop.eup %3397  ;;  %v5258_v25 = vld [vmem:[#allocation19_spill] sm:$0xff] }
 0x1e1   :  { %3401 = vrcp.f32 %v760_v33  ;;  %v761_v35 = vadd.f32 1.0, %v3398_v59  ;;  %v1062_v18 = vshrl.u32 %v1060_v26, 16  ;;  %v5261_v33 = vld [vmem:[#allocation22_spill] sm:$0xff]  ;;  %v5263_v59 = vld [vmem:[#allocation24_spill] sm:$0xff]  ;;  %v5273_v26 = vld [vmem:[#allocation37_spill] sm:$0xff] }
 0x1e3   :  { %3403 = vrcp.f32 %v761_v35  ;;  %v5267_v35 = vld [vmem:[#allocation28_spill] sm:$0xff] }
 0x1ea   :  { %v3400_v45 = vpop.eup %3399 }
 0x1eb   :  { %v770_v41 = vmul.f32 %v3400_v45, %v3396_v27  ;;  %v3402_v37 = vpop.eup %3401  ;;  %v5262_v27 = vld [vmem:[#allocation23_spill] sm:$0xff]  ;;  %v5264_v45 = vld [vmem:[#allocation25_spill] sm:$0xff] }
 0x1ec   :  { %v769_v19 = vmul.f32 0.0, %v3402_v37  ;;  %v5266_v37 = vld [vmem:[#allocation27_spill] sm:$0xff] }
 0x1ed   :  { %v3404_v42 = vpop.eup %3403 }
 0x1ee   :  { %v4188_v4 = vadd.f32 %v770_v41, %v769_v19  ;;  %v5265_v41 = vld [vmem:[#allocation26_spill] sm:$0xff]  ;;  %v5268_v19 = vld [vmem:[#allocation29_spill] sm:$0xff] }
 0x1f0   :  { %3405 = vtanh.f32 %v4188_v4 }
 0x1fa   :  { %v3406_v24 = vpop.eup %3405 }
 0x1fb   :  { %v773_v51 = vmul.f32 %v3406_v24, %v3404_v42  ;;  %v5269_v42 = vld [vmem:[#allocation30_spill] sm:$0xff]  ;;  %v5270_v24 = vld [vmem:[#allocation31_spill] sm:$0xff] }
 0x1fd   :  { %v774_v5 = vpack.c.bf16 %v773_v51, %v773_v51  ;;  %v5271_v51 = vld [vmem:[#allocation32_spill] sm:$0xff] }
 0x1ff   :  { %968 = vmatmul.mubr.bf16.vlgmr.msra.gmra.mrb[8].mxu0 %v774_v5  ;;  %1009 = vmatmul.mubr.bf16.vlgmr.msra.gmra.mrb[8].mxu1 %v774_v5  ;;  %v5272_v5 = vld [vmem:[#allocation36_spill] sm:$0xff] }
 0x200   :  { %1066 = vmatpush1.bf16.msra.mxu0 %v3826_v7  ;;  %1107 = vmatpush1.bf16.msra.mxu1 %v3830_v11 }
 0x201   :  { %1067 = vmatprep.subr.bf16.mxu0 %v3832_v12  ;;  %1108 = vmatprep.subr.bf16.mxu1 %v3835_v16 }
 0x202   :  { %1097 = vmatprep.mubr.bf16.mxu0 %v5200_v13  ;;  %1138 = vmatprep.mubr.bf16.mxu1 %v5200_v13 }
 0x204   :  { %1068 = vmatpush1.bf16.msra.mxu0 %v3839_v20  ;;  %1109 = vmatpush1.bf16.msra.mxu1 %v3843_v21 }
 0x205   :  { %1069 = vmatprep.subr.bf16.mxu0 %v3845_v22  ;;  %1110 = vmatprep.subr.bf16.mxu1 %v3848_v23 }
 0x208   :  { %1070 = vmatpush1.bf16.msra.mxu0 %v3851_v28  ;;  %1111 = vmatpush1.bf16.msra.mxu1 %v3855_v29 }
 0x209   :  { %1071 = vmatprep.subr.bf16.mxu0 %v3857_v30  ;;  %1112 = vmatprep.subr.bf16.mxu1 %v3860_v31 }
 0x20c   :  { %1072 = vmatpush1.bf16.msra.mxu0 %v3863_v36  ;;  %1113 = vmatpush1.bf16.msra.mxu1 %v3867_v39 }
 0x20d   :  { %1073 = vmatprep.subr.bf16.mxu0 %v3869_v40  ;;  %1114 = vmatprep.subr.bf16.mxu1 %v3872_v43 }
 0x210   :  { %1074 = vmatpush1.bf16.msra.mxu0 %v3875_v44  ;;  %1115 = vmatpush1.bf16.msra.mxu1 %v3879_v47 }
 0x211   :  { %1075 = vmatprep.subr.bf16.mxu0 %v3881_v48  ;;  %1116 = vmatprep.subr.bf16.mxu1 %v3884_v49 }
 0x214   :  { %1076 = vmatpush1.bf16.msra.mxu0 %v3887_v52  ;;  %1117 = vmatpush1.bf16.msra.mxu1 %v3891_v53 }
 0x215   :  { %1077 = vmatprep.subr.bf16.mxu0 %v3893_v54  ;;  %1118 = vmatprep.subr.bf16.mxu1 %v3896_v55 }
 0x218   :  { %1078 = vmatpush1.bf16.msra.mxu0 %v3899_v60  ;;  %1119 = vmatpush1.bf16.msra.mxu1 %v3903_v61 }
 0x219   :  { %1079 = vmatprep.subr.bf16.mxu0 %v3905_v62  ;;  %1120 = vmatprep.subr.bf16.mxu1 %v3908_v63 }
 0x21c   :  { %1080 = vmatpush1.bf16.msra.mxu0 %v3911_v6  ;;  %1121 = vmatpush1.bf16.msra.mxu1 %v3915_v8 }
 0x21d   :  { %1147 = vmatprep.subr.bf16.mxu0 %v3917_v9  ;;  %1188 = vmatprep.subr.bf16.mxu1 %v5255_v32 }
 0x21f   :  { %1098 = vmatmul.mubr.bf16.vlgmr.msra.gmra.mrb[12].mxu0 %v1062_v18  ;;  %1139 = vmatmul.mubr.bf16.vlgmr.msra.gmra.mrb[12].mxu1 %v1062_v18 }
 0x220   :  { %1148 = vmatpush1.bf16.msra.mxu0 %v5256_v1  ;;  %1189 = vmatpush1.bf16.msra.mxu1 %v5257_v50 }
 0x221   :  { %1149 = vmatprep.subr.bf16.mxu0 %v5258_v25  ;;  %1190 = vmatprep.subr.bf16.mxu1 %v5259_v38 }
 0x222   :  { %1179 = vmatprep.mubr.bf16.mxu0 %v5200_v13  ;;  %1220 = vmatprep.mubr.bf16.mxu1 %v5200_v13 }
 0x224   :  { %1150 = vmatpush1.bf16.msra.mxu0 %v5260_v34  ;;  %1191 = vmatpush1.bf16.msra.mxu1 %v5261_v33  ;;  %v5315_v34 = vld [vmem:[#allocation16_spill] sm:$0xff] }
 0x225   :  { %1151 = vmatprep.subr.bf16.mxu0 %v5262_v27  ;;  %1192 = vmatprep.subr.bf16.mxu1 %v5263_v59 }
 0x228   :  { %1152 = vmatpush1.bf16.msra.mxu0 %v5264_v45  ;;  %1193 = vmatpush1.bf16.msra.mxu1 %v5265_v41 }
 0x229   :  { %1153 = vmatprep.subr.bf16.mxu0 %v5266_v37  ;;  %1194 = vmatprep.subr.bf16.mxu1 %v5267_v35 }
 0x22c   :  { %1154 = vmatpush1.bf16.msra.mxu0 %v5268_v19  ;;  %1195 = vmatpush1.bf16.msra.mxu1 %v5269_v42  ;;  %v5274_v19 = vld [vmem:[#allocation40_spill] sm:$0xff]  ;;  %v5275_v42 = vld [vmem:[#allocation41_spill] sm:$0xff] }
 0x22d   :  { %1155 = vmatprep.subr.bf16.mxu0 %v5270_v24  ;;  %1196 = vmatprep.subr.bf16.mxu1 %v5271_v51  ;;  %v5276_v24 = vld [vmem:[#allocation42_spill] sm:$0xff]  ;;  %v5277_v51 = vld [vmem:[#allocation43_spill] sm:$0xff] }
 0x230   :  { %1156 = vmatpush1.bf16.msra.mxu0 %v4015_v56  ;;  %1197 = vmatpush1.bf16.msra.mxu1 %v4017_v0  ;;  %v5278_v56 = vld [vmem:[#allocation44_spill] sm:$0xff]  ;;  %v5279_v0 = vld [vmem:[#allocation45_spill] sm:$0xff] }
 0x231   :  { %1157 = vmatprep.subr.bf16.mxu0 %v4021_v58  ;;  %1198 = vmatprep.subr.bf16.mxu1 %v5272_v5  ;;  %v5280_v58 = vld [vmem:[#allocation46_spill] sm:$0xff]  ;;  %v5281_v5 = vld [vmem:[#allocation47_spill] sm:$0xff] }
 0x234   :  { %1158 = vmatpush1.bf16.msra.mxu0 %v5273_v26  ;;  %1199 = vmatpush1.bf16.msra.mxu1 %v4029_v14  ;;  %v5282_v26 = vld [vmem:[#allocation48_spill] sm:$0xff] }
 0x235   :  { %1159 = vmatprep.subr.bf16.mxu0 %v4033_v15  ;;  %1200 = vmatprep.subr.bf16.mxu1 %v5274_v19  ;;  %v5283_v15 = vld [vmem:[#allocation49_spill] sm:$0xff]  ;;  %v5284_v19 = vld [vmem:[#allocation50_spill] sm:$0xff] }
 0x238   :  { %1160 = vmatpush1.bf16.msra.mxu0 %v5275_v42  ;;  %1201 = vmatpush1.bf16.msra.mxu1 %v5276_v24  ;;  %v5285_v42 = vld [vmem:[#allocation51_spill] sm:$0xff]  ;;  %v5286_v24 = vld [vmem:[#allocation52_spill] sm:$0xff] }
 0x239   :  { %1161 = vmatprep.subr.bf16.mxu0 %v5277_v51  ;;  %1202 = vmatprep.subr.bf16.mxu1 %v5278_v56  ;;  %v5296_v56 = vld [vmem:[#allocation62_spill] sm:$0xff]  ;;  %v5297_v51 = vld [vmem:[#allocation63_spill] sm:$0xff] }
 0x23c   :  { %1162 = vmatpush1.bf16.msra.mxu0 %v5279_v0  ;;  %1203 = vmatpush1.bf16.msra.mxu1 %v5280_v58  ;;  %v5287_v0 = vld [vmem:[#allocation53_spill] sm:$0xff]  ;;  %v5288_v58 = vld [vmem:[#allocation54_spill] sm:$0xff] }
 0x23d   :  { %1262 = vmatprep.subr.bf16.mxu0 %v5281_v5  ;;  %1303 = vmatprep.subr.bf16.mxu1 %v5282_v26  ;;  %v5289_v5 = vld [vmem:[#allocation55_spill] sm:$0xff]  ;;  %v5290_v26 = vld [vmem:[#allocation56_spill] sm:$0xff] }
 0x23f   :  { %1180 = vmatmul.mubr.bf16.vlgmr.msra.gmra.mrb[16].mxu0 %v1062_v18  ;;  %1221 = vmatmul.mubr.bf16.vlgmr.msra.gmra.mrb[16].mxu1 %v1062_v18  ;;  %v5291_v18 = vld [vmem:[#allocation57_spill] sm:$0xff] }
 0x240   :  { %1263 = vmatpush1.bf16.msra.mxu0 %v5283_v15  ;;  %1304 = vmatpush1.bf16.msra.mxu1 %v5284_v19  ;;  %v5292_v15 = vld [vmem:[#allocation58_spill] sm:$0xff]  ;;  %v5293_v19 = vld [vmem:[#allocation59_spill] sm:$0xff] }
 0x241   :  { %1264 = vmatprep.subr.bf16.mxu0 %v5285_v42  ;;  %1305 = vmatprep.subr.bf16.mxu1 %v5286_v24  ;;  %v5294_v42 = vld [vmem:[#allocation60_spill] sm:$0xff]  ;;  %v5295_v24 = vld [vmem:[#allocation61_spill] sm:$0xff] }
 0x242   :  { %1294 = vmatprep.mubr.bf16.mxu0 %v5200_v13  ;;  %1335 = vmatprep.mubr.bf16.mxu1 %v5200_v13 }
 0x244   :  { %1265 = vmatpush1.bf16.msra.mxu0 %v5287_v0  ;;  %1306 = vmatpush1.bf16.msra.mxu1 %v5288_v58  ;;  %v5298_v0 = vld [vmem:[#allocation64_spill] sm:$0xff]  ;;  %v5299_v58 = vld [vmem:[#allocation65_spill] sm:$0xff] }
 0x245   :  { %1266 = vmatprep.subr.bf16.mxu0 %v5289_v5  ;;  %1307 = vmatprep.subr.bf16.mxu1 %v5290_v26  ;;  %v5300_v5 = vld [vmem:[#allocation66_spill] sm:$0xff]  ;;  %v5301_v26 = vld [vmem:[#allocation67_spill] sm:$0xff] }
 0x248   :  { %1267 = vmatpush1.bf16.msra.mxu0 %v5291_v18  ;;  %1308 = vmatpush1.bf16.msra.mxu1 %v5292_v15  ;;  %v5302_v18 = vld [vmem:[#allocation68_spill] sm:$0xff]  ;;  %v5303_v15 = vld [vmem:[#allocation69_spill] sm:$0xff] }
 0x249   :  { %1268 = vmatprep.subr.bf16.mxu0 %v5293_v19  ;;  %1309 = vmatprep.subr.bf16.mxu1 %v5294_v42  ;;  %v5304_v19 = vld [vmem:[#allocation70_spill] sm:$0xff]  ;;  %v5305_v42 = vld [vmem:[#allocation71_spill] sm:$0xff] }
 0x24c   :  { %1269 = vmatpush1.bf16.msra.mxu0 %v5295_v24  ;;  %1310 = vmatpush1.bf16.msra.mxu1 %v5296_v56  ;;  %v5306_v24 = vld [vmem:[#allocation72_spill] sm:$0xff]  ;;  %v5307_v56 = vld [vmem:[#allocation73_spill] sm:$0xff] }
 0x24d   :  { %1270 = vmatprep.subr.bf16.mxu0 %v5297_v51  ;;  %1311 = vmatprep.subr.bf16.mxu1 %v5298_v0  ;;  %v5308_v51 = vld [vmem:[#allocation74_spill] sm:$0xff]  ;;  %v5309_v0 = vld [vmem:[#allocation75_spill] sm:$0xff] }
 0x250   :  { %1271 = vmatpush1.bf16.msra.mxu0 %v5299_v58  ;;  %1312 = vmatpush1.bf16.msra.mxu1 %v5300_v5  ;;  %v5310_v58 = vld [vmem:[#allocation76_spill] sm:$0xff]  ;;  %v5311_v5 = vld [vmem:[#allocation77_spill] sm:$0xff] }
 0x251   :  { %1272 = vmatprep.subr.bf16.mxu0 %v5301_v26  ;;  %1313 = vmatprep.subr.bf16.mxu1 %v5302_v18  ;;  %v5312_v26 = vld [vmem:[#allocation78_spill] sm:$0xff]  ;;  %v5313_v18 = vld [vmem:[#allocation11_spill] sm:$0xff] }
 0x254   :  { %1273 = vmatpush1.bf16.msra.mxu0 %v5303_v15  ;;  %1314 = vmatpush1.bf16.msra.mxu1 %v5304_v19  ;;  %v5314_v15 = vld [vmem:[#allocation12_spill] sm:$0xff] }
 0x255   :  { %1274 = vmatprep.subr.bf16.mxu0 %v5305_v42  ;;  %1315 = vmatprep.subr.bf16.mxu1 %v5306_v24 }
 0x258   :  { %1275 = vmatpush1.bf16.msra.mxu0 %v5307_v56  ;;  %1316 = vmatpush1.bf16.msra.mxu1 %v5308_v51 }
 0x259   :  { %1276 = vmatprep.subr.bf16.mxu0 %v5309_v0  ;;  %1317 = vmatprep.subr.bf16.mxu1 %v5310_v58 }
 0x25c   :  { %1277 = vmatpush1.bf16.msra.mxu0 %v5311_v5  ;;  %1318 = vmatpush1.bf16.msra.mxu1 %v5312_v26 }
 0x25d   :  { %1391 = vmatprep.subr.bf16.mxu0 %v5313_v18  ;;  %1432 = vmatprep.subr.bf16.mxu1 %v5314_v15 }
 0x2d2   :  { %v969_v19 = vpop.f32.mrb[8].mxu0  ;;  %v1010_v42 = vpop.f32.mrb[8].mxu1 }
 0x2d3   :  { %v971_v14 = vpop.f32.mrb[9].mxu0  ;;  %v1012_v24 = vpop.f32.mrb[9].mxu1 }
 0x2d4   :  { %v973_v35 = vpop.f32.mrb[10].mxu0  ;;  %v1014_v56 = vpop.f32.mrb[10].mxu1 }
 0x2d5   :  { %v974_v37 = vpop.f32.mrb[11].mxu0  ;;  %v1015_v51 = vpop.f32.mrb[11].mxu1  ;;  %v5316_v35 = vld [vmem:[#allocation17_spill] sm:$0xff] }
 0x2f2   :  { %v1099_v41 = vpop.f32.mrb[12].mxu0  ;;  %v1140_v0 = vpop.f32.mrb[12].mxu1 }
 0x2f3   :  { %v1348_v45 = vrot.slane %v1099_v41, 6  ;;  %v1101_v58 = vpop.f32.mrb[13].mxu0  ;;  %v1142_v59 = vpop.f32.mrb[13].mxu1  ;;  %v1350_v56 = vrot.slane %v1140_v0, 6  ;;  %v5317_v41 = vld [vmem:[#allocation18_spill] sm:$0xff]  ;;  %v1380_v0 = vrot.slane %v4177_v17, 7 }
 0x2f4   :  { %v1349_v5 = vrot.slane %v1101_v58, 6  ;;  %v1103_v27 = vpop.f32.mrb[14].mxu0  ;;  %v1144_v26 = vpop.f32.mrb[14].mxu1  ;;  %v1351_v37 = vrot.slane %v1142_v59, 6 }
 0x2f5   :  { %v1356_v18 = vadd.f32 %v1348_v45, %v3949_v46  ;;  %v1104_v33 = vpop.f32.mrb[15].mxu0  ;;  %v1145_v15 = vpop.f32.mrb[15].mxu1  ;;  %v1358_v51 = vadd.f32 %v1350_v56, %v5316_v35 }
 0x2f6   :  { %v1357_v38 = vadd.f32 %v1349_v5, %v5315_v34  ;;  %v1359_v1 = vadd.f32 %v1351_v37, %v5317_v41 }
 0x2f7   :  { %v3266_v25 = vmul.f32 -1.442695, %v1356_v18  ;;  %v3268_v32 = vmul.f32 -1.442695, %v1358_v51 }
 0x2f8   :  { %v3267_v50 = vmul.f32 -1.442695, %v1357_v38 }
 0x2f9   :  { %3407 = vpow2.f32 %v3266_v25 }
 0x2fa   :  { %3409 = vpow2.f32 %v3267_v50 }
 0x2fb   :  { %3411 = vtanh.f32 %v1359_v1 }
 0x2fc   :  { %3413 = vpow2.f32 %v3268_v32 }
 0x303   :  { %v3408_v58 = vpop.eup %3407 }
 0x304   :  { %v1369_v27 = vadd.f32 1.0, %v3408_v58  ;;  %v3410_v26 = vpop.eup %3409 }
 0x305   :  { %v1370_v15 = vadd.f32 1.0, %v3410_v26  ;;  %v3412_v33 = vpop.eup %3411 }
 0x306   :  { %3415 = vrcp.f32 %v1369_v27  ;;  %v3414_v45 = vpop.eup %3413 }
 0x307   :  { %3417 = vrcp.f32 %v1370_v15  ;;  %v1371_v59 = vadd.f32 1.0, %v3414_v45 }
 0x309   :  { %3419 = vrcp.f32 %v1371_v59 }
 0x310   :  { %v3416_v38 = vpop.eup %3415 }
 0x311   :  { %v1383_v50 = vmul.f32 %v3416_v38, %v3412_v33  ;;  %v3418_v25 = vpop.eup %3417 }
 0x312   :  { %v1181_v5 = vpop.f32.mrb[16].mxu0  ;;  %v1222_v18 = vpop.f32.mrb[16].mxu1  ;;  %v1382_v56 = vmul.f32 %v3418_v25, %v1380_v0 }
 0x313   :  { %v1229_v37 = vadd.f32 %v1181_v5, %v969_v19  ;;  %v1231_v51 = vadd.f32 %v1222_v18, %v1010_v42  ;;  %v1183_v58 = vpop.f32.mrb[17].mxu0  ;;  %v1224_v1 = vpop.f32.mrb[17].mxu1 }
 0x314   :  { %v1230_v41 = vadd.f32 %v1183_v58, %v971_v14  ;;  %v1232_v32 = vadd.f32 %v1224_v1, %v1012_v24  ;;  %v1185_v27 = vpop.f32.mrb[18].mxu0  ;;  %v1226_v26 = vpop.f32.mrb[18].mxu1  ;;  %v4298_v15 = vadd.f32 %v1383_v50, %v1382_v56 }
 0x315   :  { %v1233_v35 = vadd.f32 %v1229_v37, %v4169_v3  ;;  %v1186_v34 = vpop.f32.mrb[19].mxu0  ;;  %v1227_v17 = vpop.f32.mrb[19].mxu1  ;;  %v1235_v14 = vadd.f32 %v1231_v51, %v4181_v57 }
 0x316   :  { %v1234_v33 = vadd.f32 %v1230_v41, %v4172_v10  ;;  %3421 = vtanh.f32 %v4298_v15  ;;  %v3420_v42 = vpop.eup %3419  ;;  %v1236_v24 = vadd.f32 %v1232_v32, %v4184_v2 }
 0x317   :  { %v3263_v45 = vmul.f32 -1.442695, %v1233_v35  ;;  %v3265_v0 = vmul.f32 -1.442695, %v1235_v14  ;;  %v5320_v14 = vld [vmem:[#allocation15_spill] sm:$0xff] }
 0x318   :  { %v3264_v19 = vmul.f32 -1.442695, %v1234_v33 }
 0x319   :  { %3423 = vpow2.f32 %v3263_v45  ;;  %v5318_v45 = vld [vmem:[#allocation13_spill] sm:$0xff] }
 0x31a   :  { %3425 = vpow2.f32 %v3264_v19  ;;  %v5319_v19 = vld [vmem:[#allocation14_spill] sm:$0xff] }
 0x31b   :  { %3427 = vtanh.f32 %v1236_v24  ;;  %v5322_v24 = vld [vmem:[#allocation20_spill] sm:$0xff] }
 0x31c   :  { %3429 = vpow2.f32 %v3265_v0  ;;  %v5324_v0 = vld [vmem:[#allocation22_spill] sm:$0xff] }
 0x320   :  { %v3422_v38 = vpop.eup %3421 }
 0x321   :  { %v1386_v50 = vmul.f32 %v3422_v38, %v3420_v42  ;;  %v5321_v42 = vld [vmem:[#allocation19_spill] sm:$0xff]  ;;  %v5323_v38 = vld [vmem:[#allocation21_spill] sm:$0xff] }
 0x323   :  { %v3424_v25 = vpop.eup %3423 }
 0x324   :  { %v1246_v34 = vadd.f32 1.0, %v3424_v25  ;;  %v3426_v59 = vpop.eup %3425  ;;  %v5326_v25 = vld [vmem:[#allocation24_spill] sm:$0xff] }
 0x325   :  { %v1247_v41 = vadd.f32 1.0, %v3426_v59  ;;  %v3428_v35 = vpop.eup %3427  ;;  %v5328_v59 = vld [vmem:[#allocation26_spill] sm:$0xff] }
 0x326   :  { %3431 = vrcp.f32 %v1246_v34  ;;  %v3430_v5 = vpop.eup %3429  ;;  %v5327_v34 = vld [vmem:[#allocation25_spill] sm:$0xff] }
 0x327   :  { %3433 = vrcp.f32 %v1247_v41  ;;  %v1248_v51 = vadd.f32 1.0, %v3430_v5  ;;  %v5329_v41 = vld [vmem:[#allocation27_spill] sm:$0xff]  ;;  %v5331_v5 = vld [vmem:[#allocation29_spill] sm:$0xff] }
 0x329   :  { %3435 = vrcp.f32 %v1248_v51  ;;  %v5335_v51 = vld [vmem:[#allocation33_spill] sm:$0xff] }
 0x330   :  { %v3432_v18 = vpop.eup %3431 }
 0x331   :  { %v1257_v56 = vmul.f32 %v3432_v18, %v3428_v35  ;;  %v3434_v37 = vpop.eup %3433  ;;  %v5330_v35 = vld [vmem:[#allocation28_spill] sm:$0xff]  ;;  %v5332_v18 = vld [vmem:[#allocation30_spill] sm:$0xff] }
 0x332   :  { %v1256_v58 = vmul.f32 %v3434_v37, %v4188_v4  ;;  %v1387_v4 = vpack.c.bf16 %v1386_v50, %v1386_v50  ;;  %v5325_v50 = vld [vmem:[#allocation23_spill] sm:$0xff]  ;;  %v5334_v37 = vld [vmem:[#allocation32_spill] sm:$0xff] }
 0x333   :  { %v3436_v32 = vpop.eup %3435 }
 0x334   :  { %v4306_v1 = vadd.f32 %v1257_v56, %v1256_v58  ;;  %v1389_v33 = vrot.slane %v1387_v4, 1  ;;  %v5333_v56 = vld [vmem:[#allocation31_spill] sm:$0xff]  ;;  %v5336_v58 = vld [vmem:[#allocation34_spill] sm:$0xff] }
 0x335   :  { %v5341_v4 = vld [vmem:[#allocation39_spill] sm:$0xff] }
 0x336   :  { %3437 = vtanh.f32 %v4306_v1 }
 0x340   :  { %v3438_v27 = vpop.eup %3437 }
 0x341   :  { %v1260_v26 = vmul.f32 %v3438_v27, %v3436_v32  ;;  %v5337_v32 = vld [vmem:[#allocation35_spill] sm:$0xff]  ;;  %v5338_v27 = vld [vmem:[#allocation36_spill] sm:$0xff] }
 0x343   :  { %v1261_v17 = vpack.c.bf16 %v1260_v26, %v1260_v26  ;;  %v5339_v26 = vld [vmem:[#allocation37_spill] sm:$0xff] }
 0x345   :  { %1295 = vmatmul.mubr.bf16.vlgmr.msra.gmra.mrb[20].mxu0 %v1261_v17  ;;  %1336 = vmatmul.mubr.bf16.vlgmr.msra.gmra.mrb[20].mxu1 %v1261_v17  ;;  %v5340_v17 = vld [vmem:[#allocation38_spill] sm:$0xff] }
 0x346   :  { %1392 = vmatpush1.bf16.msra.mxu0 %v3826_v7  ;;  %1433 = vmatpush1.bf16.msra.mxu1 %v3830_v11 }
 0x347   :  { %1393 = vmatprep.subr.bf16.mxu0 %v3832_v12  ;;  %1434 = vmatprep.subr.bf16.mxu1 %v3835_v16 }
 0x348   :  { %1423 = vmatprep.mubr.bf16.mxu0 %v5200_v13  ;;  %1464 = vmatprep.mubr.bf16.mxu1 %v5200_v13 }
 0x34a   :  { %1394 = vmatpush1.bf16.msra.mxu0 %v3839_v20  ;;  %1435 = vmatpush1.bf16.msra.mxu1 %v3843_v21 }
 0x34b   :  { %1395 = vmatprep.subr.bf16.mxu0 %v3845_v22  ;;  %1436 = vmatprep.subr.bf16.mxu1 %v3848_v23 }
 0x34e   :  { %1396 = vmatpush1.bf16.msra.mxu0 %v3851_v28  ;;  %1437 = vmatpush1.bf16.msra.mxu1 %v3855_v29 }
 0x34f   :  { %1397 = vmatprep.subr.bf16.mxu0 %v3857_v30  ;;  %1438 = vmatprep.subr.bf16.mxu1 %v3860_v31 }
 0x352   :  { %1398 = vmatpush1.bf16.msra.mxu0 %v3863_v36  ;;  %1439 = vmatpush1.bf16.msra.mxu1 %v3867_v39 }
 0x353   :  { %1399 = vmatprep.subr.bf16.mxu0 %v3869_v40  ;;  %1440 = vmatprep.subr.bf16.mxu1 %v3872_v43 }
 0x356   :  { %1400 = vmatpush1.bf16.msra.mxu0 %v3875_v44  ;;  %1441 = vmatpush1.bf16.msra.mxu1 %v3879_v47 }
 0x357   :  { %1401 = vmatprep.subr.bf16.mxu0 %v3881_v48  ;;  %1442 = vmatprep.subr.bf16.mxu1 %v3884_v49 }
 0x35a   :  { %1402 = vmatpush1.bf16.msra.mxu0 %v3887_v52  ;;  %1443 = vmatpush1.bf16.msra.mxu1 %v3891_v53 }
 0x35b   :  { %1403 = vmatprep.subr.bf16.mxu0 %v3893_v54  ;;  %1444 = vmatprep.subr.bf16.mxu1 %v3896_v55 }
 0x35e   :  { %1404 = vmatpush1.bf16.msra.mxu0 %v3899_v60  ;;  %1445 = vmatpush1.bf16.msra.mxu1 %v3903_v61 }
 0x35f   :  { %1405 = vmatprep.subr.bf16.mxu0 %v3905_v62  ;;  %1446 = vmatprep.subr.bf16.mxu1 %v3908_v63 }
 0x362   :  { %1406 = vmatpush1.bf16.msra.mxu0 %v3911_v6  ;;  %1447 = vmatpush1.bf16.msra.mxu1 %v3915_v8 }
 0x363   :  { %1473 = vmatprep.subr.bf16.mxu0 %v3917_v9  ;;  %1514 = vmatprep.subr.bf16.mxu1 %v5318_v45 }
 0x365   :  { %1424 = vmatmul.mubr.bf16.vlgmr.msra.gmra.mrb[24].mxu0 %v1389_v33  ;;  %1465 = vmatmul.mubr.bf16.vlgmr.msra.gmra.mrb[24].mxu1 %v1389_v33 }
 0x366   :  { %1474 = vmatpush1.bf16.msra.mxu0 %v5319_v19  ;;  %1515 = vmatpush1.bf16.msra.mxu1 %v5320_v14 }
 0x367   :  { %1475 = vmatprep.subr.bf16.mxu0 %v5321_v42  ;;  %1516 = vmatprep.subr.bf16.mxu1 %v5322_v24 }
 0x368   :  { %1505 = vmatprep.mubr.bf16.mxu0 %v5200_v13  ;;  %1546 = vmatprep.mubr.bf16.mxu1 %v5200_v13 }
 0x36a   :  { %1476 = vmatpush1.bf16.msra.mxu0 %v5323_v38  ;;  %1517 = vmatpush1.bf16.msra.mxu1 %v5324_v0  ;;  %v5383_v38 = vld [vmem:[#allocation16_spill] sm:$0xff] }
 0x36b   :  { %1477 = vmatprep.subr.bf16.mxu0 %v5325_v50  ;;  %1518 = vmatprep.subr.bf16.mxu1 %v5326_v25 }
 0x36e   :  { %1478 = vmatpush1.bf16.msra.mxu0 %v5327_v34  ;;  %1519 = vmatpush1.bf16.msra.mxu1 %v5328_v59 }
 0x36f   :  { %1479 = vmatprep.subr.bf16.mxu0 %v5329_v41  ;;  %1520 = vmatprep.subr.bf16.mxu1 %v5330_v35 }
 0x372   :  { %1480 = vmatpush1.bf16.msra.mxu0 %v5331_v5  ;;  %1521 = vmatpush1.bf16.msra.mxu1 %v5332_v18  ;;  %v5342_v5 = vld [vmem:[#allocation40_spill] sm:$0xff]  ;;  %v5343_v18 = vld [vmem:[#allocation41_spill] sm:$0xff] }
 0x373   :  { %1481 = vmatprep.subr.bf16.mxu0 %v5333_v56  ;;  %1522 = vmatprep.subr.bf16.mxu1 %v5334_v37  ;;  %v5344_v56 = vld [vmem:[#allocation42_spill] sm:$0xff]  ;;  %v5345_v37 = vld [vmem:[#allocation43_spill] sm:$0xff] }
 0x376   :  { %1482 = vmatpush1.bf16.msra.mxu0 %v5335_v51  ;;  %1523 = vmatpush1.bf16.msra.mxu1 %v5336_v58  ;;  %v5346_v51 = vld [vmem:[#allocation44_spill] sm:$0xff]  ;;  %v5347_v58 = vld [vmem:[#allocation45_spill] sm:$0xff] }
 0x377   :  { %1483 = vmatprep.subr.bf16.mxu0 %v5337_v32  ;;  %1524 = vmatprep.subr.bf16.mxu1 %v5338_v27  ;;  %v5348_v32 = vld [vmem:[#allocation46_spill] sm:$0xff]  ;;  %v5349_v27 = vld [vmem:[#allocation47_spill] sm:$0xff] }
 0x37a   :  { %1484 = vmatpush1.bf16.msra.mxu0 %v5339_v26  ;;  %1525 = vmatpush1.bf16.msra.mxu1 %v5340_v17  ;;  %v5350_v26 = vld [vmem:[#allocation48_spill] sm:$0xff] }
 0x37b   :  { %1485 = vmatprep.subr.bf16.mxu0 %v5341_v4  ;;  %1526 = vmatprep.subr.bf16.mxu1 %v5342_v5  ;;  %v5351_v4 = vld [vmem:[#allocation49_spill] sm:$0xff]  ;;  %v5352_v5 = vld [vmem:[#allocation50_spill] sm:$0xff] }
 0x37e   :  { %1486 = vmatpush1.bf16.msra.mxu0 %v5343_v18  ;;  %1527 = vmatpush1.bf16.msra.mxu1 %v5344_v56  ;;  %v5353_v18 = vld [vmem:[#allocation51_spill] sm:$0xff]  ;;  %v5354_v56 = vld [vmem:[#allocation52_spill] sm:$0xff] }
 0x37f   :  { %1487 = vmatprep.subr.bf16.mxu0 %v5345_v37  ;;  %1528 = vmatprep.subr.bf16.mxu1 %v5346_v51  ;;  %v5364_v51 = vld [vmem:[#allocation62_spill] sm:$0xff]  ;;  %v5365_v37 = vld [vmem:[#allocation63_spill] sm:$0xff] }
 0x382   :  { %1488 = vmatpush1.bf16.msra.mxu0 %v5347_v58  ;;  %1529 = vmatpush1.bf16.msra.mxu1 %v5348_v32  ;;  %v5355_v58 = vld [vmem:[#allocation53_spill] sm:$0xff]  ;;  %v5356_v32 = vld [vmem:[#allocation54_spill] sm:$0xff] }
 0x383   :  { %1588 = vmatprep.subr.bf16.mxu0 %v5349_v27  ;;  %1629 = vmatprep.subr.bf16.mxu1 %v5350_v26  ;;  %v5357_v27 = vld [vmem:[#allocation55_spill] sm:$0xff]  ;;  %v5358_v26 = vld [vmem:[#allocation56_spill] sm:$0xff] }
 0x385   :  { %1506 = vmatmul.mubr.bf16.vlgmr.msra.gmra.mrb[28].mxu0 %v1389_v33  ;;  %1547 = vmatmul.mubr.bf16.vlgmr.msra.gmra.mrb[28].mxu1 %v1389_v33  ;;  %v5359_v33 = vld [vmem:[#allocation57_spill] sm:$0xff] }
 0x386   :  { %1589 = vmatpush1.bf16.msra.mxu0 %v5351_v4  ;;  %1630 = vmatpush1.bf16.msra.mxu1 %v5352_v5  ;;  %v5360_v4 = vld [vmem:[#allocation58_spill] sm:$0xff]  ;;  %v5361_v5 = vld [vmem:[#allocation59_spill] sm:$0xff] }
 0x387   :  { %1590 = vmatprep.subr.bf16.mxu0 %v5353_v18  ;;  %1631 = vmatprep.subr.bf16.mxu1 %v5354_v56  ;;  %v5362_v18 = vld [vmem:[#allocation60_spill] sm:$0xff]  ;;  %v5363_v56 = vld [vmem:[#allocation61_spill] sm:$0xff] }
 0x388   :  { %1620 = vmatprep.mubr.bf16.mxu0 %v5200_v13  ;;  %1661 = vmatprep.mubr.bf16.mxu1 %v5200_v13 }
 0x38a   :  { %1591 = vmatpush1.bf16.msra.mxu0 %v5355_v58  ;;  %1632 = vmatpush1.bf16.msra.mxu1 %v5356_v32  ;;  %v5366_v58 = vld [vmem:[#allocation64_spill] sm:$0xff]  ;;  %v5367_v32 = vld [vmem:[#allocation65_spill] sm:$0xff] }
 0x38b   :  { %1592 = vmatprep.subr.bf16.mxu0 %v5357_v27  ;;  %1633 = vmatprep.subr.bf16.mxu1 %v5358_v26  ;;  %v5368_v27 = vld [vmem:[#allocation66_spill] sm:$0xff]  ;;  %v5369_v26 = vld [vmem:[#allocation67_spill] sm:$0xff] }
 0x38e   :  { %1593 = vmatpush1.bf16.msra.mxu0 %v5359_v33  ;;  %1634 = vmatpush1.bf16.msra.mxu1 %v5360_v4  ;;  %v5370_v33 = vld [vmem:[#allocation68_spill] sm:$0xff]  ;;  %v5371_v4 = vld [vmem:[#allocation69_spill] sm:$0xff] }
 0x38f   :  { %1594 = vmatprep.subr.bf16.mxu0 %v5361_v5  ;;  %1635 = vmatprep.subr.bf16.mxu1 %v5362_v18  ;;  %v5372_v5 = vld [vmem:[#allocation70_spill] sm:$0xff]  ;;  %v5373_v18 = vld [vmem:[#allocation71_spill] sm:$0xff] }
 0x392   :  { %1595 = vmatpush1.bf16.msra.mxu0 %v5363_v56  ;;  %1636 = vmatpush1.bf16.msra.mxu1 %v5364_v51  ;;  %v5374_v56 = vld [vmem:[#allocation72_spill] sm:$0xff]  ;;  %v5375_v51 = vld [vmem:[#allocation73_spill] sm:$0xff] }
 0x393   :  { %1596 = vmatprep.subr.bf16.mxu0 %v5365_v37  ;;  %1637 = vmatprep.subr.bf16.mxu1 %v5366_v58  ;;  %v5376_v37 = vld [vmem:[#allocation74_spill] sm:$0xff]  ;;  %v5377_v58 = vld [vmem:[#allocation75_spill] sm:$0xff] }
 0x396   :  { %1597 = vmatpush1.bf16.msra.mxu0 %v5367_v32  ;;  %1638 = vmatpush1.bf16.msra.mxu1 %v5368_v27  ;;  %v5378_v32 = vld [vmem:[#allocation76_spill] sm:$0xff]  ;;  %v5379_v27 = vld [vmem:[#allocation77_spill] sm:$0xff] }
 0x397   :  { %1598 = vmatprep.subr.bf16.mxu0 %v5369_v26  ;;  %1639 = vmatprep.subr.bf16.mxu1 %v5370_v33  ;;  %v5380_v26 = vld [vmem:[#allocation78_spill] sm:$0xff]  ;;  %v5381_v33 = vld [vmem:[#allocation11_spill] sm:$0xff] }
 0x39a   :  { %1599 = vmatpush1.bf16.msra.mxu0 %v5371_v4  ;;  %1640 = vmatpush1.bf16.msra.mxu1 %v5372_v5  ;;  %v5382_v4 = vld [vmem:[#allocation12_spill] sm:$0xff] }
 0x39b   :  { %1600 = vmatprep.subr.bf16.mxu0 %v5373_v18  ;;  %1641 = vmatprep.subr.bf16.mxu1 %v5374_v56 }
 0x39e   :  { %1601 = vmatpush1.bf16.msra.mxu0 %v5375_v51  ;;  %1642 = vmatpush1.bf16.msra.mxu1 %v5376_v37 }
 0x39f   :  { %1602 = vmatprep.subr.bf16.mxu0 %v5377_v58  ;;  %1643 = vmatprep.subr.bf16.mxu1 %v5378_v32 }
 0x3a2   :  { %1603 = vmatpush1.bf16.msra.mxu0 %v5379_v27  ;;  %1644 = vmatpush1.bf16.msra.mxu1 %v5380_v26 }
 0x3a3   :  { %1719 = vmatprep.subr.bf16.mxu0 %v5381_v33  ;;  %1760 = vmatprep.subr.bf16.mxu1 %v5382_v4 }
 0x418   :  { %v1296_v5 = vpop.f32.mrb[20].mxu0  ;;  %v1337_v18 = vpop.f32.mrb[20].mxu1 }
 0x419   :  { %v1298_v17 = vpop.f32.mrb[21].mxu0  ;;  %v1339_v56 = vpop.f32.mrb[21].mxu1 }
 0x41a   :  { %v1300_v35 = vpop.f32.mrb[22].mxu0  ;;  %v1341_v51 = vpop.f32.mrb[22].mxu1 }
 0x41b   :  { %v1301_v41 = vpop.f32.mrb[23].mxu0  ;;  %v1342_v37 = vpop.f32.mrb[23].mxu1  ;;  %v5384_v51 = vld [vmem:[#allocation17_spill] sm:$0xff] }
 0x438   :  { %v1425_v59 = vpop.f32.mrb[24].mxu0  ;;  %v1466_v58 = vpop.f32.mrb[24].mxu1 }
 0x439   :  { %v1674_v34 = vrot.slane %v1425_v59, 5  ;;  %v1427_v32 = vpop.f32.mrb[25].mxu0  ;;  %v1468_v25 = vpop.f32.mrb[25].mxu1  ;;  %v1676_v35 = vrot.slane %v1466_v58, 5  ;;  %v5385_v59 = vld [vmem:[#allocation18_spill] sm:$0xff] }
 0x43a   :  { %v1675_v27 = vrot.slane %v1427_v32, 5  ;;  %v1429_v50 = vpop.f32.mrb[26].mxu0  ;;  %v1470_v26 = vpop.f32.mrb[26].mxu1  ;;  %v1677_v41 = vrot.slane %v1468_v25, 5 }
 0x43b   :  { %v1682_v33 = vadd.f32 %v1674_v34, %v3949_v46  ;;  %v1430_v0 = vpop.f32.mrb[27].mxu0  ;;  %v1471_v4 = vpop.f32.mrb[27].mxu1  ;;  %v1684_v37 = vadd.f32 %v1676_v35, %v5384_v51 }
 0x43c   :  { %v1683_v24 = vadd.f32 %v1675_v27, %v5383_v38  ;;  %v1685_v19 = vadd.f32 %v1677_v41, %v5385_v59 }
 0x43d   :  { %v3272_v42 = vmul.f32 -1.442695, %v1682_v33  ;;  %v3274_v45 = vmul.f32 -1.442695, %v1684_v37 }
 0x43e   :  { %v3273_v14 = vmul.f32 -1.442695, %v1683_v24 }
 0x43f   :  { %3439 = vpow2.f32 %v3272_v42  ;;  %v1706_v42 = vrot.slane %v4298_v15, 7 }
 0x440   :  { %3441 = vpow2.f32 %v3273_v14 }
 0x441   :  { %3443 = vtanh.f32 %v1685_v19 }
 0x442   :  { %3445 = vpow2.f32 %v3274_v45 }
 0x449   :  { %v3440_v32 = vpop.eup %3439 }
 0x44a   :  { %v1695_v50 = vadd.f32 1.0, %v3440_v32  ;;  %v3442_v26 = vpop.eup %3441 }
 0x44b   :  { %v1696_v0 = vadd.f32 1.0, %v3442_v26  ;;  %v3444_v34 = vpop.eup %3443 }
 0x44c   :  { %3447 = vrcp.f32 %v1695_v50  ;;  %v3446_v33 = vpop.eup %3445 }
 0x44d   :  { %3449 = vrcp.f32 %v1696_v0  ;;  %v1697_v4 = vadd.f32 1.0, %v3446_v33 }
 0x44f   :  { %3451 = vrcp.f32 %v1697_v4 }
 0x456   :  { %v3448_v24 = vpop.eup %3447 }
 0x457   :  { %v1709_v14 = vmul.f32 %v3448_v24, %v3444_v34  ;;  %v3450_v25 = vpop.eup %3449 }
 0x458   :  { %v1507_v58 = vpop.f32.mrb[28].mxu0  ;;  %v1548_v27 = vpop.f32.mrb[28].mxu1  ;;  %v1708_v35 = vmul.f32 %v3450_v25, %v1706_v42 }
 0x459   :  { %v1555_v41 = vadd.f32 %v1507_v58, %v1296_v5  ;;  %v1557_v37 = vadd.f32 %v1548_v27, %v1337_v18  ;;  %v1509_v32 = vpop.f32.mrb[29].mxu0  ;;  %v1550_v19 = vpop.f32.mrb[29].mxu1 }
 0x45a   :  { %v1556_v59 = vadd.f32 %v1509_v32, %v1298_v17  ;;  %v1558_v45 = vadd.f32 %v1550_v19, %v1339_v56  ;;  %v1511_v50 = vpop.f32.mrb[30].mxu0  ;;  %v1552_v26 = vpop.f32.mrb[30].mxu1  ;;  %v4416_v0 = vadd.f32 %v1709_v14, %v1708_v35 }
 0x45b   :  { %v1559_v51 = vadd.f32 %v1555_v41, %v4169_v3  ;;  %v1512_v38 = vpop.f32.mrb[31].mxu0  ;;  %v1553_v15 = vpop.f32.mrb[31].mxu1  ;;  %v1561_v17 = vadd.f32 %v1557_v37, %v4181_v57 }
 0x45c   :  { %v1560_v34 = vadd.f32 %v1556_v59, %v4172_v10  ;;  %3453 = vtanh.f32 %v4416_v0  ;;  %v3452_v18 = vpop.eup %3451  ;;  %v1562_v56 = vadd.f32 %v1558_v45, %v4184_v2 }
 0x45d   :  { %v3269_v33 = vmul.f32 -1.442695, %v1559_v51  ;;  %v3271_v42 = vmul.f32 -1.442695, %v1561_v17  ;;  %v5387_v17 = vld [vmem:[#allocation14_spill] sm:$0xff] }
 0x45e   :  { %v3270_v5 = vmul.f32 -1.442695, %v1560_v34 }
 0x45f   :  { %3455 = vpow2.f32 %v3269_v33 }
 0x460   :  { %3457 = vpow2.f32 %v3270_v5  ;;  %v5386_v5 = vld [vmem:[#allocation13_spill] sm:$0xff] }
 0x461   :  { %3459 = vtanh.f32 %v1562_v56  ;;  %v5389_v56 = vld [vmem:[#allocation19_spill] sm:$0xff] }
 0x462   :  { %3461 = vpow2.f32 %v3271_v42  ;;  %v5391_v42 = vld [vmem:[#allocation21_spill] sm:$0xff] }
 0x466   :  { %v3454_v24 = vpop.eup %3453 }
 0x467   :  { %v1712_v14 = vmul.f32 %v3454_v24, %v3452_v18  ;;  %v5388_v18 = vld [vmem:[#allocation15_spill] sm:$0xff]  ;;  %v5390_v24 = vld [vmem:[#allocation20_spill] sm:$0xff] }
 0x469   :  { %v3456_v25 = vpop.eup %3455 }
 0x46a   :  { %v1572_v38 = vadd.f32 1.0, %v3456_v25  ;;  %v3458_v4 = vpop.eup %3457  ;;  %v5393_v25 = vld [vmem:[#allocation23_spill] sm:$0xff] }
 0x46b   :  { %v1573_v59 = vadd.f32 1.0, %v3458_v4  ;;  %v3460_v51 = vpop.eup %3459  ;;  %v5395_v4 = vld [vmem:[#allocation25_spill] sm:$0xff] }
 0x46c   :  { %3463 = vrcp.f32 %v1572_v38  ;;  %v3462_v58 = vpop.eup %3461  ;;  %v5394_v38 = vld [vmem:[#allocation24_spill] sm:$0xff] }
 0x46d   :  { %3465 = vrcp.f32 %v1573_v59  ;;  %v1574_v37 = vadd.f32 1.0, %v3462_v58  ;;  %v5396_v59 = vld [vmem:[#allocation26_spill] sm:$0xff]  ;;  %v5398_v58 = vld [vmem:[#allocation28_spill] sm:$0xff] }
 0x46f   :  { %3467 = vrcp.f32 %v1574_v37  ;;  %v5402_v37 = vld [vmem:[#allocation32_spill] sm:$0xff] }
 0x476   :  { %v3464_v27 = vpop.eup %3463 }
 0x477   :  { %v1583_v35 = vmul.f32 %v3464_v27, %v3460_v51  ;;  %v3466_v41 = vpop.eup %3465  ;;  %v5397_v51 = vld [vmem:[#allocation27_spill] sm:$0xff]  ;;  %v5399_v27 = vld [vmem:[#allocation29_spill] sm:$0xff] }
 0x478   :  { %v1582_v32 = vmul.f32 %v3466_v41, %v4306_v1  ;;  %v1713_v1 = vpack.c.bf16 %v1712_v14, %v1712_v14  ;;  %v5392_v14 = vld [vmem:[#allocation22_spill] sm:$0xff]  ;;  %v5401_v41 = vld [vmem:[#allocation31_spill] sm:$0xff] }
 0x479   :  { %v3468_v45 = vpop.eup %3467 }
 0x47a   :  { %v4424_v19 = vadd.f32 %v1583_v35, %v1582_v32  ;;  %v1715_v34 = vshrl.u32 %v1713_v1, 16  ;;  %v5400_v35 = vld [vmem:[#allocation30_spill] sm:$0xff]  ;;  %v5403_v32 = vld [vmem:[#allocation33_spill] sm:$0xff] }
 0x47b   :  { %v5408_v1 = vld [vmem:[#allocation38_spill] sm:$0xff] }
 0x47c   :  { %3469 = vtanh.f32 %v4424_v19  ;;  %v1717_v33 = vrot.slane %v1715_v34, 1  ;;  %v5409_v34 = vld [vmem:[#allocation39_spill] sm:$0xff] }
 0x486   :  { %v3470_v50 = vpop.eup %3469 }
 0x487   :  { %v1586_v26 = vmul.f32 %v3470_v50, %v3468_v45  ;;  %v5404_v45 = vld [vmem:[#allocation34_spill] sm:$0xff]  ;;  %v5405_v50 = vld [vmem:[#allocation35_spill] sm:$0xff] }
 0x489   :  { %v1587_v15 = vpack.c.bf16 %v1586_v26, %v1586_v26  ;;  %v5406_v26 = vld [vmem:[#allocation36_spill] sm:$0xff] }
 0x48b   :  { %1621 = vmatmul.mubr.bf16.vlgmr.msra.gmra.mrb[32].mxu0 %v1587_v15  ;;  %1662 = vmatmul.mubr.bf16.vlgmr.msra.gmra.mrb[32].mxu1 %v1587_v15  ;;  %v5407_v15 = vld [vmem:[#allocation37_spill] sm:$0xff] }
 0x48c   :  { %1720 = vmatpush1.bf16.msra.mxu0 %v3826_v7  ;;  %1761 = vmatpush1.bf16.msra.mxu1 %v3830_v11 }
 0x48d   :  { %1721 = vmatprep.subr.bf16.mxu0 %v3832_v12  ;;  %1762 = vmatprep.subr.bf16.mxu1 %v3835_v16 }
 0x48e   :  { %1751 = vmatprep.mubr.bf16.mxu0 %v5200_v13  ;;  %1792 = vmatprep.mubr.bf16.mxu1 %v5200_v13 }
 0x490   :  { %1722 = vmatpush1.bf16.msra.mxu0 %v3839_v20  ;;  %1763 = vmatpush1.bf16.msra.mxu1 %v3843_v21 }
 0x491   :  { %1723 = vmatprep.subr.bf16.mxu0 %v3845_v22  ;;  %1764 = vmatprep.subr.bf16.mxu1 %v3848_v23 }
 0x494   :  { %1724 = vmatpush1.bf16.msra.mxu0 %v3851_v28  ;;  %1765 = vmatpush1.bf16.msra.mxu1 %v3855_v29 }
 0x495   :  { %1725 = vmatprep.subr.bf16.mxu0 %v3857_v30  ;;  %1766 = vmatprep.subr.bf16.mxu1 %v3860_v31 }
 0x498   :  { %1726 = vmatpush1.bf16.msra.mxu0 %v3863_v36  ;;  %1767 = vmatpush1.bf16.msra.mxu1 %v3867_v39 }
 0x499   :  { %1727 = vmatprep.subr.bf16.mxu0 %v3869_v40  ;;  %1768 = vmatprep.subr.bf16.mxu1 %v3872_v43 }
 0x49c   :  { %1728 = vmatpush1.bf16.msra.mxu0 %v3875_v44  ;;  %1769 = vmatpush1.bf16.msra.mxu1 %v3879_v47 }
 0x49d   :  { %1729 = vmatprep.subr.bf16.mxu0 %v3881_v48  ;;  %1770 = vmatprep.subr.bf16.mxu1 %v3884_v49 }
 0x4a0   :  { %1730 = vmatpush1.bf16.msra.mxu0 %v3887_v52  ;;  %1771 = vmatpush1.bf16.msra.mxu1 %v3891_v53 }
 0x4a1   :  { %1731 = vmatprep.subr.bf16.mxu0 %v3893_v54  ;;  %1772 = vmatprep.subr.bf16.mxu1 %v3896_v55 }
 0x4a4   :  { %1732 = vmatpush1.bf16.msra.mxu0 %v3899_v60  ;;  %1773 = vmatpush1.bf16.msra.mxu1 %v3903_v61 }
 0x4a5   :  { %1733 = vmatprep.subr.bf16.mxu0 %v3905_v62  ;;  %1774 = vmatprep.subr.bf16.mxu1 %v3908_v63 }
 0x4a8   :  { %1734 = vmatpush1.bf16.msra.mxu0 %v3911_v6  ;;  %1775 = vmatpush1.bf16.msra.mxu1 %v3915_v8 }
 0x4a9   :  { %1801 = vmatprep.subr.bf16.mxu0 %v3917_v9  ;;  %1842 = vmatprep.subr.bf16.mxu1 %v5386_v5 }
 0x4ab   :  { %1752 = vmatmul.mubr.bf16.vlgmr.msra.gmra.mrb[36].mxu0 %v1717_v33  ;;  %1793 = vmatmul.mubr.bf16.vlgmr.msra.gmra.mrb[36].mxu1 %v1717_v33 }
 0x4ac   :  { %1802 = vmatpush1.bf16.msra.mxu0 %v5387_v17  ;;  %1843 = vmatpush1.bf16.msra.mxu1 %v5388_v18 }
 0x4ad   :  { %1803 = vmatprep.subr.bf16.mxu0 %v5389_v56  ;;  %1844 = vmatprep.subr.bf16.mxu1 %v5390_v24 }
 0x4ae   :  { %1833 = vmatprep.mubr.bf16.mxu0 %v5200_v13  ;;  %1874 = vmatprep.mubr.bf16.mxu1 %v5200_v13 }
 0x4b0   :  { %1804 = vmatpush1.bf16.msra.mxu0 %v5391_v42  ;;  %1845 = vmatpush1.bf16.msra.mxu1 %v5392_v14  ;;  %v5451_v42 = vld [vmem:[#allocation16_spill] sm:$0xff] }
 0x4b1   :  { %1805 = vmatprep.subr.bf16.mxu0 %v5393_v25  ;;  %1846 = vmatprep.subr.bf16.mxu1 %v5394_v38 }
 0x4b4   :  { %1806 = vmatpush1.bf16.msra.mxu0 %v5395_v4  ;;  %1847 = vmatpush1.bf16.msra.mxu1 %v5396_v59 }
 0x4b5   :  { %1807 = vmatprep.subr.bf16.mxu0 %v5397_v51  ;;  %1848 = vmatprep.subr.bf16.mxu1 %v5398_v58 }
 0x4b8   :  { %1808 = vmatpush1.bf16.msra.mxu0 %v5399_v27  ;;  %1849 = vmatpush1.bf16.msra.mxu1 %v5400_v35  ;;  %v5410_v27 = vld [vmem:[#allocation40_spill] sm:$0xff]  ;;  %v5411_v35 = vld [vmem:[#allocation41_spill] sm:$0xff] }
 0x4b9   :  { %1809 = vmatprep.subr.bf16.mxu0 %v5401_v41  ;;  %1850 = vmatprep.subr.bf16.mxu1 %v5402_v37  ;;  %v5412_v41 = vld [vmem:[#allocation42_spill] sm:$0xff]  ;;  %v5413_v37 = vld [vmem:[#allocation43_spill] sm:$0xff] }
 0x4bc   :  { %1810 = vmatpush1.bf16.msra.mxu0 %v5403_v32  ;;  %1851 = vmatpush1.bf16.msra.mxu1 %v5404_v45  ;;  %v5414_v32 = vld [vmem:[#allocation44_spill] sm:$0xff]  ;;  %v5415_v45 = vld [vmem:[#allocation45_spill] sm:$0xff] }
 0x4bd   :  { %1811 = vmatprep.subr.bf16.mxu0 %v5405_v50  ;;  %1852 = vmatprep.subr.bf16.mxu1 %v5406_v26  ;;  %v5416_v50 = vld [vmem:[#allocation46_spill] sm:$0xff]  ;;  %v4493_v26 = vld [vmem:[#allocation5 + $0x4] ss:$16 sps:$4 sm:$0xff]  }
 0x4be   :  { %5417 = vst [vmem:[#allocation47_spill] sm:$0xff] %v4493_v26 }
 0x4c0   :  { %1812 = vmatpush1.bf16.msra.mxu0 %v5407_v15  ;;  %1853 = vmatpush1.bf16.msra.mxu1 %v5408_v1  ;;  %v4496_v1 = vld [vmem:[#allocation5 + $0xc] ss:$16 sps:$4 sm:$0xff]  }
 0x4c1   :  { %1813 = vmatprep.subr.bf16.mxu0 %v5409_v34  ;;  %1854 = vmatprep.subr.bf16.mxu1 %v5410_v27  ;;  %5418 = vst [vmem:[#allocation48_spill] sm:$0xff] %v4496_v1 }
 0x4c4   :  { %1814 = vmatpush1.bf16.msra.mxu0 %v5411_v35  ;;  %1855 = vmatpush1.bf16.msra.mxu1 %v5412_v41  ;;  %v4499_v35 = vld [vmem:[#allocation5] ss:$16 sps:$4 sm:$0xff]  }
 0x4c5   :  { %1815 = vmatprep.subr.bf16.mxu0 %v5413_v37  ;;  %1856 = vmatprep.subr.bf16.mxu1 %v5414_v32  ;;  %5419 = vst [vmem:[#allocation49_spill] sm:$0xff] %v4499_v35  ;;  %v4502_v37 = vld [vmem:[#allocation5 + $0x8] ss:$16 sps:$4 sm:$0xff]  }
 0x4c6   :  { %5420 = vst [vmem:[#allocation50_spill] sm:$0xff] %v4502_v37 }
 0x4c8   :  { %1816 = vmatpush1.bf16.msra.mxu0 %v5415_v45  ;;  %1857 = vmatpush1.bf16.msra.mxu1 %v5416_v50  ;;  %v4505_v45 = vld [vmem:[#allocation5 + $0x24] ss:$16 sps:$4 sm:$0xff]   ;;  %v4508_v50 = vld [vmem:[#allocation5 + $0x2c] ss:$16 sps:$4 sm:$0xff]  }
 0x4c9   :  { %1916 = vmatprep.subr.bf16.mxu0 %v4493_v26  ;;  %1957 = vmatprep.subr.bf16.mxu1 %v4496_v1  ;;  %5421 = vst [vmem:[#allocation51_spill] sm:$0xff] %v4505_v45  ;;  %5422 = vst [vmem:[#allocation52_spill] sm:$0xff] %v4508_v50  ;;  %v4528_v1 = vld [vmem:[#allocation5 + $0x48] ss:$16 sps:$4 sm:$0xff]  }
 0x4ca   :  { %5428 = vst [vmem:[#allocation58_spill] sm:$0xff] %v4528_v1  ;;  %v5450_v26 = vld [vmem:[#allocation12_spill] sm:$0xff] }
 0x4cb   :  { %1834 = vmatmul.mubr.bf16.vlgmr.msra.gmra.mrb[40].mxu0 %v1717_v33  ;;  %1875 = vmatmul.mubr.bf16.vlgmr.msra.gmra.mrb[40].mxu1 %v1717_v33  ;;  %v4513_v33 = vld [vmem:[#allocation5 + $0x20] ss:$16 sps:$4 sm:$0xff]  }
 0x4cc   :  { %1917 = vmatpush1.bf16.msra.mxu0 %v4499_v35  ;;  %1958 = vmatpush1.bf16.msra.mxu1 %v4502_v37  ;;  %5423 = vst [vmem:[#allocation53_spill] sm:$0xff] %v4513_v33  ;;  %v4516_v35 = vld [vmem:[#allocation5 + $0x28] ss:$16 sps:$4 sm:$0xff]   ;;  %v4519_v37 = vld [vmem:[#allocation5 + $0x44] ss:$16 sps:$4 sm:$0xff]  }
 0x4cd   :  { %1918 = vmatprep.subr.bf16.mxu0 %v4505_v45  ;;  %1959 = vmatprep.subr.bf16.mxu1 %v4508_v50  ;;  %5424 = vst [vmem:[#allocation54_spill] sm:$0xff] %v4516_v35  ;;  %5425 = vst [vmem:[#allocation55_spill] sm:$0xff] %v4519_v37  ;;  %v4522_v45 = vld [vmem:[#allocation5 + $0x4c] ss:$16 sps:$4 sm:$0xff]   ;;  %v4525_v50 = vld [vmem:[#allocation5 + $0x40] ss:$16 sps:$4 sm:$0xff]  }
 0x4ce   :  { %1948 = vmatprep.mubr.bf16.mxu0 %v5200_v13  ;;  %1989 = vmatprep.mubr.bf16.mxu1 %v5200_v13  ;;  %5426 = vst [vmem:[#allocation56_spill] sm:$0xff] %v4522_v45  ;;  %5427 = vst [vmem:[#allocation57_spill] sm:$0xff] %v4525_v50 }
 0x4d0   :  { %1919 = vmatpush1.bf16.msra.mxu0 %v4513_v33  ;;  %1960 = vmatpush1.bf16.msra.mxu1 %v4516_v35  ;;  %v4531_v33 = vld [vmem:[#allocation5 + $0x64] ss:$16 sps:$4 sm:$0xff]   ;;  %v4534_v35 = vld [vmem:[#allocation5 + $0x6c] ss:$16 sps:$4 sm:$0xff]  }
 0x4d1   :  { %1920 = vmatprep.subr.bf16.mxu0 %v4519_v37  ;;  %1961 = vmatprep.subr.bf16.mxu1 %v4522_v45  ;;  %5429 = vst [vmem:[#allocation59_spill] sm:$0xff] %v4531_v33  ;;  %5430 = vst [vmem:[#allocation60_spill] sm:$0xff] %v4534_v35  ;;  %v4537_v37 = vld [vmem:[#allocation5 + $0x60] ss:$16 sps:$4 sm:$0xff]   ;;  %v4540_v45 = vld [vmem:[#allocation5 + $0x68] ss:$16 sps:$4 sm:$0xff]  }
 0x4d2   :  { %5431 = vst [vmem:[#allocation61_spill] sm:$0xff] %v4537_v37  ;;  %5432 = vst [vmem:[#allocation62_spill] sm:$0xff] %v4540_v45 }
 0x4d4   :  { %1921 = vmatpush1.bf16.msra.mxu0 %v4525_v50  ;;  %1962 = vmatpush1.bf16.msra.mxu1 %v4528_v1  ;;  %v4543_v50 = vld [vmem:[#allocation5 + $0x84] ss:$16 sps:$4 sm:$0xff]   ;;  %v4546_v1 = vld [vmem:[#allocation5 + $0x8c] ss:$16 sps:$4 sm:$0xff]  }
 0x4d5   :  { %1922 = vmatprep.subr.bf16.mxu0 %v4531_v33  ;;  %1963 = vmatprep.subr.bf16.mxu1 %v4534_v35  ;;  %5433 = vst [vmem:[#allocation63_spill] sm:$0xff] %v4543_v50  ;;  %5434 = vst [vmem:[#allocation64_spill] sm:$0xff] %v4546_v1  ;;  %v4549_v33 = vld [vmem:[#allocation5 + $0x80] ss:$16 sps:$4 sm:$0xff]   ;;  %v4552_v35 = vld [vmem:[#allocation5 + $0x88] ss:$16 sps:$4 sm:$0xff]  }
 0x4d6   :  { %5435 = vst [vmem:[#allocation65_spill] sm:$0xff] %v4549_v33  ;;  %5436 = vst [vmem:[#allocation66_spill] sm:$0xff] %v4552_v35 }
 0x4d8   :  { %1923 = vmatpush1.bf16.msra.mxu0 %v4537_v37  ;;  %1964 = vmatpush1.bf16.msra.mxu1 %v4540_v45  ;;  %v4555_v37 = vld [vmem:[#allocation5 + $0xa4] ss:$16 sps:$4 sm:$0xff]   ;;  %v4558_v45 = vld [vmem:[#allocation5 + $0xac] ss:$16 sps:$4 sm:$0xff]  }
 0x4d9   :  { %1924 = vmatprep.subr.bf16.mxu0 %v4543_v50  ;;  %1965 = vmatprep.subr.bf16.mxu1 %v4546_v1  ;;  %5437 = vst [vmem:[#allocation67_spill] sm:$0xff] %v4555_v37  ;;  %5438 = vst [vmem:[#allocation68_spill] sm:$0xff] %v4558_v45  ;;  %v4561_v50 = vld [vmem:[#allocation5 + $0xa0] ss:$16 sps:$4 sm:$0xff]   ;;  %v4564_v1 = vld [vmem:[#allocation5 + $0xa8] ss:$16 sps:$4 sm:$0xff]  }
 0x4da   :  { %5439 = vst [vmem:[#allocation69_spill] sm:$0xff] %v4561_v50  ;;  %5440 = vst [vmem:[#allocation70_spill] sm:$0xff] %v4564_v1 }
 0x4dc   :  { %1925 = vmatpush1.bf16.msra.mxu0 %v4549_v33  ;;  %1966 = vmatpush1.bf16.msra.mxu1 %v4552_v35  ;;  %v4567_v33 = vld [vmem:[#allocation5 + $0xc4] ss:$16 sps:$4 sm:$0xff]   ;;  %v4570_v35 = vld [vmem:[#allocation5 + $0xcc] ss:$16 sps:$4 sm:$0xff]  }
 0x4dd   :  { %1926 = vmatprep.subr.bf16.mxu0 %v4555_v37  ;;  %1967 = vmatprep.subr.bf16.mxu1 %v4558_v45  ;;  %5441 = vst [vmem:[#allocation71_spill] sm:$0xff] %v4567_v33  ;;  %5442 = vst [vmem:[#allocation72_spill] sm:$0xff] %v4570_v35  ;;  %v4573_v37 = vld [vmem:[#allocation5 + $0xc0] ss:$16 sps:$4 sm:$0xff]   ;;  %v4576_v45 = vld [vmem:[#allocation5 + $0xc8] ss:$16 sps:$4 sm:$0xff]  }
 0x4de   :  { %5443 = vst [vmem:[#allocation73_spill] sm:$0xff] %v4573_v37  ;;  %5444 = vst [vmem:[#allocation74_spill] sm:$0xff] %v4576_v45 }
 0x4e0   :  { %1927 = vmatpush1.bf16.msra.mxu0 %v4561_v50  ;;  %1968 = vmatpush1.bf16.msra.mxu1 %v4564_v1  ;;  %v4579_v50 = vld [vmem:[#allocation5 + $0xe4] ss:$16 sps:$4 sm:$0xff]   ;;  %v4582_v1 = vld [vmem:[#allocation5 + $0xec] ss:$16 sps:$4 sm:$0xff]  }
 0x4e1   :  { %1928 = vmatprep.subr.bf16.mxu0 %v4567_v33  ;;  %1969 = vmatprep.subr.bf16.mxu1 %v4570_v35  ;;  %5445 = vst [vmem:[#allocation75_spill] sm:$0xff] %v4579_v50  ;;  %5446 = vst [vmem:[#allocation76_spill] sm:$0xff] %v4582_v1  ;;  %v4585_v33 = vld [vmem:[#allocation5 + $0xe0] ss:$16 sps:$4 sm:$0xff]   ;;  %v4588_v35 = vld [vmem:[#allocation5 + $0xe8] ss:$16 sps:$4 sm:$0xff]  }
 0x4e2   :  { %5447 = vst [vmem:[#allocation77_spill] sm:$0xff] %v4585_v33  ;;  %5448 = vst [vmem:[#allocation78_spill] sm:$0xff] %v4588_v35 }
 0x4e4   :  { %1929 = vmatpush1.bf16.msra.mxu0 %v4573_v37  ;;  %1970 = vmatpush1.bf16.msra.mxu1 %v4576_v45  ;;  %v5449_v37 = vld [vmem:[#allocation11_spill] sm:$0xff] }
 0x4e5   :  { %1930 = vmatprep.subr.bf16.mxu0 %v4579_v50  ;;  %1971 = vmatprep.subr.bf16.mxu1 %v4582_v1 }
 0x4e8   :  { %1931 = vmatpush1.bf16.msra.mxu0 %v4585_v33  ;;  %1972 = vmatpush1.bf16.msra.mxu1 %v4588_v35 }
 0x4e9   :  { %2045 = vmatprep.subr.bf16.mxu0 %v5449_v37  ;;  %2086 = vmatprep.subr.bf16.mxu1 %v5450_v26 }
 0x55e   :  { %v1622_v45 = vpop.f32.mrb[32].mxu0  ;;  %v1663_v32 = vpop.f32.mrb[32].mxu1 }
 0x55f   :  { %v1624_v41 = vpop.f32.mrb[33].mxu0  ;;  %v1665_v50 = vpop.f32.mrb[33].mxu1 }
 0x560   :  { %v1626_v27 = vpop.f32.mrb[34].mxu0  ;;  %v1667_v34 = vpop.f32.mrb[34].mxu1 }
 0x561   :  { %v1627_v15 = vpop.f32.mrb[35].mxu0  ;;  %v1668_v1 = vpop.f32.mrb[35].mxu1 }
 0x562   :  { %v5452_v1 = vld [vmem:[#allocation17_spill] sm:$0xff] }
 0x57e   :  { %v1753_v58 = vpop.f32.mrb[36].mxu0  ;;  %v1794_v51 = vpop.f32.mrb[36].mxu1 }
 0x57f   :  { %v2002_v59 = vrot.slane %v1753_v58, 4  ;;  %v1755_v33 = vpop.f32.mrb[37].mxu0  ;;  %v1796_v4 = vpop.f32.mrb[37].mxu1  ;;  %v2004_v27 = vrot.slane %v1794_v51, 4  ;;  %v5453_v58 = vld [vmem:[#allocation18_spill] sm:$0xff] }
 0x580   :  { %v2003_v38 = vrot.slane %v1755_v33, 4  ;;  %v1757_v25 = vpop.f32.mrb[38].mxu0  ;;  %v1798_v35 = vpop.f32.mrb[38].mxu1  ;;  %v2005_v15 = vrot.slane %v1796_v4, 4 }
 0x581   :  { %v2010_v37 = vadd.f32 %v2002_v59, %v3949_v46  ;;  %v1758_v14 = vpop.f32.mrb[39].mxu0  ;;  %v1799_v26 = vpop.f32.mrb[39].mxu1  ;;  %v2012_v34 = vadd.f32 %v2004_v27, %v5452_v1 }
 0x582   :  { %v2011_v24 = vadd.f32 %v2003_v38, %v5451_v42  ;;  %v2013_v17 = vadd.f32 %v2005_v15, %v5453_v58 }
 0x583   :  { %v3278_v56 = vmul.f32 -1.442695, %v2010_v37  ;;  %v3280_v5 = vmul.f32 -1.442695, %v2012_v34 }
 0x584   :  { %v3279_v18 = vmul.f32 -1.442695, %v2011_v24 }
 0x585   :  { %3471 = vpow2.f32 %v3278_v56  ;;  %v2034_v56 = vrot.slane %v4416_v0, 7 }
 0x586   :  { %3473 = vpow2.f32 %v3279_v18 }
 0x587   :  { %3475 = vtanh.f32 %v2013_v17 }
 0x588   :  { %3477 = vpow2.f32 %v3280_v5 }
 0x58f   :  { %v3472_v33 = vpop.eup %3471 }
 0x590   :  { %v2023_v25 = vadd.f32 1.0, %v3472_v33  ;;  %v3474_v35 = vpop.eup %3473 }
 0x591   :  { %v2024_v14 = vadd.f32 1.0, %v3474_v35  ;;  %v3476_v38 = vpop.eup %3475 }
 0x592   :  { %3479 = vrcp.f32 %v2023_v25  ;;  %v3478_v59 = vpop.eup %3477 }
 0x593   :  { %3481 = vrcp.f32 %v2024_v14  ;;  %v2025_v51 = vadd.f32 1.0, %v3478_v59 }
 0x595   :  { %3483 = vrcp.f32 %v2025_v51 }
 0x59c   :  { %v3480_v24 = vpop.eup %3479 }
 0x59d   :  { %v2037_v18 = vmul.f32 %v3480_v24, %v3476_v38  ;;  %v3482_v4 = vpop.eup %3481 }
 0x59e   :  { %v1835_v37 = vpop.f32.mrb[40].mxu0  ;;  %v1876_v26 = vpop.f32.mrb[40].mxu1  ;;  %v2036_v27 = vmul.f32 %v3482_v4, %v2034_v56 }
 0x59f   :  { %v1883_v15 = vadd.f32 %v1835_v37, %v1622_v45  ;;  %v1885_v34 = vadd.f32 %v1876_v26, %v1663_v32  ;;  %v1837_v33 = vpop.f32.mrb[41].mxu0  ;;  %v1878_v17 = vpop.f32.mrb[41].mxu1 }
 0x5a0   :  { %v1884_v58 = vadd.f32 %v1837_v33, %v1624_v41  ;;  %v1886_v5 = vadd.f32 %v1878_v17, %v1665_v50  ;;  %v1839_v25 = vpop.f32.mrb[42].mxu0  ;;  %v1880_v35 = vpop.f32.mrb[42].mxu1  ;;  %v4598_v14 = vadd.f32 %v2037_v18, %v2036_v27 }
 0x5a1   :  { %v1887_v1 = vadd.f32 %v1883_v15, %v4169_v3  ;;  %v1840_v42 = vpop.f32.mrb[43].mxu0  ;;  %v1881_v0 = vpop.f32.mrb[43].mxu1  ;;  %v1889_v41 = vadd.f32 %v1885_v34, %v4181_v57 }
 0x5a2   :  { %v1888_v38 = vadd.f32 %v1884_v58, %v4172_v10  ;;  %3485 = vtanh.f32 %v4598_v14  ;;  %v3484_v32 = vpop.eup %3483  ;;  %v1890_v50 = vadd.f32 %v1886_v5, %v4184_v2 }
 0x5a3   :  { %v3275_v59 = vmul.f32 -1.442695, %v1887_v1  ;;  %v3277_v56 = vmul.f32 -1.442695, %v1889_v41  ;;  %v5456_v41 = vld [vmem:[#allocation15_spill] sm:$0xff] }
 0x5a4   :  { %v3276_v45 = vmul.f32 -1.442695, %v1888_v38 }
 0x5a5   :  { %3487 = vpow2.f32 %v3275_v59  ;;  %v5454_v59 = vld [vmem:[#allocation13_spill] sm:$0xff] }
 0x5a6   :  { %3489 = vpow2.f32 %v3276_v45  ;;  %v5455_v45 = vld [vmem:[#allocation14_spill] sm:$0xff] }
 0x5a7   :  { %3491 = vtanh.f32 %v1890_v50  ;;  %v5458_v50 = vld [vmem:[#allocation20_spill] sm:$0xff] }
 0x5a8   :  { %3493 = vpow2.f32 %v3277_v56  ;;  %v5460_v56 = vld [vmem:[#allocation22_spill] sm:$0xff] }
 0x5ac   :  { %v3486_v24 = vpop.eup %3485 }
 0x5ad   :  { %v2040_v18 = vmul.f32 %v3486_v24, %v3484_v32  ;;  %v5457_v32 = vld [vmem:[#allocation19_spill] sm:$0xff]  ;;  %v5459_v24 = vld [vmem:[#allocation21_spill] sm:$0xff] }
 0x5af   :  { %v3488_v4 = vpop.eup %3487 }
 0x5b0   :  { %v1900_v42 = vadd.f32 1.0, %v3488_v4  ;;  %v3490_v51 = vpop.eup %3489  ;;  %v5462_v4 = vld [vmem:[#allocation24_spill] sm:$0xff] }
 0x5b1   :  { %v1901_v58 = vadd.f32 1.0, %v3490_v51  ;;  %v3492_v1 = vpop.eup %3491  ;;  %v5464_v51 = vld [vmem:[#allocation26_spill] sm:$0xff] }
 0x5b2   :  { %3495 = vrcp.f32 %v1900_v42  ;;  %v3494_v37 = vpop.eup %3493  ;;  %v5463_v42 = vld [vmem:[#allocation25_spill] sm:$0xff] }
 0x5b3   :  { %3497 = vrcp.f32 %v1901_v58  ;;  %v1902_v34 = vadd.f32 1.0, %v3494_v37  ;;  %v5465_v58 = vld [vmem:[#allocation27_spill] sm:$0xff]  ;;  %v5467_v37 = vld [vmem:[#allocation29_spill] sm:$0xff] }
 0x5b5   :  { %3499 = vrcp.f32 %v1902_v34  ;;  %v5471_v34 = vld [vmem:[#allocation33_spill] sm:$0xff] }
 0x5bc   :  { %v3496_v26 = vpop.eup %3495 }
 0x5bd   :  { %v1911_v27 = vmul.f32 %v3496_v26, %v3492_v1  ;;  %v3498_v15 = vpop.eup %3497  ;;  %v5466_v1 = vld [vmem:[#allocation28_spill] sm:$0xff]  ;;  %v5468_v26 = vld [vmem:[#allocation30_spill] sm:$0xff] }
 0x5be   :  { %v1910_v33 = vmul.f32 %v3498_v15, %v4424_v19  ;;  %v2041_v19 = vpack.c.bf16 %v2040_v18, %v2040_v18  ;;  %v5461_v18 = vld [vmem:[#allocation23_spill] sm:$0xff]  ;;  %v5470_v15 = vld [vmem:[#allocation32_spill] sm:$0xff] }
 0x5bf   :  { %v3500_v5 = vpop.eup %3499 }
 0x5c0   :  { %v4606_v17 = vadd.f32 %v1911_v27, %v1910_v33  ;;  %v2043_v38 = vrot.slane %v2041_v19, 2  ;;  %v5469_v27 = vld [vmem:[#allocation31_spill] sm:$0xff]  ;;  %v5472_v33 = vld [vmem:[#allocation34_spill] sm:$0xff] }
 0x5c1   :  { %v5477_v19 = vld [vmem:[#allocation39_spill] sm:$0xff] }
 0x5c2   :  { %3501 = vtanh.f32 %v4606_v17 }
 0x5cc   :  { %v3502_v25 = vpop.eup %3501 }
 0x5cd   :  { %v1914_v35 = vmul.f32 %v3502_v25, %v3500_v5  ;;  %v5473_v5 = vld [vmem:[#allocation35_spill] sm:$0xff]  ;;  %v5474_v25 = vld [vmem:[#allocation36_spill] sm:$0xff] }
 0x5cf   :  { %v1915_v0 = vpack.c.bf16 %v1914_v35, %v1914_v35  ;;  %v5475_v35 = vld [vmem:[#allocation37_spill] sm:$0xff] }
 0x5d1   :  { %1949 = vmatmul.mubr.bf16.vlgmr.msra.gmra.mrb[44].mxu0 %v1915_v0  ;;  %1990 = vmatmul.mubr.bf16.vlgmr.msra.gmra.mrb[44].mxu1 %v1915_v0  ;;  %v5476_v0 = vld [vmem:[#allocation38_spill] sm:$0xff] }
 0x5d2   :  { %2046 = vmatpush1.bf16.msra.mxu0 %v3826_v7  ;;  %2087 = vmatpush1.bf16.msra.mxu1 %v3830_v11 }
 0x5d3   :  { %2047 = vmatprep.subr.bf16.mxu0 %v3832_v12  ;;  %2088 = vmatprep.subr.bf16.mxu1 %v3835_v16 }
 0x5d4   :  { %2077 = vmatprep.mubr.bf16.mxu0 %v5200_v13  ;;  %2118 = vmatprep.mubr.bf16.mxu1 %v5200_v13 }
 0x5d6   :  { %2048 = vmatpush1.bf16.msra.mxu0 %v3839_v20  ;;  %2089 = vmatpush1.bf16.msra.mxu1 %v3843_v21 }
 0x5d7   :  { %2049 = vmatprep.subr.bf16.mxu0 %v3845_v22  ;;  %2090 = vmatprep.subr.bf16.mxu1 %v3848_v23 }
 0x5da   :  { %2050 = vmatpush1.bf16.msra.mxu0 %v3851_v28  ;;  %2091 = vmatpush1.bf16.msra.mxu1 %v3855_v29 }
 0x5db   :  { %2051 = vmatprep.subr.bf16.mxu0 %v3857_v30  ;;  %2092 = vmatprep.subr.bf16.mxu1 %v3860_v31 }
 0x5de   :  { %2052 = vmatpush1.bf16.msra.mxu0 %v3863_v36  ;;  %2093 = vmatpush1.bf16.msra.mxu1 %v3867_v39 }
 0x5df   :  { %2053 = vmatprep.subr.bf16.mxu0 %v3869_v40  ;;  %2094 = vmatprep.subr.bf16.mxu1 %v3872_v43 }
 0x5e2   :  { %2054 = vmatpush1.bf16.msra.mxu0 %v3875_v44  ;;  %2095 = vmatpush1.bf16.msra.mxu1 %v3879_v47 }
 0x5e3   :  { %2055 = vmatprep.subr.bf16.mxu0 %v3881_v48  ;;  %2096 = vmatprep.subr.bf16.mxu1 %v3884_v49 }
 0x5e6   :  { %2056 = vmatpush1.bf16.msra.mxu0 %v3887_v52  ;;  %2097 = vmatpush1.bf16.msra.mxu1 %v3891_v53 }
 0x5e7   :  { %2057 = vmatprep.subr.bf16.mxu0 %v3893_v54  ;;  %2098 = vmatprep.subr.bf16.mxu1 %v3896_v55 }
 0x5ea   :  { %2058 = vmatpush1.bf16.msra.mxu0 %v3899_v60  ;;  %2099 = vmatpush1.bf16.msra.mxu1 %v3903_v61 }
 0x5eb   :  { %2059 = vmatprep.subr.bf16.mxu0 %v3905_v62  ;;  %2100 = vmatprep.subr.bf16.mxu1 %v3908_v63 }
 0x5ee   :  { %2060 = vmatpush1.bf16.msra.mxu0 %v3911_v6  ;;  %2101 = vmatpush1.bf16.msra.mxu1 %v3915_v8 }
 0x5ef   :  { %2127 = vmatprep.subr.bf16.mxu0 %v3917_v9  ;;  %2168 = vmatprep.subr.bf16.mxu1 %v5454_v59 }
 0x5f1   :  { %2078 = vmatmul.mubr.bf16.vlgmr.msra.gmra.mrb[48].mxu0 %v2043_v38  ;;  %2119 = vmatmul.mubr.bf16.vlgmr.msra.gmra.mrb[48].mxu1 %v2043_v38 }
 0x5f2   :  { %2128 = vmatpush1.bf16.msra.mxu0 %v5455_v45  ;;  %2169 = vmatpush1.bf16.msra.mxu1 %v5456_v41 }
 0x5f3   :  { %2129 = vmatprep.subr.bf16.mxu0 %v5457_v32  ;;  %2170 = vmatprep.subr.bf16.mxu1 %v5458_v50 }
 0x5f4   :  { %2159 = vmatprep.mubr.bf16.mxu0 %v5200_v13  ;;  %2200 = vmatprep.mubr.bf16.mxu1 %v5200_v13 }
 0x5f6   :  { %2130 = vmatpush1.bf16.msra.mxu0 %v5459_v24  ;;  %2171 = vmatpush1.bf16.msra.mxu1 %v5460_v56  ;;  %v5519_v24 = vld [vmem:[#allocation16_spill] sm:$0xff] }
 0x5f7   :  { %2131 = vmatprep.subr.bf16.mxu0 %v5461_v18  ;;  %2172 = vmatprep.subr.bf16.mxu1 %v5462_v4 }
 0x5fa   :  { %2132 = vmatpush1.bf16.msra.mxu0 %v5463_v42  ;;  %2173 = vmatpush1.bf16.msra.mxu1 %v5464_v51 }
 0x5fb   :  { %2133 = vmatprep.subr.bf16.mxu0 %v5465_v58  ;;  %2174 = vmatprep.subr.bf16.mxu1 %v5466_v1 }
 0x5fe   :  { %2134 = vmatpush1.bf16.msra.mxu0 %v5467_v37  ;;  %2175 = vmatpush1.bf16.msra.mxu1 %v5468_v26  ;;  %v5478_v37 = vld [vmem:[#allocation40_spill] sm:$0xff]  ;;  %v5479_v26 = vld [vmem:[#allocation41_spill] sm:$0xff] }
 0x5ff   :  { %2135 = vmatprep.subr.bf16.mxu0 %v5469_v27  ;;  %2176 = vmatprep.subr.bf16.mxu1 %v5470_v15  ;;  %v5480_v27 = vld [vmem:[#allocation42_spill] sm:$0xff]  ;;  %v5481_v15 = vld [vmem:[#allocation43_spill] sm:$0xff] }
 0x602   :  { %2136 = vmatpush1.bf16.msra.mxu0 %v5471_v34  ;;  %2177 = vmatpush1.bf16.msra.mxu1 %v5472_v33  ;;  %v5482_v34 = vld [vmem:[#allocation44_spill] sm:$0xff]  ;;  %v5483_v33 = vld [vmem:[#allocation45_spill] sm:$0xff] }
 0x603   :  { %2137 = vmatprep.subr.bf16.mxu0 %v5473_v5  ;;  %2178 = vmatprep.subr.bf16.mxu1 %v5474_v25  ;;  %v5484_v5 = vld [vmem:[#allocation46_spill] sm:$0xff]  ;;  %v5485_v25 = vld [vmem:[#allocation47_spill] sm:$0xff] }
 0x606   :  { %2138 = vmatpush1.bf16.msra.mxu0 %v5475_v35  ;;  %2179 = vmatpush1.bf16.msra.mxu1 %v5476_v0  ;;  %v5486_v35 = vld [vmem:[#allocation48_spill] sm:$0xff] }
 0x607   :  { %2139 = vmatprep.subr.bf16.mxu0 %v5477_v19  ;;  %2180 = vmatprep.subr.bf16.mxu1 %v5478_v37  ;;  %v5487_v19 = vld [vmem:[#allocation49_spill] sm:$0xff]  ;;  %v5488_v37 = vld [vmem:[#allocation50_spill] sm:$0xff] }
 0x60a   :  { %2140 = vmatpush1.bf16.msra.mxu0 %v5479_v26  ;;  %2181 = vmatpush1.bf16.msra.mxu1 %v5480_v27  ;;  %v5489_v26 = vld [vmem:[#allocation51_spill] sm:$0xff]  ;;  %v5490_v27 = vld [vmem:[#allocation52_spill] sm:$0xff] }
 0x60b   :  { %2141 = vmatprep.subr.bf16.mxu0 %v5481_v15  ;;  %2182 = vmatprep.subr.bf16.mxu1 %v5482_v34  ;;  %v5500_v34 = vld [vmem:[#allocation62_spill] sm:$0xff]  ;;  %v5501_v15 = vld [vmem:[#allocation63_spill] sm:$0xff] }
 0x60e   :  { %2142 = vmatpush1.bf16.msra.mxu0 %v5483_v33  ;;  %2183 = vmatpush1.bf16.msra.mxu1 %v5484_v5  ;;  %v5491_v33 = vld [vmem:[#allocation53_spill] sm:$0xff]  ;;  %v5492_v5 = vld [vmem:[#allocation54_spill] sm:$0xff] }
 0x60f   :  { %2242 = vmatprep.subr.bf16.mxu0 %v5485_v25  ;;  %2283 = vmatprep.subr.bf16.mxu1 %v5486_v35  ;;  %v5493_v25 = vld [vmem:[#allocation55_spill] sm:$0xff]  ;;  %v5494_v35 = vld [vmem:[#allocation56_spill] sm:$0xff] }
 0x611   :  { %2160 = vmatmul.mubr.bf16.vlgmr.msra.gmra.mrb[52].mxu0 %v2043_v38  ;;  %2201 = vmatmul.mubr.bf16.vlgmr.msra.gmra.mrb[52].mxu1 %v2043_v38  ;;  %v5495_v38 = vld [vmem:[#allocation57_spill] sm:$0xff] }
 0x612   :  { %2243 = vmatpush1.bf16.msra.mxu0 %v5487_v19  ;;  %2284 = vmatpush1.bf16.msra.mxu1 %v5488_v37  ;;  %v5496_v19 = vld [vmem:[#allocation58_spill] sm:$0xff]  ;;  %v5497_v37 = vld [vmem:[#allocation59_spill] sm:$0xff] }
 0x613   :  { %2244 = vmatprep.subr.bf16.mxu0 %v5489_v26  ;;  %2285 = vmatprep.subr.bf16.mxu1 %v5490_v27  ;;  %v5498_v26 = vld [vmem:[#allocation60_spill] sm:$0xff]  ;;  %v5499_v27 = vld [vmem:[#allocation61_spill] sm:$0xff] }
 0x614   :  { %2274 = vmatprep.mubr.bf16.mxu0 %v5200_v13  ;;  %2315 = vmatprep.mubr.bf16.mxu1 %v5200_v13 }
 0x616   :  { %2245 = vmatpush1.bf16.msra.mxu0 %v5491_v33  ;;  %2286 = vmatpush1.bf16.msra.mxu1 %v5492_v5  ;;  %v5502_v33 = vld [vmem:[#allocation64_spill] sm:$0xff]  ;;  %v5503_v5 = vld [vmem:[#allocation65_spill] sm:$0xff] }
 0x617   :  { %2246 = vmatprep.subr.bf16.mxu0 %v5493_v25  ;;  %2287 = vmatprep.subr.bf16.mxu1 %v5494_v35  ;;  %v5504_v25 = vld [vmem:[#allocation66_spill] sm:$0xff]  ;;  %v5505_v35 = vld [vmem:[#allocation67_spill] sm:$0xff] }
 0x61a   :  { %2247 = vmatpush1.bf16.msra.mxu0 %v5495_v38  ;;  %2288 = vmatpush1.bf16.msra.mxu1 %v5496_v19  ;;  %v5506_v38 = vld [vmem:[#allocation68_spill] sm:$0xff]  ;;  %v5507_v19 = vld [vmem:[#allocation69_spill] sm:$0xff] }
 0x61b   :  { %2248 = vmatprep.subr.bf16.mxu0 %v5497_v37  ;;  %2289 = vmatprep.subr.bf16.mxu1 %v5498_v26  ;;  %v5508_v37 = vld [vmem:[#allocation70_spill] sm:$0xff]  ;;  %v5509_v26 = vld [vmem:[#allocation71_spill] sm:$0xff] }
 0x61e   :  { %2249 = vmatpush1.bf16.msra.mxu0 %v5499_v27  ;;  %2290 = vmatpush1.bf16.msra.mxu1 %v5500_v34  ;;  %v5510_v27 = vld [vmem:[#allocation72_spill] sm:$0xff]  ;;  %v5511_v34 = vld [vmem:[#allocation73_spill] sm:$0xff] }
 0x61f   :  { %2250 = vmatprep.subr.bf16.mxu0 %v5501_v15  ;;  %2291 = vmatprep.subr.bf16.mxu1 %v5502_v33  ;;  %v5512_v15 = vld [vmem:[#allocation74_spill] sm:$0xff]  ;;  %v5513_v33 = vld [vmem:[#allocation75_spill] sm:$0xff] }
 0x622   :  { %2251 = vmatpush1.bf16.msra.mxu0 %v5503_v5  ;;  %2292 = vmatpush1.bf16.msra.mxu1 %v5504_v25  ;;  %v5514_v5 = vld [vmem:[#allocation76_spill] sm:$0xff]  ;;  %v5515_v25 = vld [vmem:[#allocation77_spill] sm:$0xff] }
 0x623   :  { %2252 = vmatprep.subr.bf16.mxu0 %v5505_v35  ;;  %2293 = vmatprep.subr.bf16.mxu1 %v5506_v38  ;;  %v5516_v35 = vld [vmem:[#allocation78_spill] sm:$0xff]  ;;  %v5517_v38 = vld [vmem:[#allocation11_spill] sm:$0xff] }
 0x626   :  { %2253 = vmatpush1.bf16.msra.mxu0 %v5507_v19  ;;  %2294 = vmatpush1.bf16.msra.mxu1 %v5508_v37  ;;  %v5518_v19 = vld [vmem:[#allocation12_spill] sm:$0xff] }
 0x627   :  { %2254 = vmatprep.subr.bf16.mxu0 %v5509_v26  ;;  %2295 = vmatprep.subr.bf16.mxu1 %v5510_v27 }
 0x62a   :  { %2255 = vmatpush1.bf16.msra.mxu0 %v5511_v34  ;;  %2296 = vmatpush1.bf16.msra.mxu1 %v5512_v15 }
 0x62b   :  { %2256 = vmatprep.subr.bf16.mxu0 %v5513_v33  ;;  %2297 = vmatprep.subr.bf16.mxu1 %v5514_v5 }
 0x62e   :  { %2257 = vmatpush1.bf16.msra.mxu0 %v5515_v25  ;;  %2298 = vmatpush1.bf16.msra.mxu1 %v5516_v35 }
 0x62f   :  { %2373 = vmatprep.subr.bf16.mxu0 %v5517_v38  ;;  %2414 = vmatprep.subr.bf16.mxu1 %v5518_v19 }
 0x6a4   :  { %v1950_v37 = vpop.f32.mrb[44].mxu0  ;;  %v1991_v26 = vpop.f32.mrb[44].mxu1 }
 0x6a5   :  { %v1952_v0 = vpop.f32.mrb[45].mxu0  ;;  %v1993_v27 = vpop.f32.mrb[45].mxu1 }
 0x6a6   :  { %v1954_v1 = vpop.f32.mrb[46].mxu0  ;;  %v1995_v34 = vpop.f32.mrb[46].mxu1 }
 0x6a7   :  { %v1955_v58 = vpop.f32.mrb[47].mxu0  ;;  %v1996_v15 = vpop.f32.mrb[47].mxu1 }
 0x6a8   :  { %v5520_v15 = vld [vmem:[#allocation17_spill] sm:$0xff] }
 0x6c4   :  { %v2079_v51 = vpop.f32.mrb[48].mxu0  ;;  %v2120_v33 = vpop.f32.mrb[48].mxu1 }
 0x6c5   :  { %v2328_v42 = vrot.slane %v2079_v51, 3  ;;  %v2081_v5 = vpop.f32.mrb[49].mxu0  ;;  %v2122_v4 = vpop.f32.mrb[49].mxu1  ;;  %v2330_v1 = vrot.slane %v2120_v33, 3  ;;  %v5521_v51 = vld [vmem:[#allocation18_spill] sm:$0xff] }
 0x6c6   :  { %v2329_v25 = vrot.slane %v2081_v5, 3  ;;  %v2083_v18 = vpop.f32.mrb[50].mxu0  ;;  %v2124_v35 = vpop.f32.mrb[50].mxu1  ;;  %v2331_v58 = vrot.slane %v2122_v4, 3 }
 0x6c7   :  { %v2336_v38 = vadd.f32 %v2328_v42, %v3949_v46  ;;  %v2084_v56 = vpop.f32.mrb[51].mxu0  ;;  %v2125_v19 = vpop.f32.mrb[51].mxu1  ;;  %v2338_v34 = vadd.f32 %v2330_v1, %v5520_v15 }
 0x6c8   :  { %v2337_v50 = vadd.f32 %v2329_v25, %v5519_v24  ;;  %v2339_v45 = vadd.f32 %v2331_v58, %v5521_v51 }
 0x6c9   :  { %v3284_v32 = vmul.f32 -1.442695, %v2336_v38  ;;  %v3286_v59 = vmul.f32 -1.442695, %v2338_v34 }
 0x6ca   :  { %v3285_v41 = vmul.f32 -1.442695, %v2337_v50 }
 0x6cb   :  { %3503 = vpow2.f32 %v3284_v32  ;;  %v2360_v32 = vrot.slane %v4598_v14, 7 }
 0x6cc   :  { %3505 = vpow2.f32 %v3285_v41 }
 0x6cd   :  { %3507 = vtanh.f32 %v2339_v45 }
 0x6ce   :  { %3509 = vpow2.f32 %v3286_v59 }
 0x6d5   :  { %v3504_v5 = vpop.eup %3503 }
 0x6d6   :  { %v2349_v18 = vadd.f32 1.0, %v3504_v5  ;;  %v3506_v35 = vpop.eup %3505 }
 0x6d7   :  { %v2350_v56 = vadd.f32 1.0, %v3506_v35  ;;  %v3508_v42 = vpop.eup %3507 }
 0x6d8   :  { %3511 = vrcp.f32 %v2349_v18  ;;  %v3510_v25 = vpop.eup %3509 }
 0x6d9   :  { %3513 = vrcp.f32 %v2350_v56  ;;  %v2351_v33 = vadd.f32 1.0, %v3510_v25 }
 0x6db   :  { %3515 = vrcp.f32 %v2351_v33 }
 0x6e2   :  { %v3512_v50 = vpop.eup %3511 }
 0x6e3   :  { %v2363_v41 = vmul.f32 %v3512_v50, %v3508_v42  ;;  %v3514_v4 = vpop.eup %3513 }
 0x6e4   :  { %v2161_v19 = vpop.f32.mrb[52].mxu0  ;;  %v2202_v38 = vpop.f32.mrb[52].mxu1  ;;  %v2362_v1 = vmul.f32 %v3514_v4, %v2360_v32 }
 0x6e5   :  { %v2209_v58 = vadd.f32 %v2161_v19, %v1950_v37  ;;  %v2211_v34 = vadd.f32 %v2202_v38, %v1991_v26  ;;  %v2163_v5 = vpop.f32.mrb[53].mxu0  ;;  %v2204_v45 = vpop.f32.mrb[53].mxu1 }
 0x6e6   :  { %v2210_v51 = vadd.f32 %v2163_v5, %v1952_v0  ;;  %v2212_v59 = vadd.f32 %v2204_v45, %v1993_v27  ;;  %v2165_v18 = vpop.f32.mrb[54].mxu0  ;;  %v2206_v35 = vpop.f32.mrb[54].mxu1  ;;  %v4716_v56 = vadd.f32 %v2363_v41, %v2362_v1 }
 0x6e7   :  { %v2213_v15 = vadd.f32 %v2209_v58, %v4169_v3  ;;  %v2166_v24 = vpop.f32.mrb[55].mxu0  ;;  %v2207_v14 = vpop.f32.mrb[55].mxu1  ;;  %v2215_v26 = vadd.f32 %v2211_v34, %v4181_v57 }
 0x6e8   :  { %v2214_v42 = vadd.f32 %v2210_v51, %v4172_v10  ;;  %3517 = vtanh.f32 %v4716_v56  ;;  %v3516_v27 = vpop.eup %3515  ;;  %v2216_v0 = vadd.f32 %v2212_v59, %v4184_v2 }
 0x6e9   :  { %v3281_v25 = vmul.f32 -1.442695, %v2213_v15  ;;  %v3283_v32 = vmul.f32 -1.442695, %v2215_v26  ;;  %v5523_v26 = vld [vmem:[#allocation14_spill] sm:$0xff] }
 0x6ea   :  { %v3282_v37 = vmul.f32 -1.442695, %v2214_v42 }
 0x6eb   :  { %3519 = vpow2.f32 %v3281_v25 }
 0x6ec   :  { %3521 = vpow2.f32 %v3282_v37  ;;  %v5522_v37 = vld [vmem:[#allocation13_spill] sm:$0xff] }
 0x6ed   :  { %3523 = vtanh.f32 %v2216_v0  ;;  %v5525_v0 = vld [vmem:[#allocation19_spill] sm:$0xff] }
 0x6ee   :  { %3525 = vpow2.f32 %v3283_v32  ;;  %v5527_v32 = vld [vmem:[#allocation21_spill] sm:$0xff] }
 0x6f2   :  { %v3518_v50 = vpop.eup %3517 }
 0x6f3   :  { %v2366_v41 = vmul.f32 %v3518_v50, %v3516_v27  ;;  %v5524_v27 = vld [vmem:[#allocation15_spill] sm:$0xff]  ;;  %v5526_v50 = vld [vmem:[#allocation20_spill] sm:$0xff] }
 0x6f5   :  { %v3520_v4 = vpop.eup %3519 }
 0x6f6   :  { %v2226_v24 = vadd.f32 1.0, %v3520_v4  ;;  %v3522_v33 = vpop.eup %3521  ;;  %v5529_v4 = vld [vmem:[#allocation23_spill] sm:$0xff] }
 0x6f7   :  { %v2227_v51 = vadd.f32 1.0, %v3522_v33  ;;  %v3524_v15 = vpop.eup %3523  ;;  %v5531_v33 = vld [vmem:[#allocation25_spill] sm:$0xff] }
 0x6f8   :  { %3527 = vrcp.f32 %v2226_v24  ;;  %v3526_v19 = vpop.eup %3525  ;;  %v5530_v24 = vld [vmem:[#allocation24_spill] sm:$0xff] }
 0x6f9   :  { %3529 = vrcp.f32 %v2227_v51  ;;  %v2228_v34 = vadd.f32 1.0, %v3526_v19  ;;  %v5532_v51 = vld [vmem:[#allocation26_spill] sm:$0xff]  ;;  %v5534_v19 = vld [vmem:[#allocation28_spill] sm:$0xff] }
 0x6fb   :  { %3531 = vrcp.f32 %v2228_v34  ;;  %v5538_v34 = vld [vmem:[#allocation32_spill] sm:$0xff] }
 0x702   :  { %v3528_v38 = vpop.eup %3527 }
 0x703   :  { %v2237_v1 = vmul.f32 %v3528_v38, %v3524_v15  ;;  %v3530_v58 = vpop.eup %3529  ;;  %v5533_v15 = vld [vmem:[#allocation27_spill] sm:$0xff]  ;;  %v5535_v38 = vld [vmem:[#allocation29_spill] sm:$0xff] }
 0x704   :  { %v2236_v5 = vmul.f32 %v3530_v58, %v4606_v17  ;;  %v2367_v17 = vpack.c.bf16 %v2366_v41, %v2366_v41  ;;  %v5528_v41 = vld [vmem:[#allocation22_spill] sm:$0xff]  ;;  %v5537_v58 = vld [vmem:[#allocation31_spill] sm:$0xff] }
 0x705   :  { %v3532_v59 = vpop.eup %3531 }
 0x706   :  { %v4724_v45 = vadd.f32 %v2237_v1, %v2236_v5  ;;  %v2369_v42 = vshrl.u32 %v2367_v17, 16  ;;  %v5536_v1 = vld [vmem:[#allocation30_spill] sm:$0xff]  ;;  %v5539_v5 = vld [vmem:[#allocation33_spill] sm:$0xff] }
 0x707   :  { %v5544_v17 = vld [vmem:[#allocation38_spill] sm:$0xff] }
 0x708   :  { %3533 = vtanh.f32 %v4724_v45  ;;  %v2371_v25 = vrot.slane %v2369_v42, 2  ;;  %v5545_v42 = vld [vmem:[#allocation39_spill] sm:$0xff] }
 0x712   :  { %v3534_v18 = vpop.eup %3533 }
 0x713   :  { %v2240_v35 = vmul.f32 %v3534_v18, %v3532_v59  ;;  %v5540_v59 = vld [vmem:[#allocation34_spill] sm:$0xff]  ;;  %v5541_v18 = vld [vmem:[#allocation35_spill] sm:$0xff] }
 0x715   :  { %v2241_v14 = vpack.c.bf16 %v2240_v35, %v2240_v35  ;;  %v5542_v35 = vld [vmem:[#allocation36_spill] sm:$0xff] }
 0x717   :  { %2275 = vmatmul.mubr.bf16.vlgmr.msra.gmra.mrb[56].mxu0 %v2241_v14  ;;  %2316 = vmatmul.mubr.bf16.vlgmr.msra.gmra.mrb[56].mxu1 %v2241_v14  ;;  %v5543_v14 = vld [vmem:[#allocation37_spill] sm:$0xff] }
 0x718   :  { %2374 = vmatpush1.bf16.msra.mxu0 %v3826_v7  ;;  %2415 = vmatpush1.bf16.msra.mxu1 %v3830_v11 }
 0x719   :  { %2375 = vmatprep.subr.bf16.mxu0 %v3832_v12  ;;  %2416 = vmatprep.subr.bf16.mxu1 %v3835_v16 }
 0x71a   :  { %2405 = vmatprep.mubr.bf16.mxu0 %v5200_v13  ;;  %2446 = vmatprep.mubr.bf16.mxu1 %v5200_v13 }
 0x71c   :  { %2376 = vmatpush1.bf16.msra.mxu0 %v3839_v20  ;;  %2417 = vmatpush1.bf16.msra.mxu1 %v3843_v21 }
 0x71d   :  { %2377 = vmatprep.subr.bf16.mxu0 %v3845_v22  ;;  %2418 = vmatprep.subr.bf16.mxu1 %v3848_v23 }
 0x720   :  { %2378 = vmatpush1.bf16.msra.mxu0 %v3851_v28  ;;  %2419 = vmatpush1.bf16.msra.mxu1 %v3855_v29 }
 0x721   :  { %2379 = vmatprep.subr.bf16.mxu0 %v3857_v30  ;;  %2420 = vmatprep.subr.bf16.mxu1 %v3860_v31 }
 0x724   :  { %2380 = vmatpush1.bf16.msra.mxu0 %v3863_v36  ;;  %2421 = vmatpush1.bf16.msra.mxu1 %v3867_v39 }
 0x725   :  { %2381 = vmatprep.subr.bf16.mxu0 %v3869_v40  ;;  %2422 = vmatprep.subr.bf16.mxu1 %v3872_v43 }
 0x728   :  { %2382 = vmatpush1.bf16.msra.mxu0 %v3875_v44  ;;  %2423 = vmatpush1.bf16.msra.mxu1 %v3879_v47 }
 0x729   :  { %2383 = vmatprep.subr.bf16.mxu0 %v3881_v48  ;;  %2424 = vmatprep.subr.bf16.mxu1 %v3884_v49 }
 0x72c   :  { %2384 = vmatpush1.bf16.msra.mxu0 %v3887_v52  ;;  %2425 = vmatpush1.bf16.msra.mxu1 %v3891_v53 }
 0x72d   :  { %2385 = vmatprep.subr.bf16.mxu0 %v3893_v54  ;;  %2426 = vmatprep.subr.bf16.mxu1 %v3896_v55 }
 0x730   :  { %2386 = vmatpush1.bf16.msra.mxu0 %v3899_v60  ;;  %2427 = vmatpush1.bf16.msra.mxu1 %v3903_v61 }
 0x731   :  { %2387 = vmatprep.subr.bf16.mxu0 %v3905_v62  ;;  %2428 = vmatprep.subr.bf16.mxu1 %v3908_v63 }
 0x734   :  { %2388 = vmatpush1.bf16.msra.mxu0 %v3911_v6  ;;  %2429 = vmatpush1.bf16.msra.mxu1 %v3915_v8 }
 0x735   :  { %2455 = vmatprep.subr.bf16.mxu0 %v3917_v9  ;;  %2496 = vmatprep.subr.bf16.mxu1 %v5522_v37 }
 0x737   :  { %2406 = vmatmul.mubr.bf16.vlgmr.msra.gmra.mrb[60].mxu0 %v2371_v25  ;;  %2447 = vmatmul.mubr.bf16.vlgmr.msra.gmra.mrb[60].mxu1 %v2371_v25 }
 0x738   :  { %2456 = vmatpush1.bf16.msra.mxu0 %v5523_v26  ;;  %2497 = vmatpush1.bf16.msra.mxu1 %v5524_v27 }
 0x739   :  { %2457 = vmatprep.subr.bf16.mxu0 %v5525_v0  ;;  %2498 = vmatprep.subr.bf16.mxu1 %v5526_v50 }
 0x73a   :  { %2487 = vmatprep.mubr.bf16.mxu0 %v5200_v13  ;;  %2528 = vmatprep.mubr.bf16.mxu1 %v5200_v13 }
 0x73c   :  { %2458 = vmatpush1.bf16.msra.mxu0 %v5527_v32  ;;  %2499 = vmatpush1.bf16.msra.mxu1 %v5528_v41  ;;  %v5587_v32 = vld [vmem:[#allocation16_spill] sm:$0xff] }
 0x73d   :  { %2459 = vmatprep.subr.bf16.mxu0 %v5529_v4  ;;  %2500 = vmatprep.subr.bf16.mxu1 %v5530_v24 }
 0x740   :  { %2460 = vmatpush1.bf16.msra.mxu0 %v5531_v33  ;;  %2501 = vmatpush1.bf16.msra.mxu1 %v5532_v51 }
 0x741   :  { %2461 = vmatprep.subr.bf16.mxu0 %v5533_v15  ;;  %2502 = vmatprep.subr.bf16.mxu1 %v5534_v19 }
 0x744   :  { %2462 = vmatpush1.bf16.msra.mxu0 %v5535_v38  ;;  %2503 = vmatpush1.bf16.msra.mxu1 %v5536_v1  ;;  %v5546_v38 = vld [vmem:[#allocation40_spill] sm:$0xff]  ;;  %v5547_v1 = vld [vmem:[#allocation41_spill] sm:$0xff] }
 0x745   :  { %2463 = vmatprep.subr.bf16.mxu0 %v5537_v58  ;;  %2504 = vmatprep.subr.bf16.mxu1 %v5538_v34  ;;  %v5548_v58 = vld [vmem:[#allocation42_spill] sm:$0xff]  ;;  %v5549_v34 = vld [vmem:[#allocation43_spill] sm:$0xff] }
 0x748   :  { %2464 = vmatpush1.bf16.msra.mxu0 %v5539_v5  ;;  %2505 = vmatpush1.bf16.msra.mxu1 %v5540_v59  ;;  %v5550_v5 = vld [vmem:[#allocation44_spill] sm:$0xff]  ;;  %v5551_v59 = vld [vmem:[#allocation45_spill] sm:$0xff] }
 0x749   :  { %2465 = vmatprep.subr.bf16.mxu0 %v5541_v18  ;;  %2506 = vmatprep.subr.bf16.mxu1 %v5542_v35  ;;  %v5552_v18 = vld [vmem:[#allocation46_spill] sm:$0xff]  ;;  %v5553_v35 = vld [vmem:[#allocation47_spill] sm:$0xff] }
 0x74c   :  { %2466 = vmatpush1.bf16.msra.mxu0 %v5543_v14  ;;  %2507 = vmatpush1.bf16.msra.mxu1 %v5544_v17  ;;  %v5554_v14 = vld [vmem:[#allocation48_spill] sm:$0xff] }
 0x74d   :  { %2467 = vmatprep.subr.bf16.mxu0 %v5545_v42  ;;  %2508 = vmatprep.subr.bf16.mxu1 %v5546_v38  ;;  %v5555_v42 = vld [vmem:[#allocation49_spill] sm:$0xff]  ;;  %v5556_v38 = vld [vmem:[#allocation50_spill] sm:$0xff] }
 0x750   :  { %2468 = vmatpush1.bf16.msra.mxu0 %v5547_v1  ;;  %2509 = vmatpush1.bf16.msra.mxu1 %v5548_v58  ;;  %v5557_v1 = vld [vmem:[#allocation51_spill] sm:$0xff]  ;;  %v5558_v58 = vld [vmem:[#allocation52_spill] sm:$0xff] }
 0x751   :  { %2469 = vmatprep.subr.bf16.mxu0 %v5549_v34  ;;  %2510 = vmatprep.subr.bf16.mxu1 %v5550_v5  ;;  %v5568_v5 = vld [vmem:[#allocation62_spill] sm:$0xff]  ;;  %v5569_v34 = vld [vmem:[#allocation63_spill] sm:$0xff] }
 0x754   :  { %2470 = vmatpush1.bf16.msra.mxu0 %v5551_v59  ;;  %2511 = vmatpush1.bf16.msra.mxu1 %v5552_v18  ;;  %v5559_v59 = vld [vmem:[#allocation53_spill] sm:$0xff]  ;;  %v5560_v18 = vld [vmem:[#allocation54_spill] sm:$0xff] }
 0x755   :  { %2570 = vmatprep.subr.bf16.mxu0 %v5553_v35  ;;  %2611 = vmatprep.subr.bf16.mxu1 %v5554_v14  ;;  %v5561_v35 = vld [vmem:[#allocation55_spill] sm:$0xff]  ;;  %v5562_v14 = vld [vmem:[#allocation56_spill] sm:$0xff] }
 0x757   :  { %2488 = vmatmul.mubr.bf16.vlgmr.msra.gmra.mrb[64].mxu0 %v2371_v25  ;;  %2529 = vmatmul.mubr.bf16.vlgmr.msra.gmra.mrb[64].mxu1 %v2371_v25  ;;  %v5563_v25 = vld [vmem:[#allocation57_spill] sm:$0xff] }
 0x758   :  { %2571 = vmatpush1.bf16.msra.mxu0 %v5555_v42  ;;  %2612 = vmatpush1.bf16.msra.mxu1 %v5556_v38  ;;  %v5564_v42 = vld [vmem:[#allocation58_spill] sm:$0xff]  ;;  %v5565_v38 = vld [vmem:[#allocation59_spill] sm:$0xff] }
 0x759   :  { %2572 = vmatprep.subr.bf16.mxu0 %v5557_v1  ;;  %2613 = vmatprep.subr.bf16.mxu1 %v5558_v58  ;;  %v5566_v1 = vld [vmem:[#allocation60_spill] sm:$0xff]  ;;  %v5567_v58 = vld [vmem:[#allocation61_spill] sm:$0xff] }
 0x75a   :  { %2602 = vmatprep.mubr.bf16.mxu0 %v5200_v13  ;;  %2643 = vmatprep.mubr.bf16.mxu1 %v5200_v13 }
 0x75c   :  { %2573 = vmatpush1.bf16.msra.mxu0 %v5559_v59  ;;  %2614 = vmatpush1.bf16.msra.mxu1 %v5560_v18  ;;  %v5570_v59 = vld [vmem:[#allocation64_spill] sm:$0xff]  ;;  %v5571_v18 = vld [vmem:[#allocation65_spill] sm:$0xff] }
 0x75d   :  { %2574 = vmatprep.subr.bf16.mxu0 %v5561_v35  ;;  %2615 = vmatprep.subr.bf16.mxu1 %v5562_v14  ;;  %v5572_v35 = vld [vmem:[#allocation66_spill] sm:$0xff]  ;;  %v5573_v14 = vld [vmem:[#allocation67_spill] sm:$0xff] }
 0x760   :  { %2575 = vmatpush1.bf16.msra.mxu0 %v5563_v25  ;;  %2616 = vmatpush1.bf16.msra.mxu1 %v5564_v42  ;;  %v5574_v25 = vld [vmem:[#allocation68_spill] sm:$0xff]  ;;  %v5575_v42 = vld [vmem:[#allocation69_spill] sm:$0xff] }
 0x761   :  { %2576 = vmatprep.subr.bf16.mxu0 %v5565_v38  ;;  %2617 = vmatprep.subr.bf16.mxu1 %v5566_v1  ;;  %v5576_v38 = vld [vmem:[#allocation70_spill] sm:$0xff]  ;;  %v5577_v1 = vld [vmem:[#allocation71_spill] sm:$0xff] }
 0x764   :  { %2577 = vmatpush1.bf16.msra.mxu0 %v5567_v58  ;;  %2618 = vmatpush1.bf16.msra.mxu1 %v5568_v5  ;;  %v5578_v58 = vld [vmem:[#allocation72_spill] sm:$0xff]  ;;  %v5579_v5 = vld [vmem:[#allocation73_spill] sm:$0xff] }
 0x765   :  { %2578 = vmatprep.subr.bf16.mxu0 %v5569_v34  ;;  %2619 = vmatprep.subr.bf16.mxu1 %v5570_v59  ;;  %v5580_v34 = vld [vmem:[#allocation74_spill] sm:$0xff]  ;;  %v5581_v59 = vld [vmem:[#allocation75_spill] sm:$0xff] }
 0x768   :  { %2579 = vmatpush1.bf16.msra.mxu0 %v5571_v18  ;;  %2620 = vmatpush1.bf16.msra.mxu1 %v5572_v35  ;;  %v5582_v18 = vld [vmem:[#allocation76_spill] sm:$0xff]  ;;  %v5583_v35 = vld [vmem:[#allocation77_spill] sm:$0xff] }
 0x769   :  { %2580 = vmatprep.subr.bf16.mxu0 %v5573_v14  ;;  %2621 = vmatprep.subr.bf16.mxu1 %v5574_v25  ;;  %v5584_v14 = vld [vmem:[#allocation78_spill] sm:$0xff]  ;;  %v5585_v25 = vld [vmem:[#allocation11_spill] sm:$0xff] }
 0x76c   :  { %2581 = vmatpush1.bf16.msra.mxu0 %v5575_v42  ;;  %2622 = vmatpush1.bf16.msra.mxu1 %v5576_v38  ;;  %v5586_v42 = vld [vmem:[#allocation12_spill] sm:$0xff] }
 0x76d   :  { %2582 = vmatprep.subr.bf16.mxu0 %v5577_v1  ;;  %2623 = vmatprep.subr.bf16.mxu1 %v5578_v58 }
 0x770   :  { %2583 = vmatpush1.bf16.msra.mxu0 %v5579_v5  ;;  %2624 = vmatpush1.bf16.msra.mxu1 %v5580_v34 }
 0x771   :  { %2584 = vmatprep.subr.bf16.mxu0 %v5581_v59  ;;  %2625 = vmatprep.subr.bf16.mxu1 %v5582_v18 }
 0x774   :  { %2585 = vmatpush1.bf16.msra.mxu0 %v5583_v35  ;;  %2626 = vmatpush1.bf16.msra.mxu1 %v5584_v14 }
 0x775   :  { %2699 = vmatprep.subr.bf16.mxu0 %v5585_v25  ;;  %2740 = vmatprep.subr.bf16.mxu1 %v5586_v42 }
 0x7ea   :  { %v2276_v38 = vpop.f32.mrb[56].mxu0  ;;  %v2317_v1 = vpop.f32.mrb[56].mxu1 }
 0x7eb   :  { %v2278_v17 = vpop.f32.mrb[57].mxu0  ;;  %v2319_v58 = vpop.f32.mrb[57].mxu1 }
 0x7ec   :  { %v2280_v19 = vpop.f32.mrb[58].mxu0  ;;  %v2321_v5 = vpop.f32.mrb[58].mxu1 }
 0x7ed   :  { %v2281_v15 = vpop.f32.mrb[59].mxu0  ;;  %v2322_v34 = vpop.f32.mrb[59].mxu1  ;;  %v5588_v5 = vld [vmem:[#allocation17_spill] sm:$0xff] }
 0x80a   :  { %v2407_v51 = vpop.f32.mrb[60].mxu0  ;;  %v2448_v59 = vpop.f32.mrb[60].mxu1 }
 0x80b   :  { %v2656_v33 = vrot.slane %v2407_v51, 2  ;;  %v2409_v18 = vpop.f32.mrb[61].mxu0  ;;  %v2450_v24 = vpop.f32.mrb[61].mxu1  ;;  %v2658_v19 = vrot.slane %v2448_v59, 2  ;;  %v5589_v51 = vld [vmem:[#allocation18_spill] sm:$0xff] }
 0x80c   :  { %v2657_v35 = vrot.slane %v2409_v18, 2  ;;  %v2411_v4 = vpop.f32.mrb[62].mxu0  ;;  %v2452_v14 = vpop.f32.mrb[62].mxu1  ;;  %v2659_v15 = vrot.slane %v2450_v24, 2 }
 0x80d   :  { %v2664_v25 = vadd.f32 %v2656_v33, %v3949_v46  ;;  %v2412_v41 = vpop.f32.mrb[63].mxu0  ;;  %v2453_v42 = vpop.f32.mrb[63].mxu1  ;;  %v2666_v34 = vadd.f32 %v2658_v19, %v5588_v5 }
 0x80e   :  { %v2665_v50 = vadd.f32 %v2657_v35, %v5587_v32  ;;  %v2667_v26 = vadd.f32 %v2659_v15, %v5589_v51 }
 0x80f   :  { %v3290_v0 = vmul.f32 -1.442695, %v2664_v25  ;;  %v3292_v37 = vmul.f32 -1.442695, %v2666_v34 }
 0x810   :  { %v3291_v27 = vmul.f32 -1.442695, %v2665_v50 }
 0x811   :  { %3535 = vpow2.f32 %v3290_v0  ;;  %v2688_v0 = vrot.slane %v4716_v56, 7 }
 0x812   :  { %3537 = vpow2.f32 %v3291_v27 }
 0x813   :  { %3539 = vtanh.f32 %v2667_v26 }
 0x814   :  { %3541 = vpow2.f32 %v3292_v37 }
 0x81b   :  { %v3536_v18 = vpop.eup %3535 }
 0x81c   :  { %v2677_v4 = vadd.f32 1.0, %v3536_v18  ;;  %v3538_v14 = vpop.eup %3537 }
 0x81d   :  { %v2678_v41 = vadd.f32 1.0, %v3538_v14  ;;  %v3540_v33 = vpop.eup %3539 }
 0x81e   :  { %3543 = vrcp.f32 %v2677_v4  ;;  %v3542_v35 = vpop.eup %3541 }
 0x81f   :  { %3545 = vrcp.f32 %v2678_v41  ;;  %v2679_v59 = vadd.f32 1.0, %v3542_v35 }
 0x821   :  { %3547 = vrcp.f32 %v2679_v59 }
 0x828   :  { %v3544_v50 = vpop.eup %3543 }
 0x829   :  { %v2691_v27 = vmul.f32 %v3544_v50, %v3540_v33  ;;  %v3546_v24 = vpop.eup %3545 }
 0x82a   :  { %v2489_v25 = vpop.f32.mrb[64].mxu0  ;;  %v2530_v42 = vpop.f32.mrb[64].mxu1  ;;  %v2690_v19 = vmul.f32 %v3546_v24, %v2688_v0 }
 0x82b   :  { %v2537_v15 = vadd.f32 %v2489_v25, %v2276_v38  ;;  %v2539_v34 = vadd.f32 %v2530_v42, %v2317_v1  ;;  %v2491_v18 = vpop.f32.mrb[65].mxu0  ;;  %v2532_v26 = vpop.f32.mrb[65].mxu1 }
 0x82c   :  { %v2538_v51 = vadd.f32 %v2491_v18, %v2278_v17  ;;  %v2540_v37 = vadd.f32 %v2532_v26, %v2319_v58  ;;  %v2493_v4 = vpop.f32.mrb[66].mxu0  ;;  %v2534_v14 = vpop.f32.mrb[66].mxu1  ;;  %v4834_v41 = vadd.f32 %v2691_v27, %v2690_v19 }
 0x82d   :  { %v2541_v5 = vadd.f32 %v2537_v15, %v4169_v3  ;;  %v2494_v32 = vpop.f32.mrb[67].mxu0  ;;  %v2535_v56 = vpop.f32.mrb[67].mxu1  ;;  %v2543_v17 = vadd.f32 %v2539_v34, %v4181_v57 }
 0x82e   :  { %v2542_v33 = vadd.f32 %v2538_v51, %v4172_v10  ;;  %3549 = vtanh.f32 %v4834_v41  ;;  %v3548_v1 = vpop.eup %3547  ;;  %v2544_v58 = vadd.f32 %v2540_v37, %v4184_v2 }
 0x82f   :  { %v3287_v35 = vmul.f32 -1.442695, %v2541_v5  ;;  %v3289_v0 = vmul.f32 -1.442695, %v2543_v17  ;;  %v3648_v17 = vld [vmem:[#allocation5 + $0xc] ss:$16 sps:$4 sm:$0xff]  }
 0x830   :  { %v3288_v38 = vmul.f32 -1.442695, %v2542_v33  ;;  %v5619_v33 = vld [vmem:[#allocation45_spill] sm:$0xff] }
 0x831   :  { %3551 = vpow2.f32 %v3287_v35  ;;  %v5620_v35 = vld [vmem:[#allocation46_spill] sm:$0xff] }
 0x832   :  { %3553 = vpow2.f32 %v3288_v38  ;;  %v3647_v38 = vld [vmem:[#allocation5 + $0x4] ss:$16 sps:$4 sm:$0xff]  }
 0x833   :  { %3555 = vtanh.f32 %v2544_v58  ;;  %v3650_v58 = vld [vmem:[#allocation5 + $0x8] ss:$16 sps:$4 sm:$0xff]  }
 0x834   :  { %3557 = vpow2.f32 %v3289_v0  ;;  %v3652_v0 = vld [vmem:[#allocation5 + $0x2c] ss:$16 sps:$4 sm:$0xff]  }
 0x838   :  { %v3550_v50 = vpop.eup %3549 }
 0x839   :  { %v2694_v27 = vmul.f32 %v3550_v50, %v3548_v1  ;;  %v3649_v1 = vld [vmem:[#allocation5] ss:$16 sps:$4 sm:$0xff]   ;;  %v3651_v50 = vld [vmem:[#allocation5 + $0x24] ss:$16 sps:$4 sm:$0xff]  }
 0x83b   :  { %v3552_v24 = vpop.eup %3551 }
 0x83c   :  { %v2554_v32 = vadd.f32 1.0, %v3552_v24  ;;  %v3554_v59 = vpop.eup %3553  ;;  %v3654_v24 = vld [vmem:[#allocation5 + $0x28] ss:$16 sps:$4 sm:$0xff]  }
 0x83d   :  { %v2555_v51 = vadd.f32 1.0, %v3554_v59  ;;  %v3556_v5 = vpop.eup %3555  ;;  %v3656_v59 = vld [vmem:[#allocation5 + $0x4c] ss:$16 sps:$4 sm:$0xff]  }
 0x83e   :  { %3559 = vrcp.f32 %v2554_v32  ;;  %v3558_v25 = vpop.eup %3557  ;;  %v3655_v32 = vld [vmem:[#allocation5 + $0x44] ss:$16 sps:$4 sm:$0xff]  }
 0x83f   :  { %3561 = vrcp.f32 %v2555_v51  ;;  %v2556_v34 = vadd.f32 1.0, %v3558_v25  ;;  %v3657_v51 = vld [vmem:[#allocation5 + $0x40] ss:$16 sps:$4 sm:$0xff]   ;;  %v3659_v25 = vld [vmem:[#allocation5 + $0x64] ss:$16 sps:$4 sm:$0xff]  }
 0x841   :  { %3563 = vrcp.f32 %v2556_v34  ;;  %v3663_v34 = vld [vmem:[#allocation5 + $0x84] ss:$16 sps:$4 sm:$0xff]  }
 0x848   :  { %v3560_v42 = vpop.eup %3559 }
 0x849   :  { %v2565_v19 = vmul.f32 %v3560_v42, %v3556_v5  ;;  %v3562_v15 = vpop.eup %3561  ;;  %v3658_v5 = vld [vmem:[#allocation5 + $0x48] ss:$16 sps:$4 sm:$0xff]   ;;  %v3660_v42 = vld [vmem:[#allocation5 + $0x6c] ss:$16 sps:$4 sm:$0xff]  }
 0x84a   :  { %v2564_v18 = vmul.f32 %v3562_v15, %v4724_v45  ;;  %v5618_v45 = vld [vmem:[#allocation44_spill] sm:$0xff] }
 0x84b   :  { %v3564_v37 = vpop.eup %3563  ;;  %v3662_v15 = vld [vmem:[#allocation5 + $0x68] ss:$16 sps:$4 sm:$0xff]  }
 0x84c   :  { %v4842_v26 = vadd.f32 %v2565_v19, %v2564_v18  ;;  %v3661_v19 = vld [vmem:[#allocation5 + $0x60] ss:$16 sps:$4 sm:$0xff]   ;;  %v3664_v18 = vld [vmem:[#allocation5 + $0x8c] ss:$16 sps:$4 sm:$0xff]  }
 0x84e   :  { %3565 = vtanh.f32 %v4842_v26 }
 0x858   :  { %v3566_v4 = vpop.eup %3565 }
 0x859   :  { %v2568_v14 = vmul.f32 %v3566_v4, %v3564_v37  ;;  %v3665_v37 = vld [vmem:[#allocation5 + $0x80] ss:$16 sps:$4 sm:$0xff]   ;;  %v3666_v4 = vld [vmem:[#allocation5 + $0x88] ss:$16 sps:$4 sm:$0xff]  }
 0x85b   :  { %v2569_v56 = vpack.c.bf16 %v2568_v14, %v2568_v14  ;;  %v3667_v14 = vld [vmem:[#allocation5 + $0xa4] ss:$16 sps:$4 sm:$0xff]  }
 0x85d   :  { %2603 = vmatmul.mubr.bf16.vlgmr.msra.gmra.mrb[68].mxu0 %v2569_v56  ;;  %2644 = vmatmul.mubr.bf16.vlgmr.msra.gmra.mrb[68].mxu1 %v2569_v56  ;;  %v3668_v56 = vld [vmem:[#allocation5 + $0xac] ss:$16 sps:$4 sm:$0xff]  }
 0x85e   :  { %2700 = vmatpush1.bf16.msra.mxu0 %v3826_v7  ;;  %2741 = vmatpush1.bf16.msra.mxu1 %v3830_v11  ;;  %v2695_v7 = vpack.c.bf16 %v2694_v27, %v2694_v27  ;;  %v3653_v27 = vld [vmem:[#allocation5 + $0x20] ss:$16 sps:$4 sm:$0xff]  }
 0x85f   :  { %2701 = vmatprep.subr.bf16.mxu0 %v3832_v12  ;;  %2742 = vmatprep.subr.bf16.mxu1 %v3835_v16  ;;  %v5590_v12 = vld [vmem:[#allocation13_spill] sm:$0xff]  ;;  %v5591_v16 = vld [vmem:[#allocation14_spill] sm:$0xff] }
 0x860   :  { %2731 = vmatprep.mubr.bf16.mxu0 %v5200_v13  ;;  %2772 = vmatprep.mubr.bf16.mxu1 %v5200_v13  ;;  %v2697_v11 = vrot.slane %v2695_v7, 3  ;;  %v3669_v7 = vld [vmem:[#allocation5 + $0xa0] ss:$16 sps:$4 sm:$0xff]  }
 0x862   :  { %2702 = vmatpush1.bf16.msra.mxu0 %v3839_v20  ;;  %2743 = vmatpush1.bf16.msra.mxu1 %v3843_v21  ;;  %v5592_v20 = vld [vmem:[#allocation15_spill] sm:$0xff] }
 0x863   :  { %2703 = vmatprep.subr.bf16.mxu0 %v3845_v22  ;;  %2744 = vmatprep.subr.bf16.mxu1 %v3848_v23  ;;  %v5593_v21 = vld [vmem:[#allocation19_spill] sm:$0xff]  ;;  %v5594_v22 = vld [vmem:[#allocation20_spill] sm:$0xff]  ;;  %v5595_v23 = vld [vmem:[#allocation21_spill] sm:$0xff] }
 0x866   :  { %2704 = vmatpush1.bf16.msra.mxu0 %v3851_v28  ;;  %2745 = vmatpush1.bf16.msra.mxu1 %v3855_v29  ;;  %v5596_v28 = vld [vmem:[#allocation22_spill] sm:$0xff]  ;;  %v5597_v29 = vld [vmem:[#allocation23_spill] sm:$0xff] }
 0x867   :  { %2705 = vmatprep.subr.bf16.mxu0 %v3857_v30  ;;  %2746 = vmatprep.subr.bf16.mxu1 %v3860_v31  ;;  %v5598_v30 = vld [vmem:[#allocation24_spill] sm:$0xff]  ;;  %v5599_v31 = vld [vmem:[#allocation25_spill] sm:$0xff] }
 0x86a   :  { %2706 = vmatpush1.bf16.msra.mxu0 %v3863_v36  ;;  %2747 = vmatpush1.bf16.msra.mxu1 %v3867_v39  ;;  %v5600_v36 = vld [vmem:[#allocation26_spill] sm:$0xff]  ;;  %v5601_v39 = vld [vmem:[#allocation27_spill] sm:$0xff] }
 0x86b   :  { %2707 = vmatprep.subr.bf16.mxu0 %v3869_v40  ;;  %2748 = vmatprep.subr.bf16.mxu1 %v3872_v43  ;;  %v5602_v40 = vld [vmem:[#allocation28_spill] sm:$0xff]  ;;  %v5603_v43 = vld [vmem:[#allocation29_spill] sm:$0xff] }
 0x86e   :  { %2708 = vmatpush1.bf16.msra.mxu0 %v3875_v44  ;;  %2749 = vmatpush1.bf16.msra.mxu1 %v3879_v47  ;;  %v5604_v44 = vld [vmem:[#allocation30_spill] sm:$0xff]  ;;  %v5605_v47 = vld [vmem:[#allocation31_spill] sm:$0xff] }
 0x86f   :  { %2709 = vmatprep.subr.bf16.mxu0 %v3881_v48  ;;  %2750 = vmatprep.subr.bf16.mxu1 %v3884_v49  ;;  %v5606_v48 = vld [vmem:[#allocation32_spill] sm:$0xff]  ;;  %v5607_v49 = vld [vmem:[#allocation33_spill] sm:$0xff] }
 0x872   :  { %2710 = vmatpush1.bf16.msra.mxu0 %v3887_v52  ;;  %2751 = vmatpush1.bf16.msra.mxu1 %v3891_v53  ;;  %v5608_v52 = vld [vmem:[#allocation34_spill] sm:$0xff]  ;;  %v5609_v53 = vld [vmem:[#allocation35_spill] sm:$0xff] }
 0x873   :  { %2711 = vmatprep.subr.bf16.mxu0 %v3893_v54  ;;  %2752 = vmatprep.subr.bf16.mxu1 %v3896_v55  ;;  %v5610_v54 = vld [vmem:[#allocation36_spill] sm:$0xff]  ;;  %v5611_v55 = vld [vmem:[#allocation37_spill] sm:$0xff] }
 0x876   :  { %2712 = vmatpush1.bf16.msra.mxu0 %v3899_v60  ;;  %2753 = vmatpush1.bf16.msra.mxu1 %v3903_v61  ;;  %v5612_v60 = vld [vmem:[#allocation38_spill] sm:$0xff]  ;;  %v5613_v61 = vld [vmem:[#allocation39_spill] sm:$0xff] }
 0x877   :  { %2713 = vmatprep.subr.bf16.mxu0 %v3905_v62  ;;  %2754 = vmatprep.subr.bf16.mxu1 %v3908_v63  ;;  %v5614_v62 = vld [vmem:[#allocation40_spill] sm:$0xff]  ;;  %v5615_v63 = vld [vmem:[#allocation41_spill] sm:$0xff] }
 0x87a   :  { %2714 = vmatpush1.bf16.msra.mxu0 %v3911_v6  ;;  %2755 = vmatpush1.bf16.msra.mxu1 %v3915_v8  ;;  %v5616_v6 = vld [vmem:[#allocation42_spill] sm:$0xff]  ;;  %v5617_v8 = vld [vmem:[#allocation43_spill] sm:$0xff] }
 0x87b   :  { %2781 = vmatprep.subr.bf16.mxu0 %v3917_v9  ;;  %2822 = vmatprep.subr.bf16.mxu1 %v5590_v12 }
 0x87d   :  { %2732 = vmatmul.mubr.bf16.vlgmr.msra.gmra.mrb[72].mxu0 %v2697_v11  ;;  %2773 = vmatmul.mubr.bf16.vlgmr.msra.gmra.mrb[72].mxu1 %v2697_v11 }
 0x87e   :  { %2782 = vmatpush1.bf16.msra.mxu0 %v5591_v16  ;;  %2823 = vmatpush1.bf16.msra.mxu1 %v5592_v20 }
 0x87f   :  { %2783 = vmatprep.subr.bf16.mxu0 %v5593_v21  ;;  %2824 = vmatprep.subr.bf16.mxu1 %v5594_v22 }
 0x880   :  { %2813 = vmatprep.mubr.bf16.mxu0 %v5200_v13  ;;  %2854 = vmatprep.mubr.bf16.mxu1 %v5200_v13 }
 0x882   :  { %2784 = vmatpush1.bf16.msra.mxu0 %v5595_v23  ;;  %2825 = vmatpush1.bf16.msra.mxu1 %v5596_v28 }
 0x883   :  { %2785 = vmatprep.subr.bf16.mxu0 %v5597_v29  ;;  %2826 = vmatprep.subr.bf16.mxu1 %v5598_v30 }
 0x886   :  { %2786 = vmatpush1.bf16.msra.mxu0 %v5599_v31  ;;  %2827 = vmatpush1.bf16.msra.mxu1 %v5600_v36 }
 0x887   :  { %2787 = vmatprep.subr.bf16.mxu0 %v5601_v39  ;;  %2828 = vmatprep.subr.bf16.mxu1 %v5602_v40 }
 0x88a   :  { %2788 = vmatpush1.bf16.msra.mxu0 %v5603_v43  ;;  %2829 = vmatpush1.bf16.msra.mxu1 %v5604_v44 }
 0x88b   :  { %2789 = vmatprep.subr.bf16.mxu0 %v5605_v47  ;;  %2830 = vmatprep.subr.bf16.mxu1 %v5606_v48 }
 0x88e   :  { %2790 = vmatpush1.bf16.msra.mxu0 %v5607_v49  ;;  %2831 = vmatpush1.bf16.msra.mxu1 %v5608_v52 }
 0x88f   :  { %2791 = vmatprep.subr.bf16.mxu0 %v5609_v53  ;;  %2832 = vmatprep.subr.bf16.mxu1 %v5610_v54 }
 0x892   :  { %2792 = vmatpush1.bf16.msra.mxu0 %v5611_v55  ;;  %2833 = vmatpush1.bf16.msra.mxu1 %v5612_v60 }
 0x893   :  { %2793 = vmatprep.subr.bf16.mxu0 %v5613_v61  ;;  %2834 = vmatprep.subr.bf16.mxu1 %v5614_v62 }
 0x896   :  { %2794 = vmatpush1.bf16.msra.mxu0 %v5615_v63  ;;  %2835 = vmatpush1.bf16.msra.mxu1 %v5616_v6 }
 0x897   :  { %2795 = vmatprep.subr.bf16.mxu0 %v5617_v8  ;;  %2836 = vmatprep.subr.bf16.mxu1 %v5618_v45 }
 0x89a   :  { %2796 = vmatpush1.bf16.msra.mxu0 %v5619_v33  ;;  %2837 = vmatpush1.bf16.msra.mxu1 %v5620_v35 }
 0x89b   :  { %2896 = vmatprep.subr.bf16.mxu0 %v3647_v38  ;;  %2937 = vmatprep.subr.bf16.mxu1 %v3648_v17  ;;  %v3671_v38 = vld [vmem:[#allocation5 + $0xc4] ss:$16 sps:$4 sm:$0xff]   ;;  %v3672_v17 = vld [vmem:[#allocation5 + $0xcc] ss:$16 sps:$4 sm:$0xff]  }
 0x89d   :  { %2814 = vmatmul.mubr.bf16.vlgmr.msra.gmra.mrb[76].mxu0 %v2697_v11  ;;  %2855 = vmatmul.mubr.bf16.vlgmr.msra.gmra.mrb[76].mxu1 %v2697_v11  ;;  %v3670_v11 = vld [vmem:[#allocation5 + $0xa8] ss:$16 sps:$4 sm:$0xff]  }
 0x89e   :  { %2897 = vmatpush1.bf16.msra.mxu0 %v3649_v1  ;;  %2938 = vmatpush1.bf16.msra.mxu1 %v3650_v58  ;;  %v3673_v1 = vld [vmem:[#allocation5 + $0xc0] ss:$16 sps:$4 sm:$0xff]   ;;  %v3674_v58 = vld [vmem:[#allocation5 + $0xc8] ss:$16 sps:$4 sm:$0xff]  }
 0x89f   :  { %2898 = vmatprep.subr.bf16.mxu0 %v3651_v50  ;;  %2939 = vmatprep.subr.bf16.mxu1 %v3652_v0  ;;  %v3675_v50 = vld [vmem:[#allocation5 + $0xe4] ss:$16 sps:$4 sm:$0xff]   ;;  %v3676_v0 = vld [vmem:[#allocation5 + $0xec] ss:$16 sps:$4 sm:$0xff]  }
 0x8a0   :  { %2928 = vmatprep.mubr.bf16.mxu0 %v5200_v13  ;;  %2969 = vmatprep.mubr.bf16.mxu1 %v5200_v13 }
 0x8a2   :  { %2899 = vmatpush1.bf16.msra.mxu0 %v3653_v27  ;;  %2940 = vmatpush1.bf16.msra.mxu1 %v3654_v24  ;;  %v3677_v27 = vld [vmem:[#allocation5 + $0xe0] ss:$16 sps:$4 sm:$0xff]   ;;  %v3678_v24 = vld [vmem:[#allocation5 + $0xe8] ss:$16 sps:$4 sm:$0xff]  }
 0x8a3   :  { %2900 = vmatprep.subr.bf16.mxu0 %v3655_v32  ;;  %2941 = vmatprep.subr.bf16.mxu1 %v3656_v59 }
 0x8a6   :  { %2901 = vmatpush1.bf16.msra.mxu0 %v3657_v51  ;;  %2942 = vmatpush1.bf16.msra.mxu1 %v3658_v5 }
 0x8a7   :  { %2902 = vmatprep.subr.bf16.mxu0 %v3659_v25  ;;  %2943 = vmatprep.subr.bf16.mxu1 %v3660_v42 }
 0x8aa   :  { %2903 = vmatpush1.bf16.msra.mxu0 %v3661_v19  ;;  %2944 = vmatpush1.bf16.msra.mxu1 %v3662_v15 }
 0x8ab   :  { %2904 = vmatprep.subr.bf16.mxu0 %v3663_v34  ;;  %2945 = vmatprep.subr.bf16.mxu1 %v3664_v18 }
 0x8ae   :  { %2905 = vmatpush1.bf16.msra.mxu0 %v3665_v37  ;;  %2946 = vmatpush1.bf16.msra.mxu1 %v3666_v4 }
 0x8af   :  { %2906 = vmatprep.subr.bf16.mxu0 %v3667_v14  ;;  %2947 = vmatprep.subr.bf16.mxu1 %v3668_v56 }
 0x8b2   :  { %2907 = vmatpush1.bf16.msra.mxu0 %v3669_v7  ;;  %2948 = vmatpush1.bf16.msra.mxu1 %v3670_v11 }
 0x8b3   :  { %2908 = vmatprep.subr.bf16.mxu0 %v3671_v38  ;;  %2949 = vmatprep.subr.bf16.mxu1 %v3672_v17  ;;  %v5621_v17 = vld [vmem:[#allocation16_spill] sm:$0xff] }
 0x8b6   :  { %2909 = vmatpush1.bf16.msra.mxu0 %v3673_v1  ;;  %2950 = vmatpush1.bf16.msra.mxu1 %v3674_v58 }
 0x8b7   :  { %2910 = vmatprep.subr.bf16.mxu0 %v3675_v50  ;;  %2951 = vmatprep.subr.bf16.mxu1 %v3676_v0 }
 0x8ba   :  { %2911 = vmatpush1.bf16.msra.mxu0 %v3677_v27  ;;  %2952 = vmatpush1.bf16.msra.mxu1 %v3678_v24  ;;  %v5622_v24 = vld [vmem:[#allocation17_spill] sm:$0xff] }
 0x8bb   :  { %3027 = vmatprep.subr.bf16.mxu0 %v3917_v9  ;;  %3068 = vmatprep.subr.bf16.mxu1 %v5590_v12 }
 0x930   :  { %v2604_v32 = vpop.f32.mrb[68].mxu0  ;;  %v2645_v59 = vpop.f32.mrb[68].mxu1 }
 0x931   :  { %v2606_v51 = vpop.f32.mrb[69].mxu0  ;;  %v2647_v5 = vpop.f32.mrb[69].mxu1 }
 0x932   :  { %v2608_v25 = vpop.f32.mrb[70].mxu0  ;;  %v2649_v42 = vpop.f32.mrb[70].mxu1 }
 0x933   :  { %v2609_v19 = vpop.f32.mrb[71].mxu0  ;;  %v2650_v15 = vpop.f32.mrb[71].mxu1  ;;  %v5623_v42 = vld [vmem:[#allocation18_spill] sm:$0xff] }
 0x950   :  { %v2733_v34 = vpop.f32.mrb[72].mxu0  ;;  %v2774_v18 = vpop.f32.mrb[72].mxu1 }
 0x951   :  { %v2982_v37 = vrot.slane %v2733_v34, 1  ;;  %v2735_v4 = vpop.f32.mrb[73].mxu0  ;;  %v2776_v14 = vpop.f32.mrb[73].mxu1  ;;  %v2984_v0 = vrot.slane %v2774_v18, 1  ;;  %v3014_v18 = vrot.slane %v4834_v41, 7 }
 0x952   :  { %v2983_v56 = vrot.slane %v2735_v4, 1  ;;  %v2737_v7 = vpop.f32.mrb[74].mxu0  ;;  %v2778_v11 = vpop.f32.mrb[74].mxu1  ;;  %v2985_v27 = vrot.slane %v2776_v14, 1 }
 0x953   :  { %v2990_v9 = vadd.f32 %v2982_v37, %v3949_v46  ;;  %v2738_v38 = vpop.f32.mrb[75].mxu0  ;;  %v2779_v12 = vpop.f32.mrb[75].mxu1  ;;  %v2992_v25 = vadd.f32 %v2984_v0, %v5622_v24 }
 0x954   :  { %v2991_v1 = vadd.f32 %v2983_v56, %v5621_v17  ;;  %v2993_v19 = vadd.f32 %v2985_v27, %v5623_v42 }
 0x955   :  { %v3296_v58 = vmul.f32 -1.442695, %v2990_v9  ;;  %v3298_v15 = vmul.f32 -1.442695, %v2992_v25 }
 0x956   :  { %v3297_v50 = vmul.f32 -1.442695, %v2991_v1 }
 0x957   :  { %3567 = vpow2.f32 %v3296_v58 }
 0x958   :  { %3569 = vpow2.f32 %v3297_v50 }
 0x959   :  { %3571 = vtanh.f32 %v2993_v19 }
 0x95a   :  { %3573 = vpow2.f32 %v3298_v15 }
 0x961   :  { %v3568_v34 = vpop.eup %3567 }
 0x962   :  { %v3003_v4 = vadd.f32 1.0, %v3568_v34  ;;  %v3570_v7 = vpop.eup %3569 }
 0x963   :  { %v3004_v46 = vadd.f32 1.0, %v3570_v7  ;;  %v3572_v37 = vpop.eup %3571 }
 0x964   :  { %3575 = vrcp.f32 %v3003_v4  ;;  %v3574_v56 = vpop.eup %3573 }
 0x965   :  { %3577 = vrcp.f32 %v3004_v46  ;;  %v3005_v38 = vadd.f32 1.0, %v3574_v56 }
 0x967   :  { %3579 = vrcp.f32 %v3005_v38 }
 0x96e   :  { %v3576_v11 = vpop.eup %3575 }
 0x96f   :  { %v3017_v9 = vmul.f32 %v3576_v11, %v3572_v37  ;;  %v3578_v14 = vpop.eup %3577 }
 0x970   :  { %v2815_v12 = vpop.f32.mrb[76].mxu0  ;;  %v2856_v17 = vpop.f32.mrb[76].mxu1  ;;  %v3016_v1 = vmul.f32 %v3578_v14, %v3014_v18 }
 0x971   :  { %v2863_v58 = vadd.f32 %v2815_v12, %v2604_v32  ;;  %v2865_v50 = vadd.f32 %v2856_v17, %v2645_v59  ;;  %v2817_v0 = vpop.f32.mrb[77].mxu0  ;;  %v2858_v27 = vpop.f32.mrb[77].mxu1 }
 0x972   :  { %v2864_v24 = vadd.f32 %v2817_v0, %v2606_v51  ;;  %v2866_v25 = vadd.f32 %v2858_v27, %v2647_v5  ;;  %v2819_v42 = vpop.f32.mrb[78].mxu0  ;;  %v2860_v19 = vpop.f32.mrb[78].mxu1  ;;  %v3018_v15 = vadd.f32 %v3017_v9, %v3016_v1 }
 0x973   :  { %v2867_v34 = vadd.f32 %v2863_v58, %v4169_v3  ;;  %v2820_v4 = vpop.f32.mrb[79].mxu0  ;;  %v2861_v7 = vpop.f32.mrb[79].mxu1  ;;  %v2869_v32 = vadd.f32 %v2865_v50, %v4181_v57 }
 0x974   :  { %v2868_v41 = vadd.f32 %v2864_v24, %v4172_v10  ;;  %3581 = vtanh.f32 %v3018_v15  ;;  %v3580_v59 = vpop.eup %3579  ;;  %v2870_v51 = vadd.f32 %v2866_v25, %v4184_v2 }
 0x975   :  { %v3293_v46 = vmul.f32 -1.442695, %v2867_v34  ;;  %v3295_v56 = vmul.f32 -1.442695, %v2869_v32 }
 0x976   :  { %v3294_v37 = vmul.f32 -1.442695, %v2868_v41 }
 0x977   :  { %3583 = vpow2.f32 %v3293_v46 }
 0x978   :  { %3585 = vpow2.f32 %v3294_v37 }
 0x979   :  { %3587 = vtanh.f32 %v2870_v51 }
 0x97a   :  { %3589 = vpow2.f32 %v3295_v56 }
 0x97e   :  { %v3582_v5 = vpop.eup %3581 }
 0x97f   :  { %v3020_v11 = vmul.f32 %v3582_v5, %v3580_v59 }
 0x981   :  { %v3584_v18 = vpop.eup %3583 }
 0x982   :  { %v2880_v9 = vadd.f32 1.0, %v3584_v18  ;;  %v3586_v14 = vpop.eup %3585 }
 0x983   :  { %v2881_v38 = vadd.f32 1.0, %v3586_v14  ;;  %v3588_v12 = vpop.eup %3587 }
 0x984   :  { %3591 = vrcp.f32 %v2880_v9  ;;  %v3590_v17 = vpop.eup %3589 }
 0x985   :  { %3593 = vrcp.f32 %v2881_v38  ;;  %v2882_v50 = vadd.f32 1.0, %v3590_v17 }
 0x987   :  { %3595 = vrcp.f32 %v2882_v50 }
 0x98e   :  { %v3592_v1 = vpop.eup %3591 }
 0x98f   :  { %v2891_v58 = vmul.f32 %v3592_v1, %v3588_v12  ;;  %v3594_v0 = vpop.eup %3593 }
 0x990   :  { %v2890_v27 = vmul.f32 %v3594_v0, %v4842_v26 }
 0x991   :  { %v3596_v25 = vpop.eup %3595 }
 0x992   :  { %v4925_v24 = vadd.f32 %v2891_v58, %v2890_v27 }
 0x994   :  { %3597 = vtanh.f32 %v4925_v24 }
 0x99e   :  { %v3598_v42 = vpop.eup %3597 }
 0x99f   :  { %v2894_v19 = vmul.f32 %v3598_v42, %v3596_v25 }
 0x9a1   :  { %v2895_v15 = vpack.c.bf16 %v2894_v19, %v2894_v19 }
 0x9a3   :  { %2929 = vmatmul.mubr.bf16.vlgmr.msra.gmra.mrb[80].mxu0 %v2895_v15  ;;  %2970 = vmatmul.mubr.bf16.vlgmr.msra.gmra.mrb[80].mxu1 %v2895_v15 }
 0x9a4   :  { %3028 = vmatpush1.bf16.msra.mxu0 %v5591_v16  ;;  %3069 = vmatpush1.bf16.msra.mxu1 %v5592_v20 }
 0x9a5   :  { %3029 = vmatprep.subr.bf16.mxu0 %v5593_v21  ;;  %3070 = vmatprep.subr.bf16.mxu1 %v5594_v22 }
 0x9a6   :  { %3059 = vmatprep.mubr.bf16.mxu0 %v5200_v13  ;;  %3100 = vmatprep.mubr.bf16.mxu1 %v5200_v13  ;;  %v3021_v13 = vpack.c.bf16 %v3020_v11, %v3020_v11 }
 0x9a8   :  { %3030 = vmatpush1.bf16.msra.mxu0 %v5595_v23  ;;  %3071 = vmatpush1.bf16.msra.mxu1 %v5596_v28  ;;  %v3023_v26 = vshrl.u32 %v3021_v13, 16 }
 0x9a9   :  { %3031 = vmatprep.subr.bf16.mxu0 %v5597_v29  ;;  %3072 = vmatprep.subr.bf16.mxu1 %v5598_v30 }
 0x9aa   :  { %v3025_v16 = vrot.slane %v3023_v26, 3 }
 0x9ac   :  { %3032 = vmatpush1.bf16.msra.mxu0 %v5599_v31  ;;  %3073 = vmatpush1.bf16.msra.mxu1 %v5600_v36 }
 0x9ad   :  { %3033 = vmatprep.subr.bf16.mxu0 %v5601_v39  ;;  %3074 = vmatprep.subr.bf16.mxu1 %v5602_v40 }
 0x9b0   :  { %3034 = vmatpush1.bf16.msra.mxu0 %v5603_v43  ;;  %3075 = vmatpush1.bf16.msra.mxu1 %v5604_v44 }
 0x9b1   :  { %3035 = vmatprep.subr.bf16.mxu0 %v5605_v47  ;;  %3076 = vmatprep.subr.bf16.mxu1 %v5606_v48 }
 0x9b4   :  { %3036 = vmatpush1.bf16.msra.mxu0 %v5607_v49  ;;  %3077 = vmatpush1.bf16.msra.mxu1 %v5608_v52 }
 0x9b5   :  { %3037 = vmatprep.subr.bf16.mxu0 %v5609_v53  ;;  %3078 = vmatprep.subr.bf16.mxu1 %v5610_v54 }
 0x9b8   :  { %3038 = vmatpush1.bf16.msra.mxu0 %v5611_v55  ;;  %3079 = vmatpush1.bf16.msra.mxu1 %v5612_v60 }
 0x9b9   :  { %3039 = vmatprep.subr.bf16.mxu0 %v5613_v61  ;;  %3080 = vmatprep.subr.bf16.mxu1 %v5614_v62 }
 0x9bc   :  { %3040 = vmatpush1.bf16.msra.mxu0 %v5615_v63  ;;  %3081 = vmatpush1.bf16.msra.mxu1 %v5616_v6 }
 0x9bd   :  { %3041 = vmatprep.subr.bf16.mxu0 %v5617_v8  ;;  %3082 = vmatprep.subr.bf16.mxu1 %v5618_v45 }
 0x9c0   :  { %3042 = vmatpush1.bf16.msra.mxu0 %v5619_v33  ;;  %3083 = vmatpush1.bf16.msra.mxu1 %v5620_v35 }
 0x9c3   :  { %3060 = vmatmul.mubr.bf16.vlgmr.msra.gmra.mrb[84].mxu0 %v3025_v16  ;;  %3101 = vmatmul.mubr.bf16.vlgmr.msra.gmra.mrb[84].mxu1 %v3025_v16 }
 0xa76   :  { %v2930_v20 = vpop.f32.mrb[80].mxu0  ;;  %v2971_v21 = vpop.f32.mrb[80].mxu1 }
 0xa77   :  { %v2932_v22 = vpop.f32.mrb[81].mxu0  ;;  %v2973_v23 = vpop.f32.mrb[81].mxu1 }
 0xa78   :  { %v2934_v28 = vpop.f32.mrb[82].mxu0  ;;  %v2975_v29 = vpop.f32.mrb[82].mxu1 }
 0xa79   :  { %v2935_v30 = vpop.f32.mrb[83].mxu0  ;;  %v2976_v31 = vpop.f32.mrb[83].mxu1 }
 0xa96   :  { %v3061_v36 = vpop.f32.mrb[84].mxu0  ;;  %v3102_v39 = vpop.f32.mrb[84].mxu1 }
 0xa97   :  { %v3109_v40 = vadd.f32 %v3061_v36, %v2930_v20  ;;  %v3111_v43 = vadd.f32 %v3102_v39, %v2971_v21  ;;  %v3063_v44 = vpop.f32.mrb[85].mxu0  ;;  %v3104_v47 = vpop.f32.mrb[85].mxu1 }
 0xa98   :  { %v3110_v48 = vadd.f32 %v3063_v44, %v2932_v22  ;;  %v3112_v49 = vadd.f32 %v3104_v47, %v2973_v23  ;;  %v3065_v52 = vpop.f32.mrb[86].mxu0  ;;  %v3106_v53 = vpop.f32.mrb[86].mxu1 }
 0xa99   :  { %v3113_v54 = vadd.f32 %v3109_v40, %v4169_v3  ;;  %v3066_v55 = vpop.f32.mrb[87].mxu0  ;;  %v3107_v60 = vpop.f32.mrb[87].mxu1  ;;  %v3115_v6 = vadd.f32 %v3111_v43, %v4181_v57 }
 0xa9a   :  { %v3114_v61 = vadd.f32 %v3110_v48, %v4172_v10  ;;  %v3116_v8 = vadd.f32 %v3112_v49, %v4184_v2 }
 0xa9b   :  { %v3299_v62 = vmul.f32 -1.442695, %v3113_v54  ;;  %v3301_v45 = vmul.f32 -1.442695, %v3115_v6 }
 0xa9c   :  { %v3300_v63 = vmul.f32 -1.442695, %v3114_v61 }
 0xa9d   :  { %3599 = vpow2.f32 %v3299_v62 }
 0xa9e   :  { %3601 = vpow2.f32 %v3300_v63 }
 0xa9f   :  { %3603 = vtanh.f32 %v3116_v8 }
 0xaa0   :  { %3605 = vpow2.f32 %v3301_v45 }
 0xaa7   :  { %v3600_v33 = vpop.eup %3599 }
 0xaa8   :  { %v3126_v35 = vadd.f32 1.0, %v3600_v33  ;;  %v3602_v34 = vpop.eup %3601 }
 0xaa9   :  { %v3127_v3 = vadd.f32 1.0, %v3602_v34  ;;  %v3604_v4 = vpop.eup %3603 }
 0xaaa   :  { %3607 = vrcp.f32 %v3126_v35  ;;  %v3606_v7 = vpop.eup %3605 }
 0xaab   :  { %3609 = vrcp.f32 %v3127_v3  ;;  %v3128_v37 = vadd.f32 1.0, %v3606_v7 }
 0xaad   :  { %3611 = vrcp.f32 %v3128_v37 }
 0xab4   :  { %v3608_v10 = vpop.eup %3607 }
 0xab5   :  { %v3137_v41 = vmul.f32 %v3608_v10, %v3604_v4  ;;  %v3610_v46 = vpop.eup %3609 }
 0xab6   :  { %v3136_v32 = vmul.f32 %v3610_v46, %v4925_v24 }
 0xab7   :  { %v3612_v2 = vpop.eup %3611 }
 0xab8   :  { %v3138_v57 = vadd.f32 %v3137_v41, %v3136_v32 }
 0xaba   :  { %3613 = vtanh.f32 %v3138_v57 }
 0xac4   :  { %v3614_v59 = vpop.eup %3613 }
 0xac5   :  { %v3140_v51 = vmul.f32 %v3614_v59, %v3612_v2 }
 0xac7   :  { %3141 = vst [vmem:[#allocation7] sm:$0x1] %v3140_v51 }
 0xac8   :  { %3734 = shalt.err (!%p3731_p6)
}
 0xac9   :  { %s3735_s9 = scalar_lea.hbm %s4983_s6, 16 }
 0xaca   :  { %p3736_p7 = scmp.ne.s32.totalorder %s4983_s6, %s3735_s9  ;;  %p3739_p8 = scmp.lt.u32.totalorder %s3735_s9, %s4983_s6 }
 0xacc   :  { %p3741_p9 = pnand %p3739_p8, %p3736_p7 }
 0xace   :  { %3744 = shalt.err (!%p3741_p9)
}
 0xacf   :  { %3151 = dma.vmem_to_hbm [thread:$0]  %s3149_s28, 16, %s4983_s6, [#allocation4]  }
 0xad0   :  { %3749 = dma.done.wait [#allocation4], 16  }
 0xad1   :  { %3750 = vsyncadd [#allocation4], 4294967280 }
 0xad2   :  { %3155 = vsyncpa [#allocation3], 1 }
 0xad3   :  { %3156 = vsyncpa [#allocation6], 1 }
 0xad4   :  { %3157 = vsyncpa [#allocation4], 1 }

</bundles_post_ra>
